<compile_context>
chip_gen: v7x
topology: tpu7x:2x2x1
jax: 0.10.0
libtpu: 0.0.40
codegen_flags: <defaults>
</compile_context>

<pallas_src>
import functools
import math

import jax
import jax.numpy as jnp
from jax.experimental import pallas as pl
from jax.experimental.pallas import tpu as pltpu

SEQ_LEN = 6
DOWNSAMPLE_SIZE = 128
CONV_CH = 64          # stem conv channels of the stand-in encoder
EMB_DIM = 512         # encoder output dim (what resnet18 would produce)
KH = KW = 3           # stem conv kernel size (SAME padding, stride 1)


def _round_up(x, m):
    return ((x + m - 1) // m) * m


def _encoder_kernel(x_ref, wkt_ref, bct_ref, pool_ref, w1_ref, b1_ref,
                    wd_ref, bd_ref, out_ref, xk_ref, *, wp):
    """Fused stand-in encoder + downsampler for one tile of TILE_N images.

    x_ref    : (C, M)           bf16  raw zero-padded images, flattened per image
    wkt_ref  : (CONV_CH, K_pad) bf16  conv taps, each tap padded to 8 rows
    bct_ref  : (CONV_CH, 1)     f32   conv bias
    pool_ref : (M', TILE_N)     bf16  masked block-diagonal averaging matrix
    w1_ref   : (CONV_CH, 512)   bf16
    b1_ref   : (1, 512)         f32
    wd_ref   : (512, 128)       bf16  nn.Linear(512, downsample_size) weight
    bd_ref   : (1, 128)         f32
    out_ref  : (TILE_N, 128)    f32
    xk_ref   : (K_pad, M')      bf16  VMEM scratch: lane-shifted tap stack
    """
    m = x_ref.shape[1]
    m_out = m - 2 * (wp + 1)                 # conv output columns actually used
    nrt = xk_ref.shape[0] // (KH * KW)       # sublane rows per tap (C padded to 8)
    c_in = x_ref.shape[0]

    x = x_ref[...]                           # (C, M) bf16, resident in VMEM

    # Pack the 9 lane-shifted conv taps into a sublane-aligned k-stack.  Rows
    # [t*nrt + C, (t+1)*nrt) and lanes >= m_out stay zero; the matching weight
    # columns / pooling-matrix rows are zero too, so they drop out of the dots.
    xk_ref[...] = jnp.zeros_like(xk_ref)
    for t in range(KH * KW):
        di, dj = t // KW, t % KW
        off = di * wp + dj                   # static lane shift for this tap
        xk_ref[t * nrt: t * nrt + c_in, :m_out] = x[:, off: off + m_out]

    # 3x3 SAME conv for the whole tile: ONE (CONV_CH, K_pad) @ (K_pad, M') bf16
    # matmul on the MXU with f32 accumulation; bias + ReLU stay f32 (VPU).
    conv = jnp.dot(wkt_ref[...], xk_ref[...],
                   preferred_element_type=jnp.float32)      # (CONV_CH, M') f32
    conv = jnp.maximum(conv + bct_ref[...], 0.0)

    # Global average pool == bf16 matmul with the precomputed masked averaging
    # matrix (1/(H*W) at each valid position of its tile-local image, else 0).
    pooled = jnp.dot(conv.astype(jnp.bfloat16), pool_ref[...],
                     preferred_element_type=jnp.float32)    # (CONV_CH, TILE_N)

    # Encoder head: project to the 512-dim embedding (contract over CONV_CH so
    # the result lands in (TILE_N, 512) orientation).
    emb = jax.lax.dot_general(pooled.astype(jnp.bfloat16), w1_ref[...],
                              (((0,), (0,)), ((), ())),
                              preferred_element_type=jnp.float32)  # (TILE_N, 512)
    emb = jnp.maximum(emb + b1_ref[...], 0.0)

    # Downsampler: nn.Linear(512, downsample_size); lane-dense (.., 128) store.
    out = jnp.dot(emb.astype(jnp.bfloat16), wd_ref[...],
                  preferred_element_type=jnp.float32) + bd_ref[...]
    out_ref[...] = out.astype(out_ref.dtype)                # (TILE_N, 128)


def init_params(key, c_in):
    k1, k2, k3, k4, k5, k6 = jax.random.split(key, 6)
    k_dim = KH * KW * c_in
    wc = jax.random.normal(k1, (k_dim, CONV_CH), jnp.float32) * 0.1
    bc = jax.random.normal(k2, (1, CONV_CH), jnp.float32) * 0.01
    w1 = jax.random.normal(k3, (CONV_CH, EMB_DIM), jnp.float32) * 0.05
    b1 = jax.random.normal(k4, (1, EMB_DIM), jnp.float32) * 0.01
    wd = jax.random.normal(k5, (EMB_DIM, DOWNSAMPLE_SIZE), jnp.float32) * 0.02
    bd = jax.random.normal(k6, (1, DOWNSAMPLE_SIZE), jnp.float32) * 0.01
    return wc, bc, w1, b1, wd, bd


def sequential_encoder_forward(data, params, seq_len=SEQ_LEN, tile_n=32):
    """data: (B, S, C, H, W)  ->  (B, S, downsample_size)"""
    b, s, c, h, w = data.shape
    assert s == seq_len
    n = b * s
    hp, wp = h + KH - 1, w + KW - 1          # spatially padded image dims

    # ---- tiling over images (grid axis) ------------------------------------
    tile_n = max(8, min(_round_up(tile_n, 8), _round_up(n, 8)))
    # Per-image flattened stride padded so a tile's lane width is 128-aligned
    # for ANY image size (robust to H*W not being a multiple of 128).
    req = 128 // math.gcd(tile_n, 128)
    img_stride = _round_up(hp * wp, req)
    n_pad = _round_up(n, tile_n)
    m = tile_n * img_stride                  # streamed block lane width (%128==0)
    m_out = m - 2 * (wp + 1)                 # conv output columns per tile
    m_out_a = _round_up(m_out, 128)          # allocated width (<= m)
    nrt = _round_up(c, 8)                    # sublane rows per conv tap
    k_pad = KH * KW * nrt

    # ---- streamed input: cast to bf16 FIRST, pad spatially, flatten --------
    x = data.reshape(n, c, h, w).astype(jnp.bfloat16)
    x = jnp.pad(x, ((0, n_pad - n), (0, 0), (1, 1), (1, 1)))   # (n_pad,c,hp,wp)
    x = x.transpose(1, 0, 2, 3).reshape(c, n_pad, hp * wp)
    if img_stride != hp * wp:
        x = jnp.pad(x, ((0, 0), (0, 0), (0, img_stride - hp * wp)))
    x_flat = x.reshape(c, n_pad * img_stride)                  # (C, n_pad*stride)

    # ---- pooling matrix: built ONCE, identical for every tile --------------
    q = jnp.arange(m_out_a)
    f = q + (wp + 1)                          # flat padded index of output col q
    n_loc = f // img_stride
    rem = f % img_stride
    ip, jp = rem // wp, rem % wp
    valid = ((q < m_out) & (rem < hp * wp)
             & (ip >= 1) & (ip <= h) & (jp >= 1) & (jp <= w))
    poolmat = jnp.where(valid[:, None]
                        & (n_loc[:, None] == jnp.arange(tile_n)[None, :]),
                        1.0 / (h * w), 0.0).astype(jnp.bfloat16)  # (M', TILE_N)

    # ---- weights: bf16 at matmul operands, biases f32 ----------------------
    wc, bc, w1, b1, wd, bd = params
    w_taps = jnp.pad(wc.reshape(KH * KW, c, CONV_CH),
                     ((0, 0), (0, nrt - c), (0, 0)))            # (9, nrt, CONV_CH)
    wkt = w_taps.reshape(k_pad, CONV_CH).T.astype(jnp.bfloat16)  # (CONV_CH, K_pad)
    bct = bc.reshape(CONV_CH, 1).astype(jnp.float32)
    w1b, wdb = w1.astype(jnp.bfloat16), wd.astype(jnp.bfloat16)
    b1f, bdf = b1.astype(jnp.float32), bd.astype(jnp.float32)

    grid = (n_pad // tile_n,)
    kernel = functools.partial(_encoder_kernel, wp=wp)

    flops = grid[0] * 2 * (CONV_CH * k_pad * m_out_a
                           + CONV_CH * m_out_a * tile_n
                           + tile_n * CONV_CH * EMB_DIM
                           + tile_n * EMB_DIM * DOWNSAMPLE_SIZE)
    bytes_accessed = (x_flat.size * 2 + n_pad * DOWNSAMPLE_SIZE * 4
                      + (wkt.size + poolmat.size + w1b.size + wdb.size) * 2
                      + (bct.size + b1f.size + bdf.size) * 4)

    out_pad = pl.pallas_call(
        kernel,
        out_shape=jax.ShapeDtypeStruct((n_pad, DOWNSAMPLE_SIZE), jnp.float32),
        grid=grid,
        in_specs=[
            pl.BlockSpec((c, m), lambda i: (0, i)),              # streamed images
            pl.BlockSpec((CONV_CH, k_pad), lambda i: (0, 0)),    # conv taps
            pl.BlockSpec((CONV_CH, 1), lambda i: (0, 0)),        # conv bias
            pl.BlockSpec((m_out_a, tile_n), lambda i: (0, 0)),   # pooling matrix
            pl.BlockSpec((CONV_CH, EMB_DIM), lambda i: (0, 0)),  # fc1 weight
            pl.BlockSpec((1, EMB_DIM), lambda i: (0, 0)),        # fc1 bias
            pl.BlockSpec((EMB_DIM, DOWNSAMPLE_SIZE), lambda i: (0, 0)),
            pl.BlockSpec((1, DOWNSAMPLE_SIZE), lambda i: (0, 0)),
        ],
        out_specs=pl.BlockSpec((tile_n, DOWNSAMPLE_SIZE), lambda i: (i, 0)),
        scratch_shapes=[pltpu.VMEM((k_pad, m_out_a), jnp.bfloat16)],
        compiler_params=pltpu.CompilerParams(
            dimension_semantics=("parallel",),
            vmem_limit_bytes=40 * 1024 * 1024),
        cost_estimate=pl.CostEstimate(flops=int(flops), transcendentals=0,
                                      bytes_accessed=int(bytes_accessed)),
    )(x_flat, wkt, bct, poolmat, w1b, b1f, wdb, bdf)

    # rearrange '(b s) d -> b s d' (drop the image padding).
    return out_pad[:n].reshape(b, s, DOWNSAMPLE_SIZE)


def _reference_forward(data, params):
    """Pure-JAX f32 reference of the same stand-in encoder + downsampler."""
    b, s, c, h, w = data.shape
    x = data.reshape(b * s, c, h, w).transpose(0, 2, 3, 1)    # NHWC
    xp = jnp.pad(x, ((0, 0), (1, 1), (1, 1), (0, 0)))
    cols = []
    for di in range(KH):
        for dj in range(KW):
            cols.append(xp[:, di:di + h, dj:dj + w, :])
    patches = jnp.concatenate(cols, axis=-1).reshape(b * s, h * w, KH * KW * c)
    wc, bc, w1, b1, wd, bd = params
    conv = jnp.maximum(jnp.einsum('npk,kc->npc', patches, wc) + bc, 0.0)
    pooled = jnp.mean(conv, axis=1)
    emb = jnp.maximum(pooled @ w1 + b1, 0.0)
    out = emb @ wd + bd
    return out.reshape(b, s, DOWNSAMPLE_SIZE)


if __name__ == "__main__":
    key = jax.random.PRNGKey(0)
    k_data, k_param = jax.random.split(key)

    B, S, C, H, W = 2, SEQ_LEN, 3, 16, 16
    data = jax.random.normal(k_data, (B, S, C, H, W), jnp.float32)
    params = init_params(k_param, C)

    # tile_n=8 -> N=12 pads to 16 and the grid has 2 steps (exercises the
    # pipelined / tiled path and the per-image stride-padding logic).
    out = sequential_encoder_forward(data, params, tile_n=8)
    out = jax.block_until_ready(out)

    assert out.shape == (B, S, DOWNSAMPLE_SIZE), out.shape
    assert out.dtype == jnp.float32
    assert bool(jnp.all(jnp.isfinite(out)))

    ref = _reference_forward(data, params)
    max_err = float(jnp.max(jnp.abs(out - ref)))
    assert bool(jnp.allclose(out, ref, rtol=5e-2, atol=5e-2)), max_err

    print("KERNEL_OK")
</pallas_src>

<mosaic_0001>
module attributes {stable_mosaic.version = 11 : i64} {
  func.func @_encoder_kernel(%arg0: i32, %arg1: memref<3x2688xbf16, #tpu.memory_space<vmem>>, %arg2: memref<64x72xbf16, #tpu.memory_space<vmem>>, %arg3: memref<64x1xf32, #tpu.memory_space<vmem>>, %arg4: memref<2688x8xbf16, #tpu.memory_space<vmem>>, %arg5: memref<64x512xbf16, #tpu.memory_space<vmem>>, %arg6: memref<1x512xf32, #tpu.memory_space<vmem>>, %arg7: memref<512x128xbf16, #tpu.memory_space<vmem>>, %arg8: memref<1x128xf32, #tpu.memory_space<vmem>>, %arg9: memref<8x128xf32, #tpu.memory_space<vmem>>, %arg10: memref<72x2688xbf16, #tpu.memory_space<vmem>>) attributes {dimension_semantics = [#tpu.dimension_semantics<parallel>], iteration_bounds = array<i64: 2>, scalar_prefetch = 0 : i64, scratch_operands = 1 : i64, tpu.core_type = #tpu.core_type<tc>, window_params = [{transform_indices = @transform_0, window_bounds = array<i64: 3, 2688>}, {pipeline_mode = #tpu.pipeline_mode<synchronous>, transform_indices = @transform_1, window_bounds = array<i64: 64, 72>}, {pipeline_mode = #tpu.pipeline_mode<synchronous>, transform_indices = @transform_2, window_bounds = array<i64: 64, 1>}, {pipeline_mode = #tpu.pipeline_mode<synchronous>, transform_indices = @transform_3, window_bounds = array<i64: 2688, 8>}, {pipeline_mode = #tpu.pipeline_mode<synchronous>, transform_indices = @transform_4, window_bounds = array<i64: 64, 512>}, {pipeline_mode = #tpu.pipeline_mode<synchronous>, transform_indices = @transform_5, window_bounds = array<i64: 1, 512>}, {pipeline_mode = #tpu.pipeline_mode<synchronous>, transform_indices = @transform_6, window_bounds = array<i64: 512, 128>}, {pipeline_mode = #tpu.pipeline_mode<synchronous>, transform_indices = @transform_7, window_bounds = array<i64: 1, 128>}, {transform_indices = @transform_8, window_bounds = array<i64: 8, 128>}]} {
    %c0 = arith.constant 0 : index
    %c0_0 = arith.constant 0 : index
    %0 = vector.load %arg1[%c0, %c0_0] : memref<3x2688xbf16, #tpu.memory_space<vmem>>, vector<3x2688xbf16>
    %cst = arith.constant 0.000000e+00 : bf16
    %1 = vector.broadcast %cst : bf16 to vector<72x2688xbf16>
    %c0_1 = arith.constant 0 : index
    %c0_2 = arith.constant 0 : index
    %2 = vector.load %arg10[%c0_1, %c0_2] : memref<72x2688xbf16, #tpu.memory_space<vmem>>, vector<72x2688xbf16>
    tpu.vector_store %arg10[%c0_1, %c0_2], %1 {strides = array<i32>} : memref<72x2688xbf16, #tpu.memory_space<vmem>>, vector<72x2688xbf16>,
    %3 = vector.extract_strided_slice %0 {offsets = [0, 0], sizes = [3, 2650], strides = [1, 1]} : vector<3x2688xbf16> to vector<3x2650xbf16>
    %c0_3 = arith.constant 0 : index
    %c0_4 = arith.constant 0 : index
    %4 = vector.load %arg10[%c0_3, %c0_4] : memref<72x2688xbf16, #tpu.memory_space<vmem>>, vector<3x2650xbf16>
    tpu.vector_store %arg10[%c0_3, %c0_4], %3 {strides = array<i32>} : memref<72x2688xbf16, #tpu.memory_space<vmem>>, vector<3x2650xbf16>,
    %5 = vector.extract_strided_slice %0 {offsets = [0, 1], sizes = [3, 2650], strides = [1, 1]} : vector<3x2688xbf16> to vector<3x2650xbf16>
    %c8 = arith.constant 8 : index
    %c0_5 = arith.constant 0 : index
    %6 = vector.load %arg10[%c8, %c0_5] : memref<72x2688xbf16, #tpu.memory_space<vmem>>, vector<3x2650xbf16>
    tpu.vector_store %arg10[%c8, %c0_5], %5 {strides = array<i32>} : memref<72x2688xbf16, #tpu.memory_space<vmem>>, vector<3x2650xbf16>,
    %7 = vector.extract_strided_slice %0 {offsets = [0, 2], sizes = [3, 2650], strides = [1, 1]} : vector<3x2688xbf16> to vector<3x2650xbf16>
    %c16 = arith.constant 16 : index
    %c0_6 = arith.constant 0 : index
    %8 = vector.load %arg10[%c16, %c0_6] : memref<72x2688xbf16, #tpu.memory_space<vmem>>, vector<3x2650xbf16>
    tpu.vector_store %arg10[%c16, %c0_6], %7 {strides = array<i32>} : memref<72x2688xbf16, #tpu.memory_space<vmem>>, vector<3x2650xbf16>,
    %9 = vector.extract_strided_slice %0 {offsets = [0, 18], sizes = [3, 2650], strides = [1, 1]} : vector<3x2688xbf16> to vector<3x2650xbf16>
    %c24 = arith.constant 24 : index
    %c0_7 = arith.constant 0 : index
    %10 = vector.load %arg10[%c24, %c0_7] : memref<72x2688xbf16, #tpu.memory_space<vmem>>, vector<3x2650xbf16>
    tpu.vector_store %arg10[%c24, %c0_7], %9 {strides = array<i32>} : memref<72x2688xbf16, #tpu.memory_space<vmem>>, vector<3x2650xbf16>,
    %11 = vector.extract_strided_slice %0 {offsets = [0, 19], sizes = [3, 2650], strides = [1, 1]} : vector<3x2688xbf16> to vector<3x2650xbf16>
    %c32 = arith.constant 32 : index
    %c0_8 = arith.constant 0 : index
    %12 = vector.load %arg10[%c32, %c0_8] : memref<72x2688xbf16, #tpu.memory_space<vmem>>, vector<3x2650xbf16>
    tpu.vector_store %arg10[%c32, %c0_8], %11 {strides = array<i32>} : memref<72x2688xbf16, #tpu.memory_space<vmem>>, vector<3x2650xbf16>,
    %13 = vector.extract_strided_slice %0 {offsets = [0, 20], sizes = [3, 2650], strides = [1, 1]} : vector<3x2688xbf16> to vector<3x2650xbf16>
    %c40 = arith.constant 40 : index
    %c0_9 = arith.constant 0 : index
    %14 = vector.load %arg10[%c40, %c0_9] : memref<72x2688xbf16, #tpu.memory_space<vmem>>, vector<3x2650xbf16>
    tpu.vector_store %arg10[%c40, %c0_9], %13 {strides = array<i32>} : memref<72x2688xbf16, #tpu.memory_space<vmem>>, vector<3x2650xbf16>,
    %15 = vector.extract_strided_slice %0 {offsets = [0, 36], sizes = [3, 2650], strides = [1, 1]} : vector<3x2688xbf16> to vector<3x2650xbf16>
    %c48 = arith.constant 48 : index
    %c0_10 = arith.constant 0 : index
    %16 = vector.load %arg10[%c48, %c0_10] : memref<72x2688xbf16, #tpu.memory_space<vmem>>, vector<3x2650xbf16>
    tpu.vector_store %arg10[%c48, %c0_10], %15 {strides = array<i32>} : memref<72x2688xbf16, #tpu.memory_space<vmem>>, vector<3x2650xbf16>,
    %17 = vector.extract_strided_slice %0 {offsets = [0, 37], sizes = [3, 2650], strides = [1, 1]} : vector<3x2688xbf16> to vector<3x2650xbf16>
    %c56 = arith.constant 56 : index
    %c0_11 = arith.constant 0 : index
    %18 = vector.load %arg10[%c56, %c0_11] : memref<72x2688xbf16, #tpu.memory_space<vmem>>, vector<3x2650xbf16>
    tpu.vector_store %arg10[%c56, %c0_11], %17 {strides = array<i32>} : memref<72x2688xbf16, #tpu.memory_space<vmem>>, vector<3x2650xbf16>,
    %19 = vector.extract_strided_slice %0 {offsets = [0, 38], sizes = [3, 2650], strides = [1, 1]} : vector<3x2688xbf16> to vector<3x2650xbf16>
    %c64 = arith.constant 64 : index
    %c0_12 = arith.constant 0 : index
    %20 = vector.load %arg10[%c64, %c0_12] : memref<72x2688xbf16, #tpu.memory_space<vmem>>, vector<3x2650xbf16>
    tpu.vector_store %arg10[%c64, %c0_12], %19 {strides = array<i32>} : memref<72x2688xbf16, #tpu.memory_space<vmem>>, vector<3x2650xbf16>,
    %c0_13 = arith.constant 0 : index
    %c0_14 = arith.constant 0 : index
    %21 = vector.load %arg2[%c0_13, %c0_14] : memref<64x72xbf16, #tpu.memory_space<vmem>>, vector<64x72xbf16>
    %c0_15 = arith.constant 0 : index
    %c0_16 = arith.constant 0 : index
    %22 = vector.load %arg10[%c0_15, %c0_16] : memref<72x2688xbf16, #tpu.memory_space<vmem>>, vector<72x2688xbf16>
    %cst_17 = arith.constant dense<0.000000e+00> : vector<64x2688xf32>
    %23 = tpu.matmul %21, %22, %cst_17 {dimension_numbers = #tpu.dot_dimension_numbers<[1], [0], [0], [1], [0, 0, 1, 1], [], []>} : vector<64x72xbf16>, vector<72x2688xbf16>, vector<64x2688xf32> -> vector<64x2688xf32>
    %c0_18 = arith.constant 0 : index
    %c0_19 = arith.constant 0 : index
    %24 = vector.load %arg3[%c0_18, %c0_19] : memref<64x1xf32, #tpu.memory_space<vmem>>, vector<64x1xf32>
    %25 = vector.broadcast %24 : vector<64x1xf32> to vector<64x2688xf32>
    %26 = arith.addf %23, %25 : vector<64x2688xf32>
    %cst_20 = arith.constant 0.000000e+00 : f32
    %27 = vector.broadcast %cst_20 : f32 to vector<64x2688xf32>
    %28 = arith.maximumf %26, %27 : vector<64x2688xf32>
    %29 = arith.truncf %28 : vector<64x2688xf32> to vector<64x2688xbf16>
    %c0_21 = arith.constant 0 : index
    %c0_22 = arith.constant 0 : index
    %30 = vector.load %arg4[%c0_21, %c0_22] : memref<2688x8xbf16, #tpu.memory_space<vmem>>, vector<2688x8xbf16>
    %cst_23 = arith.constant dense<0.000000e+00> : vector<64x8xf32>
    %31 = tpu.matmul %29, %30, %cst_23 {dimension_numbers = #tpu.dot_dimension_numbers<[1], [0], [0], [1], [0, 0, 1, 1], [], []>} : vector<64x2688xbf16>, vector<2688x8xbf16>, vector<64x8xf32> -> vector<64x8xf32>
    %32 = arith.truncf %31 : vector<64x8xf32> to vector<64x8xbf16>
    %c0_24 = arith.constant 0 : index
    %c0_25 = arith.constant 0 : index
    %33 = vector.load %arg5[%c0_24, %c0_25] : memref<64x512xbf16, #tpu.memory_space<vmem>>, vector<64x512xbf16>
    %cst_26 = arith.constant dense<0.000000e+00> : vector<8x512xf32>
    %34 = tpu.matmul %32, %33, %cst_26 {dimension_numbers = #tpu.dot_dimension_numbers<[0], [0], [1], [1], [0, 1, 1, 1], [], []>} : vector<64x8xbf16>, vector<64x512xbf16>, vector<8x512xf32> -> vector<8x512xf32>
    %c0_27 = arith.constant 0 : index
    %c0_28 = arith.constant 0 : index
    %35 = vector.load %arg6[%c0_27, %c0_28] : memref<1x512xf32, #tpu.memory_space<vmem>>, vector<1x512xf32>
    %36 = vector.broadcast %35 : vector<1x512xf32> to vector<8x512xf32>
    %37 = arith.addf %34, %36 : vector<8x512xf32>
    %cst_29 = arith.constant 0.000000e+00 : f32
    %38 = vector.broadcast %cst_29 : f32 to vector<8x512xf32>
    %39 = arith.maximumf %37, %38 : vector<8x512xf32>
    %40 = arith.truncf %39 : vector<8x512xf32> to vector<8x512xbf16>
    %c0_30 = arith.constant 0 : index
    %c0_31 = arith.constant 0 : index
    %41 = vector.load %arg7[%c0_30, %c0_31] : memref<512x128xbf16, #tpu.memory_space<vmem>>, vector<512x128xbf16>
    %cst_32 = arith.constant dense<0.000000e+00> : vector<8x128xf32>
    %42 = tpu.matmul %40, %41, %cst_32 {dimension_numbers = #tpu.dot_dimension_numbers<[1], [0], [0], [1], [0, 0, 1, 1], [], []>} : vector<8x512xbf16>, vector<512x128xbf16>, vector<8x128xf32> -> vector<8x128xf32>
    %c0_33 = arith.constant 0 : index
    %c0_34 = arith.constant 0 : index
    %43 = vector.load %arg8[%c0_33, %c0_34] : memref<1x128xf32, #tpu.memory_space<vmem>>, vector<1x128xf32>
    %44 = vector.broadcast %43 : vector<1x128xf32> to vector<8x128xf32>
    %45 = arith.addf %42, %44 : vector<8x128xf32>
    %c0_35 = arith.constant 0 : index
    %c0_36 = arith.constant 0 : index
    %46 = vector.load %arg9[%c0_35, %c0_36] : memref<8x128xf32, #tpu.memory_space<vmem>>, vector<8x128xf32>
    tpu.vector_store %arg9[%c0_35, %c0_36], %45 {strides = array<i32>} : memref<8x128xf32, #tpu.memory_space<vmem>>, vector<8x128xf32>,
    return
  }
  func.func @transform_0(%arg0: i32) -> (i32, i32) {
    %c0_i32 = arith.constant 0 : i32
    %c0_i32_0 = arith.constant 0 : i32
    return %c0_i32, %arg0 : i32, i32
  }
  func.func @transform_1(%arg0: i32) -> (i32, i32) {
    %c0_i32 = arith.constant 0 : i32
    %c0_i32_0 = arith.constant 0 : i32
    %c0_i32_1 = arith.constant 0 : i32
    return %c0_i32, %c0_i32_0 : i32, i32
  }
  func.func @transform_2(%arg0: i32) -> (i32, i32) {
    %c0_i32 = arith.constant 0 : i32
    %c0_i32_0 = arith.constant 0 : i32
    %c0_i32_1 = arith.constant 0 : i32
    return %c0_i32, %c0_i32_0 : i32, i32
  }
  func.func @transform_3(%arg0: i32) -> (i32, i32) {
    %c0_i32 = arith.constant 0 : i32
    %c0_i32_0 = arith.constant 0 : i32
    %c0_i32_1 = arith.constant 0 : i32
    return %c0_i32, %c0_i32_0 : i32, i32
  }
  func.func @transform_4(%arg0: i32) -> (i32, i32) {
    %c0_i32 = arith.constant 0 : i32
    %c0_i32_0 = arith.constant 0 : i32
    %c0_i32_1 = arith.constant 0 : i32
    return %c0_i32, %c0_i32_0 : i32, i32
  }
  func.func @transform_5(%arg0: i32) -> (i32, i32) {
    %c0_i32 = arith.constant 0 : i32
    %c0_i32_0 = arith.constant 0 : i32
    %c0_i32_1 = arith.constant 0 : i32
    return %c0_i32, %c0_i32_0 : i32, i32
  }
  func.func @transform_6(%arg0: i32) -> (i32, i32) {
    %c0_i32 = arith.constant 0 : i32
    %c0_i32_0 = arith.constant 0 : i32
    %c0_i32_1 = arith.constant 0 : i32
    return %c0_i32, %c0_i32_0 : i32, i32
  }
  func.func @transform_7(%arg0: i32) -> (i32, i32) {
    %c0_i32 = arith.constant 0 : i32
    %c0_i32_0 = arith.constant 0 : i32
    %c0_i32_1 = arith.constant 0 : i32
    return %c0_i32, %c0_i32_0 : i32, i32
  }
  func.func @transform_8(%arg0: i32) -> (i32, i32) {
    %c0_i32 = arith.constant 0 : i32
    %c0_i32_0 = arith.constant 0 : i32
    return %arg0, %c0_i32 : i32, i32
  }
}

</mosaic_0001>

<bundles_post_ra>
// kernel: tpu_custom_call.1
= control target key start
LH: loop header
LB: loop body
LE: loop exit
PB: predicated region body
PF: predicated region fallthrough
CT: control target
= control target key end

     0   :  { %13 = vsyncpa [#allocation4], 0  ;;  %s9666_s0 = inlined_call_operand.vmem [shape: bf16[3,5376], index: 0, kind: input, shape index: {}]   ;;  %s9667_s1 = inlined_call_operand.vmem [shape: bf16[64,72], index: 1, kind: input, shape index: {}]   ;;  %s9668_s2 = inlined_call_operand.vmem [shape: f32[64,1], index: 2, kind: input, shape index: {}]   ;;  %s9669_s3 = inlined_call_operand.vmem [shape: bf16[2688,8], index: 3, kind: input, shape index: {}]   ;;  %s9670_s4 = inlined_call_operand.vmem [shape: bf16[64,512], index: 4, kind: input, shape index: {}]   ;;  %s9671_s5 = inlined_call_operand.vmem [shape: f32[1,512], index: 5, kind: input, shape index: {}]   ;;  %s9672_s6 = inlined_call_operand.vmem [shape: bf16[512,128], index: 6, kind: input, shape index: {}]   ;;  %s9673_s7 = inlined_call_operand.vmem [shape: f32[1,128], index: 7, kind: input, shape index: {}]   ;;  %s9674_s8 = inlined_call_operand.hbm [shape: f32[16,128], index: 8, kind: output, shape index: {}]  }
   0x1   :  { %15 = vsyncpa [#allocation4 + $0x1], 0  ;;  %s7277_s27 = smov 0   ;;  %s7279_s28 = smov 0  }
   0x2   :  { %s7281_s29 = smov 0   ;;  %s7283_s30 = smov 0  }
   0x3 LB: > { %s7298_s9 = sadd.s32 4294967295, %s7219_s30   ;;  %s5822_s10 = sadd.s32 4294967294, %s7219_s30   ;;  %s7219_s30 = sphi %s7283_s30, %s9686_s30   ;;  %s7215_s29 = sphi %s7281_s29, %s9685_s29   ;;  %s7211_s28 = sphi %s7279_s28, %s9684_s28   ;;  %s7207_s27 = sphi %s7277_s27, %s9683_s27  }
   0x4   : > { %s7302_s11 = sadd.s32 1, %s7219_s30   ;;  %s201_s12 = sadd.s32 1, %s7215_s29 }
   0x5   : > { %s198_s13 = ssub.s32 %s7219_s30, %s7302_s11  ;;  %p211_p0 = scmp.ne.s32.totalorder %s7215_s29, %s7211_s28 }
   0x6   : > { %p199_p1 = scmp.eq.s32.totalorder %s198_s13, 0  ;;  %p212_p2 = scmp.eq.s32.totalorder %s7298_s9, 1 }
   0x7   : > { %p217_p3 = scmp.ne.s32.totalorder %s7211_s28, %s7207_s27  ;;  %p218_p4 = scmp.eq.s32.totalorder %s5822_s10, 1 }
   0x8   : > { %s7313_s14 = scalar_select %p199_p1, %s7215_s29, %s201_s12  }
   0x9   : > { %p7315_p5 = por %p212_p2, %p211_p0  ;;  %p7319_p6 = por %p218_p4, %p217_p3 }
   0xa   : > { %p5825_p7 = scmp.ge.s32.totalorder %s7219_s30, 1  ;;  %p266_p8 = scmp.lt.s32.totalorder %s7219_s30, 3 }
   0xc   : > { %p267_p9 = pnand %p5825_p7, %p266_p8 }
   0xd   : > { %s300_s17 = smul.u32 (!%p267_p9), 21, %s7298_s9  ;;  %v422_v0 = vlaneseq (!%p267_p9)  ;;  %v7221_v1 = vmov (!%p267_p9), 1983009808   ;;  %v7222_v3 = vmov (!%p267_p9), 0   ;;  %vm511_vm0 = vcmask (!%p267_p9), 1041408   ;;  %s7223_s22 = smov (!%p267_p9), 126  }
   0xe   : > { %270 = sbr.rel (%p267_p9) target bundleno = 1351 (0x547), region = 52  ;;  %v7326_v2 = vunpack.c.l.s4 (!%p267_p9), %v7221_v1  ;;  %335 = vst [vmem:[#allocation2 + $0xa8] sm:$0xff] (!%p267_p9), %v7222_v3  ;;  %313 = vst [vmem:[#allocation2] sm:$0xff] (!%p267_p9), %v7222_v3  ;;  %2099 = vmatprep.mubr.bf16.mxu0 (!%p267_p9), %v7222_v3  ;;  %2172 = vmatprep.mubr.bf16.mxu1 (!%p267_p9), %v7222_v3  ;;  %vm512_vm1 = vsmask.f32 (!%p267_p9), 1280  ;;  %vm514_vm2 = vcmask (!%p267_p9), 1045508  }
   0xf   : > { %314 = vst [vmem:[#allocation2 + $0x8] sm:$0xff] (!%p267_p9), %v7222_v3  ;;  %315 = vst [vmem:[#allocation2 + $0x10] sm:$0xff] (!%p267_p9), %v7222_v3  ;;  %p301_p10 = scmp.lt.s32.totalorder (!%p267_p9), %s300_s17, 41  ;;  %v7432_v4 = vshrl.u32 (!%p267_p9), %v422_v0, 7  ;;  %6773 = vset.pattern.permute.xlu1 (!%p267_p9), %v7222_v3  ;;  %6772 = vset.pattern.permute.xlu0 (!%p267_p9), %v7222_v3  ;;  %vm515_vm3 = vsmask.f32 (!%p267_p9), 5376 }
  0x10   : > { %316 = vst [vmem:[#allocation2 + $0x18] sm:$0xff] (!%p267_p9), %v7222_v3  ;;  %317 = vst [vmem:[#allocation2 + $0x20] sm:$0xff] (!%p267_p9), %v7222_v3  ;;  %v421_v5 = vunpack.c.0.s8 (!%p267_p9), %v7326_v2  ;;  %s7224_s23 = smov (!%p267_p9), 127   ;;  %s7225_s24 = smov (!%p267_p9), 110   ;;  %vm586_vm7 = vcmask (!%p267_p9), 1043456   ;;  %vm686_vm8 = vcmask (!%p267_p9), 1031168  }
  0x11   : > { %318 = vst [vmem:[#allocation2 + $0x28] sm:$0xff] (!%p267_p9), %v7222_v3  ;;  %319 = vst [vmem:[#allocation2 + $0x30] sm:$0xff] (!%p267_p9), %v7222_v3  ;;  %s7226_s25 = smov (!%p267_p9), 109   ;;  %s7227_s26 = smov (!%p267_p9), 108   ;;  %vm784_vm9 = vcmask (!%p267_p9), 900096   ;;  %vm882_vm10 = vcmask (!%p267_p9), 891904  }
  0x12   : > { %320 = vst [vmem:[#allocation2 + $0x38] sm:$0xff] (!%p267_p9), %v7222_v3  ;;  %321 = vst [vmem:[#allocation2 + $0x40] sm:$0xff] (!%p267_p9), %v7222_v3  ;;  %v7440_v6 = vsub.s32 (!%p267_p9), %v421_v5, %v7432_v4  ;;  %s7228_s10 = smov (!%p267_p9), 92   ;;  %s7229_s12 = smov (!%p267_p9), 91   ;;  %vm588_vm11 = vcmask (!%p267_p9), 1039360   ;;  %vm980_vm12 = vcmask (!%p267_p9), 883712  }
  0x13   : > { %322 = vst [vmem:[#allocation2 + $0x48] sm:$0xff] (!%p267_p9), %v7222_v3  ;;  %323 = vst [vmem:[#allocation2 + $0x50] sm:$0xf] (!%p267_p9), %v7222_v3  ;;  %s7230_s13 = smov (!%p267_p9), 90   ;;  %vm1078_vm13 = vcmask (!%p267_p9), 752640   ;;  %vm1176_vm14 = vcmask (!%p267_p9), 744448  }
  0x14   : > { %324 = vst [vmem:[#allocation2 + $0x54] sm:$0xff] (!%p267_p9), %v7222_v3  ;;  %325 = vst [vmem:[#allocation2 + $0x5c] sm:$0xff] (!%p267_p9), %v7222_v3  ;;  %vm548_vm15 = vcmask (!%p267_p9), 730112   ;;  %s6212_s19 = sshll.u32 (!%p267_p9), %s7298_s9, 7  ;;  %s7231_s9 = smov (!%p267_p9), [#allocation3]  }
  0x15   : > { %326 = vst [vmem:[#allocation2 + $0x64] sm:$0xff] %v7222_v3  ;;  %327 = vst [vmem:[#allocation2 + $0x6c] sm:$0xff] %v7222_v3  ;;  %s9688_s17 = smov (!%p301_p10, %s300_s17), 41  ;;  %v518_v19 = vld [vmem:[#allocation2] sm:$0x33] }
  0x16   : > { %328 = vst [vmem:[#allocation2 + $0x74] sm:$0xff] %v7222_v3  ;;  %329 = vst [vmem:[#allocation2 + $0x7c] sm:$0xff] %v7222_v3  ;;  %s5827_s18 = sshll.u32 %s9688_s17, 1  ;;  %v521_v24 = vld [vmem:[#allocation2 + $0x8] sm:$0x33] }
  0x17   : > { %330 = vst [vmem:[#allocation2 + $0x84] sm:$0xff] %v7222_v3  ;;  %331 = vst [vmem:[#allocation2 + $0x8c] sm:$0xff] %v7222_v3  ;;  %s7445_s21 = scalar_lea.vmem %s9666_s0, %s5827_s18  ;;  %v524_v27 = vld [vmem:[#allocation2 + $0x10] sm:$0x33]  ;;  %v527_v31 = vld [vmem:[#allocation2 + $0x18] sm:$0x33] }
  0x18   : > { %332 = vst [vmem:[#allocation2 + $0x94] sm:$0xff] %v7222_v3  ;;  %333 = vst [vmem:[#allocation2 + $0x9c] sm:$0xff] %v7222_v3  ;;  %v307_v7 = vld [vmem:[%s7445_s21] sm:$0xff]  ;;  %v310_v11 = vld [vmem:[%s7445_s21 + $0x18] sm:$0xff] }
  0x19   : > { %334 = vst [vmem:[#allocation2 + $0xa4] sm:$0xf] %v7222_v3  ;;  %336 = vst [vmem:[#allocation2 + $0xb0] sm:$0xff] %v7222_v3  ;;  %v425_v9 = vrot.slane %v307_v7, %v7440_v6  ;;  %v418_v10 = vcombine.high %v307_v7, %v307_v7  ;;  %v7456_v12 = vrot.slane %v310_v11, %v7440_v6  ;;  %v311_v14 = vld [vmem:[%s7445_s21 + $0x20] sm:$0xff]  ;;  %v308_v23 = vld [vmem:[%s7445_s21 + $0x8] sm:$0xff] }
  0x1a   : > { %337 = vst [vmem:[#allocation2 + $0xb8] sm:$0xff] %v7222_v3  ;;  %338 = vst [vmem:[#allocation2 + $0xc0] sm:$0xff] %v7222_v3  ;;  %v463_v13 = vcombine.high %v310_v11, %v310_v11  ;;  %v7463_v16 = vrot.slane %v311_v14, %v7440_v6  ;;  %v478_v21 = vcombine.high %v311_v14, %v311_v14  ;;  %v309_v33 = vld [vmem:[%s7445_s21 + $0x10] sm:$0xff]  ;;  %v530_v36 = vld [vmem:[#allocation2 + $0x20] sm:$0x33] }
  0x1b   : > { %339 = vst [vmem:[#allocation2 + $0xc8] sm:$0xff] %v7222_v3  ;;  %340 = vst [vmem:[#allocation2 + $0xd0] sm:$0xff] %v7222_v3  ;;  %652 = vrot.lane.b32.xlu1 %v425_v9, %s7223_s22  ;;  %553 = vrot.lane.b32.xlu0 %v425_v9, %s7224_s23  ;;  %v432_v15 = vrot.slane %v418_v10, %v7440_v6  ;;  %v440_v26 = vrot.slane %v308_v23, %v7440_v6  ;;  %v533_v39 = vld [vmem:[#allocation2 + $0x28] sm:$0x33]  ;;  %v536_v41 = vld [vmem:[#allocation2 + $0x30] sm:$0x33] }
  0x1c   : > { %341 = vst [vmem:[#allocation2 + $0xd8] sm:$0xff] %v7222_v3  ;;  %342 = vst [vmem:[#allocation2 + $0xe0] sm:$0xff] %v7222_v3  ;;  %v7466_v17 = vrot.slane %v463_v13, %v7440_v6  ;;  %v7483_v22 = vrot.slane %v478_v21, %v7440_v6  ;;  %v433_v28 = vcombine.high %v308_v23, %v308_v23  ;;  %v539_v46 = vld [vmem:[#allocation2 + $0x38] sm:$0x33]  ;;  %v717_v51 = vld [vmem:[#allocation2 + $0xa8] sm:$0x33] }
  0x1d   : > { %343 = vst [vmem:[#allocation2 + $0xe8] sm:$0xff] %v7222_v3  ;;  %344 = vst [vmem:[#allocation2 + $0xf0] sm:$0xff] %v7222_v3  ;;  %v455_v34 = vrot.slane %v309_v33, %v7440_v6  ;;  %v448_v35 = vcombine.high %v309_v33, %v309_v33  ;;  %v619_v7 = vld [vmem:[#allocation2 + $0x54] sm:$0x33] }
  0x1e   : > { %345 = vst [vmem:[#allocation2 + $0xf8] sm:$0xf] %v7222_v3  ;;  %346 = vst [vmem:[#allocation2 + $0xfc] sm:$0xff] %v7222_v3  ;;  %v447_v30 = vrot.slane %v433_v28, %v7440_v6 }
  0x1f   : > { %347 = vst [vmem:[#allocation2 + $0x104] sm:$0xff] %v7222_v3  ;;  %348 = vst [vmem:[#allocation2 + $0x10c] sm:$0xff] %v7222_v3  ;;  %750 = vrot.lane.b32.xlu0 %v425_v9, %s7225_s24  ;;  %654 = vrot.lane.b32.xlu1 %v432_v15, %s7223_s22  ;;  %v462_v38 = vrot.slane %v448_v35, %v7440_v6 }
  0x20   : > { %349 = vst [vmem:[#allocation2 + $0x114] sm:$0xff] %v7222_v3  ;;  %350 = vst [vmem:[#allocation2 + $0x11c] sm:$0xff] %v7222_v3 }
  0x21   : > { %351 = vst [vmem:[#allocation2 + $0x124] sm:$0xff] %v7222_v3  ;;  %352 = vst [vmem:[#allocation2 + $0x12c] sm:$0xff] %v7222_v3 }
  0x22   : > { %353 = vst [vmem:[#allocation2 + $0x134] sm:$0xff] %v7222_v3  ;;  %354 = vst [vmem:[#allocation2 + $0x13c] sm:$0xff] %v7222_v3 }
  0x23   : > { %355 = vst [vmem:[#allocation2 + $0x144] sm:$0xff] %v7222_v3  ;;  %356 = vst [vmem:[#allocation2 + $0x14c] sm:$0xf] %v7222_v3  ;;  %848 = vrot.lane.b32.xlu0 %v425_v9, %s7226_s25  ;;  %752 = vrot.lane.b32.xlu1 %v432_v15, %s7225_s24 }
  0x24   : > { %357 = vst [vmem:[#allocation2 + $0x150] sm:$0xff] %v7222_v3  ;;  %358 = vst [vmem:[#allocation2 + $0x158] sm:$0xff] %v7222_v3 }
  0x25   : > { %359 = vst [vmem:[#allocation2 + $0x160] sm:$0xff] %v7222_v3  ;;  %360 = vst [vmem:[#allocation2 + $0x168] sm:$0xff] %v7222_v3  ;;  %v815_v59 = vld [vmem:[#allocation2 + $0xfc] sm:$0x33] }
  0x26   : > { %361 = vst [vmem:[#allocation2 + $0x170] sm:$0xff] %v7222_v3  ;;  %362 = vst [vmem:[#allocation2 + $0x178] sm:$0xff] %v7222_v3 }
  0x27   : > { %363 = vst [vmem:[#allocation2 + $0x180] sm:$0xff] %v7222_v3  ;;  %364 = vst [vmem:[#allocation2 + $0x188] sm:$0xff] %v7222_v3  ;;  %850 = vrot.lane.b32.xlu1 %v432_v15, %s7226_s25  ;;  %555 = vrot.lane.b32.xlu0 %v432_v15, %s7224_s23 }
  0x28   : > { %365 = vst [vmem:[#allocation2 + $0x190] sm:$0xff] %v7222_v3  ;;  %366 = vst [vmem:[#allocation2 + $0x198] sm:$0xff] %v7222_v3 }
  0x29   : > { %367 = vst [vmem:[#allocation2 + $0x1a0] sm:$0xf] %v7222_v3  ;;  %368 = vst [vmem:[#allocation2 + $0x1a4] sm:$0xff] %v7222_v3 }
  0x2a   : > { %369 = vst [vmem:[#allocation2 + $0x1ac] sm:$0xff] %v7222_v3  ;;  %370 = vst [vmem:[#allocation2 + $0x1b4] sm:$0xff] %v7222_v3 }
  0x2b   : > { %371 = vst [vmem:[#allocation2 + $0x1bc] sm:$0xff] %v7222_v3  ;;  %372 = vst [vmem:[#allocation2 + $0x1c4] sm:$0xff] %v7222_v3  ;;  %948 = vrot.lane.b32.xlu1 %v432_v15, %s7227_s26  ;;  %946 = vrot.lane.b32.xlu0 %v425_v9, %s7227_s26  ;;  %v913_v0 = vld [vmem:[#allocation2 + $0x150] sm:$0x33] }
  0x2c   : > { %373 = vst [vmem:[#allocation2 + $0x1cc] sm:$0xff] %v7222_v3  ;;  %374 = vst [vmem:[#allocation2 + $0x1d4] sm:$0xff] %v7222_v3 }
  0x2d   : > { %375 = vst [vmem:[#allocation2 + $0x1dc] sm:$0xff] %v7222_v3  ;;  %376 = vst [vmem:[#allocation2 + $0x1e4] sm:$0xff] %v7222_v3 }
  0x2e   : > { %377 = vst [vmem:[#allocation2 + $0x1ec] sm:$0xff] %v7222_v3  ;;  %378 = vst [vmem:[#allocation2 + $0x1f4] sm:$0xf] %v7222_v3 }
  0x2f   : > { %379 = vst [vmem:[#allocation2 + $0x1f8] sm:$0xff] %v7222_v3  ;;  %380 = vst [vmem:[#allocation2 + $0x200] sm:$0xff] %v7222_v3  ;;  %1046 = vrot.lane.b32.xlu1 %v432_v15, %s7228_s10  ;;  %1044 = vrot.lane.b32.xlu0 %v425_v9, %s7228_s10 }
  0x30   : > { %381 = vst [vmem:[#allocation2 + $0x208] sm:$0xff] %v7222_v3  ;;  %382 = vst [vmem:[#allocation2 + $0x210] sm:$0xff] %v7222_v3 }
  0x31   : > { %383 = vst [vmem:[#allocation2 + $0x218] sm:$0xff] %v7222_v3  ;;  %384 = vst [vmem:[#allocation2 + $0x220] sm:$0xff] %v7222_v3 }
  0x32   : > { %385 = vst [vmem:[#allocation2 + $0x228] sm:$0xff] %v7222_v3  ;;  %386 = vst [vmem:[#allocation2 + $0x230] sm:$0xff] %v7222_v3 }
  0x33   : > { %387 = vst [vmem:[#allocation2 + $0x238] sm:$0xff] %v7222_v3  ;;  %388 = vst [vmem:[#allocation2 + $0x240] sm:$0xff] %v7222_v3  ;;  %1144 = vrot.lane.b32.xlu1 %v432_v15, %s7229_s12  ;;  %1142 = vrot.lane.b32.xlu0 %v425_v9, %s7229_s12 }
  0x34   : > { %389 = vst [vmem:[#allocation2 + $0x248] sm:$0xf] %v7222_v3  ;;  %390 = vst [vmem:[#allocation2 + $0x24c] sm:$0xff] %v7222_v3 }
  0x35   : > { %391 = vst [vmem:[#allocation2 + $0x254] sm:$0xff] %v7222_v3  ;;  %392 = vst [vmem:[#allocation2 + $0x25c] sm:$0xff] %v7222_v3 }
  0x36   : > { %393 = vst [vmem:[#allocation2 + $0x264] sm:$0xff] %v7222_v3  ;;  %394 = vst [vmem:[#allocation2 + $0x26c] sm:$0xff] %v7222_v3 }
  0x37   : > { %395 = vst [vmem:[#allocation2 + $0x274] sm:$0xff] %v7222_v3  ;;  %396 = vst [vmem:[#allocation2 + $0x27c] sm:$0xff] %v7222_v3  ;;  %1240 = vrot.lane.b32.xlu1 %v425_v9, %s7230_s13  ;;  %557 = vrot.lane.b32.xlu0 %v440_v26, %s7224_s23 }
  0x38   : > { %397 = vst [vmem:[#allocation2 + $0x284] sm:$0xff] %v7222_v3  ;;  %398 = vst [vmem:[#allocation2 + $0x28c] sm:$0xff] %v7222_v3 }
  0x39   : > { %399 = vst [vmem:[#allocation2 + $0x294] sm:$0xff] %v7222_v3  ;;  %400 = vst [vmem:[#allocation2 + $0x29c] sm:$0xf] %v7222_v3 }
  0x3a   : > { %401 = vst [vmem:[#allocation2 + $0x2a0] sm:$0xff] %v7222_v3  ;;  %402 = vst [vmem:[#allocation2 + $0x2a8] sm:$0xff] %v7222_v3 }
  0x3b   : > { %403 = vst [vmem:[#allocation2 + $0x2b0] sm:$0xff] %v7222_v3  ;;  %404 = vst [vmem:[#allocation2 + $0x2b8] sm:$0xff] %v7222_v3  ;;  %656 = vrot.lane.b32.xlu1 %v440_v26, %s7223_s22  ;;  %1242 = vrot.lane.b32.xlu0 %v432_v15, %s7230_s13 }
  0x3c   : > { %405 = vst [vmem:[#allocation2 + $0x2c0] sm:$0xff] %v7222_v3  ;;  %406 = vst [vmem:[#allocation2 + $0x2c8] sm:$0xff] %v7222_v3 }
  0x3d   : > { %407 = vst [vmem:[#allocation2 + $0x2d0] sm:$0xff] %v7222_v3  ;;  %408 = vst [vmem:[#allocation2 + $0x2d8] sm:$0xff] %v7222_v3 }
  0x3e   : > { %409 = vst [vmem:[#allocation2 + $0x2e0] sm:$0xff] %v7222_v3  ;;  %410 = vst [vmem:[#allocation2 + $0x2e8] sm:$0xff] %v7222_v3 }
  0x3f   : > { %411 = vst [vmem:[#allocation2 + $0x2f0] sm:$0xf] %v7222_v3  ;;  %vm7449_vm4 = vmand %vm511_vm0, %vm512_vm1  ;;  %852 = vrot.lane.b32.xlu1 %v440_v26, %s7226_s25  ;;  %754 = vrot.lane.b32.xlu0 %v440_v26, %s7225_s24 }
  0x40   : > { %vm516_vm5 = vmand %vm514_vm2, %vm515_vm3  ;;  %vm1274_vm2 = vcmask 736256   ;;  %vm5311_vm3 = vcmask 523264  }
  0x41   : > { %vm7470_vm6 = vmor %vm516_vm5, %vm7449_vm4 }
  0x42   : > { %v519_v20 = vsel %vm7470_vm6, %v425_v9, %v518_v19  ;;  %v522_v25 = vsel %vm7470_vm6, %v432_v15, %v521_v24  ;;  %v525_v29 = vsel %vm7470_vm6, %v440_v26, %v524_v27  ;;  %v528_v32 = vsel %vm7470_vm6, %v447_v30, %v527_v31  ;;  %vm7674_vm0 = vmand %vm548_vm15, %vm512_vm1 }
  0x43   : > { %520 = vst [vmem:[#allocation2] sm:$0x33] %v519_v20  ;;  %523 = vst [vmem:[#allocation2 + $0x8] sm:$0x33] %v522_v25  ;;  %1048 = vrot.lane.b32.xlu1 %v440_v26, %s7228_s10  ;;  %950 = vrot.lane.b32.xlu0 %v440_v26, %s7227_s26  ;;  %v531_v37 = vsel %vm7470_vm6, %v455_v34, %v530_v36  ;;  %v534_v40 = vsel %vm7470_vm6, %v462_v38, %v533_v39  ;;  %v1011_v20 = vld [vmem:[#allocation2 + $0x1a4] sm:$0x33] }
  0x44   : > { %526 = vst [vmem:[#allocation2 + $0x10] sm:$0x33] %v525_v29  ;;  %529 = vst [vmem:[#allocation2 + $0x18] sm:$0x33] %v528_v32  ;;  %v537_v42 = vsel %vm7470_vm6, %v7456_v12, %v536_v41  ;;  %v540_v47 = vsel %vm7470_vm6, %v7466_v17, %v539_v46  ;;  %v1109_v29 = vld [vmem:[#allocation2 + $0x1f8] sm:$0x33] }
  0x45   : > { %532 = vst [vmem:[#allocation2 + $0x20] sm:$0x33] %v531_v37  ;;  %535 = vst [vmem:[#allocation2 + $0x28] sm:$0x33] %v534_v40  ;;  %v542_v32 = vld [vmem:[#allocation2 + $0x40] sm:$0x33] }
  0x46   : > { %538 = vst [vmem:[#allocation2 + $0x30] sm:$0x33] %v537_v42  ;;  %541 = vst [vmem:[#allocation2 + $0x38] sm:$0x33] %v540_v47  ;;  %v543_v36 = vsel %vm7470_vm6, %v7463_v16, %v542_v32  ;;  %v1207_v42 = vld [vmem:[#allocation2 + $0x24c] sm:$0x33] }
  0x47   : > { %1244 = vrot.lane.b32.xlu1 %v440_v26, %s7230_s13  ;;  %1146 = vrot.lane.b32.xlu0 %v440_v26, %s7229_s12  ;;  %544 = vst [vmem:[#allocation2 + $0x40] sm:$0x33] %v543_v36  ;;  %vm1990_vm1 = vcmask 588800  }
  0x4b   : > { %658 = vrot.lane.b32.xlu1 %v447_v30, %s7223_s22  ;;  %559 = vrot.lane.b32.xlu0 %v447_v30, %s7224_s23 }
  0x4f   : > { %854 = vrot.lane.b32.xlu1 %v447_v30, %s7226_s25  ;;  %756 = vrot.lane.b32.xlu0 %v447_v30, %s7225_s24 }
  0x53   : > { %1050 = vrot.lane.b32.xlu1 %v447_v30, %s7228_s10  ;;  %952 = vrot.lane.b32.xlu0 %v447_v30, %s7227_s26 }
  0x57   : > { %561 = vrot.lane.b32.xlu1 %v455_v34, %s7224_s23  ;;  %1148 = vrot.lane.b32.xlu0 %v447_v30, %s7229_s12 }
  0x5b   : > { %660 = vrot.lane.b32.xlu1 %v455_v34, %s7223_s22  ;;  %1246 = vrot.lane.b32.xlu0 %v447_v30, %s7230_s13  ;;  %v1346_v30 = vld [vmem:[#allocation2] sm:$0xff] }
  0x5f   : > { %856 = vrot.lane.b32.xlu1 %v455_v34, %s7226_s25  ;;  %758 = vrot.lane.b32.xlu0 %v455_v34, %s7225_s24 }
  0x63   : > { %1052 = vrot.lane.b32.xlu1 %v455_v34, %s7228_s10  ;;  %954 = vrot.lane.b32.xlu0 %v455_v34, %s7227_s26 }
  0x67   : > { %1248 = vrot.lane.b32.xlu1 %v455_v34, %s7230_s13  ;;  %1150 = vrot.lane.b32.xlu0 %v455_v34, %s7229_s12 }
  0x6b   : > { %662 = vrot.lane.b32.xlu1 %v462_v38, %s7223_s22  ;;  %563 = vrot.lane.b32.xlu0 %v462_v38, %s7224_s23 }
  0x6f   : > { %858 = vrot.lane.b32.xlu1 %v462_v38, %s7226_s25  ;;  %760 = vrot.lane.b32.xlu0 %v462_v38, %s7225_s24 }
  0x73   : > { %1054 = vrot.lane.b32.xlu1 %v462_v38, %s7228_s10  ;;  %956 = vrot.lane.b32.xlu0 %v462_v38, %s7227_s26 }
  0x77   : > { %565 = vrot.lane.b32.xlu1 %v7456_v12, %s7224_s23  ;;  %1152 = vrot.lane.b32.xlu0 %v462_v38, %s7229_s12 }
  0x7b   : > { %664 = vrot.lane.b32.xlu1 %v7456_v12, %s7223_s22  ;;  %1250 = vrot.lane.b32.xlu0 %v462_v38, %s7230_s13 }
  0x7f   : > { %860 = vrot.lane.b32.xlu1 %v7456_v12, %s7226_s25  ;;  %762 = vrot.lane.b32.xlu0 %v7456_v12, %s7225_s24 }
  0x83   : > { %1056 = vrot.lane.b32.xlu1 %v7456_v12, %s7228_s10  ;;  %958 = vrot.lane.b32.xlu0 %v7456_v12, %s7227_s26 }
  0x87   : > { %1252 = vrot.lane.b32.xlu1 %v7456_v12, %s7230_s13  ;;  %1154 = vrot.lane.b32.xlu0 %v7456_v12, %s7229_s12 }
  0x8b   : > { %666 = vrot.lane.b32.xlu1 %v7466_v17, %s7223_s22  ;;  %567 = vrot.lane.b32.xlu0 %v7466_v17, %s7224_s23 }
  0x8d   : > { %v653_v43 = vpop.permute.xlu1 %652  ;;  %v554_v44 = vpop.permute.xlu0 %553 }
  0x8e   : > { %v674_v45 = vrot.slane %v653_v43, 4  ;;  %v575_v61 = vrot.slane %v554_v44, 4 }
  0x8f   : > { %862 = vrot.lane.b32.xlu1 %v7466_v17, %s7226_s25  ;;  %764 = vrot.lane.b32.xlu0 %v7466_v17, %s7225_s24 }
  0x91   : > { %v751_v48 = vpop.permute.xlu0 %750  ;;  %v7571_v49 = vpop.permute.xlu1 %654 }
  0x92   : > { %v675_v50 = vrot.slane %v7571_v49, 4  ;;  %v772_v56 = vrot.slane %v751_v48, 4 }
  0x93   : > { %1058 = vrot.lane.b32.xlu1 %v7466_v17, %s7228_s10  ;;  %960 = vrot.lane.b32.xlu0 %v7466_v17, %s7227_s26 }
  0x94   : > { %v685_v52 = vsel %vm586_vm7, %v674_v45, %v675_v50 }
  0x95   : > { %v687_v53 = vsel %vm686_vm8, %v653_v43, %v685_v52  ;;  %v849_v54 = vpop.permute.xlu0 %848  ;;  %v7582_v55 = vpop.permute.xlu1 %752 }
  0x96   : > { %v718_v57 = vsel %vm7470_vm6, %v687_v53, %v717_v51  ;;  %v773_v58 = vrot.slane %v7582_v55, 4  ;;  %v870_v62 = vrot.slane %v849_v54, 4 }
  0x97   : > { %719 = vst [vmem:[#allocation2 + $0xa8] sm:$0x33] %v718_v57  ;;  %569 = vrot.lane.b32.xlu1 %v7463_v16, %s7224_s23  ;;  %1156 = vrot.lane.b32.xlu0 %v7466_v17, %s7229_s12 }
  0x98   : > { %v783_v60 = vsel %vm586_vm7, %v772_v56, %v773_v58 }
  0x99   : > { %v785_v63 = vsel %vm784_vm9, %v751_v48, %v783_v60  ;;  %v7595_v1 = vpop.permute.xlu1 %850  ;;  %v7597_v2 = vpop.permute.xlu0 %555 }
  0x9a   : > { %v816_v3 = vsel %vm7470_vm6, %v785_v63, %v815_v59  ;;  %v871_v5 = vrot.slane %v7595_v1, 4  ;;  %v576_v6 = vrot.slane %v7597_v2, 4  ;;  %v1305_v63 = vld [vmem:[#allocation2 + $0x2a0] sm:$0x33] }
  0x9b   : > { %817 = vst [vmem:[#allocation2 + $0xfc] sm:$0x33] %v816_v3  ;;  %668 = vrot.lane.b32.xlu1 %v7463_v16, %s7223_s22  ;;  %1254 = vrot.lane.b32.xlu0 %v7466_v17, %s7230_s13  ;;  %v7685_v3 = vld.sshfl [vmem:[%s7445_s21 + $0x28] sm:$0x3 pattern:$0x76325410] }
  0x9c   : > { %v881_v8 = vsel %vm586_vm7, %v870_v62, %v871_v5  ;;  %v587_v9 = vsel %vm586_vm7, %v575_v61, %v576_v6  ;;  %v720_v61 = vld [vmem:[#allocation2 + $0xb0] sm:$0x33] }
  0x9d   : > { %v883_v10 = vsel %vm882_vm10, %v849_v54, %v881_v8  ;;  %v589_v11 = vsel %vm588_vm11, %v554_v44, %v587_v9  ;;  %v7615_v12 = vpop.permute.xlu1 %948  ;;  %v947_v13 = vpop.permute.xlu0 %946  ;;  %v545_v9 = vld [vmem:[#allocation2 + $0x48] sm:$0x33] }
  0x9e   : > { %v914_v14 = vsel %vm7470_vm6, %v883_v10, %v913_v0  ;;  %v620_v15 = vsel %vm7470_vm6, %v589_v11, %v619_v7  ;;  %v969_v17 = vrot.slane %v7615_v12, 4  ;;  %v968_v19 = vrot.slane %v947_v13, 4  ;;  %v550_v10 = vld [vmem:[#allocation2 + $0x50] sm:$0x3] }
  0x9f   : > { %915 = vst [vmem:[#allocation2 + $0x150] sm:$0x33] %v914_v14  ;;  %621 = vst [vmem:[#allocation2 + $0x54] sm:$0x33] %v620_v15  ;;  %864 = vrot.lane.b32.xlu1 %v7463_v16, %s7226_s25  ;;  %766 = vrot.lane.b32.xlu0 %v7463_v16, %s7225_s24  ;;  %v546_v14 = vsel %vm7470_vm6, %v7483_v22, %v545_v9  ;;  %v551_v15 = vsel %vm7674_vm0, %v7685_v3, %v550_v10  ;;  %v723_v9 = vld [vmem:[#allocation2 + $0xb8] sm:$0x33] }
  0xa0   : > { %v979_v21 = vsel %vm586_vm7, %v968_v19, %v969_v17  ;;  %547 = vst [vmem:[#allocation2 + $0x48] sm:$0x33] %v546_v14  ;;  %552 = vst [vmem:[#allocation2 + $0x50] sm:$0x3] %v551_v15  ;;  %v625_v15 = vld [vmem:[#allocation2 + $0x64] sm:$0x33] }
  0xa1   : > { %v981_v23 = vsel %vm980_vm12, %v947_v13, %v979_v21  ;;  %v7630_v24 = vpop.permute.xlu1 %1046  ;;  %v1045_v25 = vpop.permute.xlu0 %1044 }
  0xa2   : > { %v1012_v26 = vsel %vm7470_vm6, %v981_v23, %v1011_v20  ;;  %v1067_v27 = vrot.slane %v7630_v24, 4  ;;  %v1066_v28 = vrot.slane %v1045_v25, 4  ;;  %v6781_v44 = vld [vmem:[#allocation2 + $0xac] ss:$84 sps:$4 sm:$0xff]   ;;  %v6783_v53 = vld [vmem:[#allocation2 + $0xa8] ss:$84 sps:$4 sm:$0xff]  }
  0xa3   : > { %1013 = vst [vmem:[#allocation2 + $0x1a4] sm:$0x33] %v1012_v26  ;;  %1060 = vrot.lane.b32.xlu1 %v7463_v16, %s7228_s10  ;;  %962 = vrot.lane.b32.xlu0 %v7463_v16, %s7227_s26 }
  0xa4   : > { %v1077_v31 = vsel %vm586_vm7, %v1066_v28, %v1067_v27 }
  0xa5   : > { %v1079_v33 = vsel %vm1078_vm13, %v1045_v25, %v1077_v31  ;;  %v7643_v34 = vpop.permute.xlu1 %1144  ;;  %v1143_v35 = vpop.permute.xlu0 %1142 }
  0xa6   : > { %v1110_v37 = vsel %vm7470_vm6, %v1079_v33, %v1109_v29  ;;  %v1165_v38 = vrot.slane %v7643_v34, 4  ;;  %v1164_v39 = vrot.slane %v1143_v35, 4  ;;  %v1357_v40 = vld [vmem:[#allocation2 + $0x54] sm:$0xff] }
  0xa7   : > { %v6778_v41 = vld [vmem:[#allocation2 + $0x4] ss:$84 sps:$4 sm:$0xff]   ;;  %1111 = vst [vmem:[#allocation2 + $0x1f8] sm:$0x33] %v1110_v37  ;;  %1256 = vrot.lane.b32.xlu1 %v7463_v16, %s7230_s13  ;;  %1158 = vrot.lane.b32.xlu0 %v7463_v16, %s7229_s12  ;;  %v5833_v43 = vcombine.low %v1346_v30, %v1357_v40  ;;  %v622_v16 = vld [vmem:[#allocation2 + $0x5c] sm:$0x33] }
  0xa8   : > { %v1175_v45 = vsel %vm586_vm7, %v1164_v39, %v1165_v38  ;;  %2067 = vmatprep.subr.bf16.mxu0 %v6778_v41  ;;  %v916_v29 = vld [vmem:[#allocation2 + $0x158] sm:$0x33]  ;;  %v818_v30 = vld [vmem:[#allocation2 + $0x104] sm:$0x33] }
  0xa9   : > { %v1177_v46 = vsel %vm1176_vm14, %v1143_v35, %v1175_v45  ;;  %v1241_v47 = vpop.permute.xlu1 %1240  ;;  %v7659_v48 = vpop.permute.xlu0 %557  ;;  %2068 = vmatpush1.bf16.msra.mxu0 %v5833_v43 }
  0xaa   : > { %v1208_v51 = vsel %vm7470_vm6, %v1177_v46, %v1207_v42  ;;  %v577_v52 = vrot.slane %v7659_v48, 4  ;;  %2069 = vmatprep.subr.bf16.mxu0 %v6781_v44  ;;  %v1262_v54 = vrot.slane %v1241_v47, 4  ;;  %v6784_v57 = vld [vmem:[#allocation2 + $0x154] ss:$84 sps:$4 sm:$0xff]  }
  0xab   : > { %1209 = vst [vmem:[#allocation2 + $0x24c] sm:$0x33] %v1208_v51  ;;  %670 = vrot.lane.b32.xlu1 %v7483_v22, %s7223_s22  ;;  %571 = vrot.lane.b32.xlu0 %v7483_v22, %s7224_s23 }
  0xac   : > { %v590_v56 = vsel %vm586_vm7, %v576_v6, %v577_v52 }
  0xad   : > { %v591_v60 = vsel %vm588_vm11, %v7597_v2, %v590_v56  ;;  %v7680_v62 = vpop.permute.xlu1 %656  ;;  %v7682_v0 = vpop.permute.xlu0 %1242  ;;  %2070 = vmatpush1.bf16.msra.mxu0 %v6783_v53  ;;  %v6786_v2 = vld [vmem:[#allocation2 + $0x150] ss:$84 sps:$4 sm:$0xff]  }
  0xae   : > { %v623_v6 = vsel %vm7470_vm6, %v591_v60, %v622_v16  ;;  %v676_v7 = vrot.slane %v7680_v62, 4  ;;  %v1263_v8 = vrot.slane %v7682_v0, 4  ;;  %2071 = vmatprep.subr.bf16.mxu0 %v6784_v57 }
  0xaf   : > { %624 = vst [vmem:[#allocation2 + $0x5c] sm:$0x33] %v623_v6  ;;  %866 = vrot.lane.b32.xlu1 %v7483_v22, %s7226_s25  ;;  %768 = vrot.lane.b32.xlu0 %v7483_v22, %s7225_s24  ;;  %v7795_v6 = vld [vmem:[%s9667_s1] sm:$0xff]  }
  0xb0   : > { %v688_v11 = vsel %vm586_vm7, %v675_v50, %v676_v7  ;;  %v1273_v13 = vsel %vm586_vm7, %v1262_v54, %v1263_v8 }
  0xb1   : > { %v689_v19 = vsel %vm686_vm8, %v7571_v49, %v688_v11  ;;  %v1275_v20 = vsel %vm1274_vm2, %v1241_v47, %v1273_v13  ;;  %v7712_v21 = vpop.permute.xlu1 %852  ;;  %v7714_v50 = vpop.permute.xlu0 %754  ;;  %2072 = vmatpush1.bf16.msra.mxu0 %v6786_v2 }
  0xb2   : > { %v721_v23 = vsel %vm7470_vm6, %v689_v19, %v720_v61  ;;  %v1306_v25 = vsel %vm7470_vm6, %v1275_v20, %v1305_v63  ;;  %v872_v26 = vrot.slane %v7712_v21, 4  ;;  %v774_v28 = vrot.slane %v7714_v50, 4  ;;  %v6787_v49 = vld [vmem:[#allocation2 + $0x1fc] ss:$84 sps:$4 sm:$0xff]   ;;  %v6789_v31 = vld [vmem:[#allocation2 + $0x1f8] ss:$84 sps:$4 sm:$0xff]  }
  0xb3   : > { %722 = vst [vmem:[#allocation2 + $0xb0] sm:$0x33] %v721_v23  ;;  %1307 = vst [vmem:[#allocation2 + $0x2a0] sm:$0x33] %v1306_v25  ;;  %1062 = vrot.lane.b32.xlu1 %v7483_v22, %s7228_s10  ;;  %964 = vrot.lane.b32.xlu0 %v7483_v22, %s7227_s26 }
  0xb4   : > { %v884_v32 = vsel %vm586_vm7, %v871_v5, %v872_v26  ;;  %v786_v33 = vsel %vm586_vm7, %v773_v58, %v774_v28  ;;  %2073 = vmatprep.subr.bf16.mxu0 %v6787_v49 }
  0xb5   : > { %v885_v35 = vsel %vm882_vm10, %v7595_v1, %v884_v32  ;;  %v787_v36 = vsel %vm784_vm9, %v7582_v55, %v786_v33  ;;  %v7740_v37 = vpop.permute.xlu1 %1048  ;;  %v7742_v39 = vpop.permute.xlu0 %950  ;;  %2074 = vmatpush1.bf16.msra.mxu0 %v6789_v31  ;;  %v1112_v1 = vld [vmem:[#allocation2 + $0x200] sm:$0x33]  ;;  %v1014_v55 = vld [vmem:[#allocation2 + $0x1ac] sm:$0x33] }
  0xb6   : > { %v917_v5 = vsel %vm7470_vm6, %v885_v35, %v916_v29  ;;  %v819_v40 = vsel %vm7470_vm6, %v787_v36, %v818_v30  ;;  %v1068_v58 = vrot.slane %v7740_v37, 4  ;;  %v970_v41 = vrot.slane %v7742_v39, 4  ;;  %v6790_v42 = vld [vmem:[#allocation2 + $0xc] ss:$84 sps:$4 sm:$0xff]   ;;  %v6792_v43 = vld [vmem:[#allocation2 + $0x8] ss:$84 sps:$4 sm:$0xff]  }
  0xb7   : > { %918 = vst [vmem:[#allocation2 + $0x158] sm:$0x33] %v917_v5  ;;  %820 = vst [vmem:[#allocation2 + $0x104] sm:$0x33] %v819_v40  ;;  %573 = vrot.lane.b32.xlu1 %v7685_v3, %s7224_s23  ;;  %1160 = vrot.lane.b32.xlu0 %v7483_v22, %s7229_s12  ;;  %v919_v29 = vld [vmem:[#allocation2 + $0x160] sm:$0x33] }
  0xb8   : > { %v1080_v44 = vsel %vm586_vm7, %v1067_v27, %v1068_v58  ;;  %v982_v45 = vsel %vm586_vm7, %v969_v17, %v970_v41  ;;  %2140 = vmatprep.subr.bf16.mxu1 %v6790_v42  ;;  %v7843_v35 = vld [vmem:[#allocation2 + $0x64] sm:$0xff] }
  0xb9   : > { %v1081_v46 = vsel %vm1078_vm13, %v7630_v24, %v1080_v44  ;;  %v983_v47 = vsel %vm980_vm12, %v7615_v12, %v982_v45  ;;  %v7768_v51 = vpop.permute.xlu1 %1244  ;;  %v7770_v16 = vpop.permute.xlu0 %1146  ;;  %2141 = vmatpush1.bf16.msra.mxu1 %v6792_v43  ;;  %v1308_v24 = vld [vmem:[#allocation2 + $0x2a8] sm:$0x33]  ;;  %v1210_v12 = vld [vmem:[#allocation2 + $0x254] sm:$0x33] }
  0xba   : > { %v1113_v27 = vsel %vm7470_vm6, %v1081_v46, %v1112_v1  ;;  %v1015_v53 = vsel %vm7470_vm6, %v983_v47, %v1014_v55  ;;  %v1264_v17 = vrot.slane %v7768_v51, 4  ;;  %v1166_v54 = vrot.slane %v7770_v16, 4  ;;  %v1434_v56 = vld [vmem:[#allocation2 + $0x2a0] sm:$0xff]  ;;  %v7853_v5 = vld [vmem:[%s9667_s1 + $0x8] sm:$0xff]   ;;  %v1017_v45 = vld [vmem:[#allocation2 + $0x1b4] sm:$0x33] }
  0xbb   : > { %1114 = vst [vmem:[#allocation2 + $0x200] sm:$0x33] %v1113_v27  ;;  %1016 = vst [vmem:[#allocation2 + $0x1ac] sm:$0x33] %v1015_v53  ;;  %672 = vrot.lane.b32.xlu1 %v7685_v3, %s7223_s22  ;;  %1258 = vrot.lane.b32.xlu0 %v7483_v22, %s7230_s13  ;;  %v5918_v57 = vcombine.high %v1434_v56, %v1434_v56  ;;  %v5917_v60 = vcombine.low %v1434_v56, %v1434_v56  ;;  %v1115_v43 = vld [vmem:[#allocation2 + $0x208] sm:$0x33] }
  0xbc   : > { %v1276_v61 = vsel %vm586_vm7, %v1263_v8, %v1264_v17  ;;  %v1178_v63 = vsel %vm586_vm7, %v1165_v38, %v1166_v54  ;;  %v1445_v56 = vld [vmem:[%s9668_s2] sm:$0xff] }
  0xbd   : > { %v1277_v22 = vsel %vm1274_vm2, %v7682_v0, %v1276_v61  ;;  %v1179_v2 = vsel %vm1176_vm14, %v7643_v34, %v1178_v63  ;;  %v7801_v10 = vpop.permute.xlu1 %658  ;;  %5938 = vmatprep.subr.msk.bf16.mxu0 %vm586_vm7, %v5918_v57  ;;  %v7804_v8 = vpop.permute.xlu0 %559  ;;  %v2005_v38 = vsel %vm586_vm7, %v5917_v60, 0 }
  0xbe   : > { %v1309_v11 = vsel %vm7470_vm6, %v1277_v22, %v1308_v24  ;;  %v1211_v13 = vsel %vm7470_vm6, %v1179_v2, %v1210_v12  ;;  %v677_v0 = vrot.slane %v7801_v10, 4  ;;  %v578_v34 = vrot.slane %v7804_v8, 4  ;;  %2076 = vmatpush1.bf16.msra.mxu0 %v2005_v38  ;;  %v6796_v14 = vld [vmem:[#allocation2 + $0xb4] ss:$84 sps:$4 sm:$0xff]   ;;  %v6798_v19 = vld [vmem:[#allocation2 + $0xb0] ss:$84 sps:$4 sm:$0xff]  }
  0xbf   : > { %1310 = vst [vmem:[#allocation2 + $0x2a8] sm:$0x33] %v1309_v11  ;;  %1212 = vst [vmem:[#allocation2 + $0x254] sm:$0x33] %v1211_v13  ;;  %868 = vrot.lane.b32.xlu1 %v7685_v3, %s7226_s25  ;;  %770 = vrot.lane.b32.xlu0 %v7685_v3, %s7225_s24  ;;  %v628_v22 = vld [vmem:[#allocation2 + $0x6c] sm:$0x33]  ;;  %s9624_s24 = scalar_lea.hbm %s9674_s8, %s6212_s19 }
  0xc0   : > { %v690_v20 = vsel %vm586_vm7, %v676_v7, %v677_v0  ;;  %v592_v23 = vsel %vm586_vm7, %v577_v52, %v578_v34  ;;  %2142 = vmatprep.subr.bf16.mxu1 %v6796_v14  ;;  %v821_v7 = vld [vmem:[#allocation2 + $0x10c] sm:$0x33] }
  0xc1   : > { %v691_v25 = vsel %vm686_vm8, %v7680_v62, %v690_v20  ;;  %v593_v49 = vsel %vm588_vm11, %v7659_v48, %v592_v23  ;;  %v7831_v30 = vpop.permute.xlu1 %854  ;;  %5939 = vmatmul.mubr.msk.bf16.vlgmr.msra.gmra.mrb[0].mxu0 %vm1990_vm1, %v7795_v6  ;;  %v7835_v31 = vpop.permute.xlu0 %756  ;;  %2143 = vmatpush1.bf16.msra.mxu1 %v6798_v19  ;;  %v1447_v14 = vld [vmem:[%s9668_s2 + $0x10] sm:$0xff] }
  0xc2   : > { %v724_v52 = vsel %vm7470_vm6, %v691_v25, %v723_v9  ;;  %v626_v32 = vsel %vm7470_vm6, %v593_v49, %v625_v15  ;;  %v873_v62 = vrot.slane %v7831_v30, 4  ;;  %v775_v48 = vrot.slane %v7835_v31, 4  ;;  %v6799_v33 = vld [vmem:[#allocation2 + $0x15c] ss:$84 sps:$4 sm:$0xff]   ;;  %2109 = vmatprep.mubr.bf16.mxu0 %v7843_v35  ;;  %v6801_v36 = vld [vmem:[#allocation2 + $0x158] ss:$84 sps:$4 sm:$0xff]  }
  0xc3   : > { %725 = vst [vmem:[#allocation2 + $0xb8] sm:$0x33] %v724_v52  ;;  %627 = vst [vmem:[#allocation2 + $0x64] sm:$0x33] %v626_v32  ;;  %1064 = vrot.lane.b32.xlu1 %v7685_v3, %s7228_s10  ;;  %966 = vrot.lane.b32.xlu0 %v7685_v3, %s7227_s26  ;;  %v1448_v15 = vld [vmem:[%s9668_s2 + $0x18] sm:$0xff]  ;;  %v7927_v20 = vld [vmem:[%s9667_s1 + $0x10] sm:$0xff]  }
  0xc4   : > { %v886_v40 = vsel %vm586_vm7, %v872_v26, %v873_v62  ;;  %v788_v42 = vsel %vm586_vm7, %v774_v28, %v775_v48  ;;  %2144 = vmatprep.subr.bf16.mxu1 %v6799_v33  ;;  %v1311_v32 = vld [vmem:[#allocation2 + $0x2b0] sm:$0x33]  ;;  %s7161_s10 = sshll.u32 %s7231_s9, 4  ;;  %s7162_s10 = int_to_ptr.vmem [resolvable:$false] %s7161_s10 }
  0xc5   : > { %v887_v1 = vsel %vm882_vm10, %v7712_v21, %v886_v40  ;;  %v789_v55 = vsel %vm784_vm9, %v7714_v50, %v788_v42  ;;  %v7869_v44 = vpop.permute.xlu1 %1050  ;;  %v7871_v46 = vpop.permute.xlu0 %952  ;;  %2145 = vmatpush1.bf16.msra.mxu1 %v6801_v36  ;;  %v1446_v50 = vld [vmem:[%s9668_s2 + $0x8] sm:$0xff]  ;;  %v1449_v40 = vld [vmem:[%s9668_s2 + $0x20] sm:$0xff] }
  0xc6   : > { %v920_v26 = vsel %vm7470_vm6, %v887_v1, %v919_v29  ;;  %v822_v28 = vsel %vm7470_vm6, %v789_v55, %v821_v7  ;;  %v1069_v47 = vrot.slane %v7869_v44, 4  ;;  %v971_v21 = vrot.slane %v7871_v46, 4  ;;  %v6803_v27 = vld [vmem:[#allocation2 + $0x204] ss:$84 sps:$4 sm:$0xff]   ;;  %v1435_v53 = vld [vmem:[#allocation2 + $0x2a8] sm:$0xff] }
  0xc7   : > { %921 = vst [vmem:[#allocation2 + $0x160] sm:$0x33] %v920_v26  ;;  %823 = vst [vmem:[#allocation2 + $0x10c] sm:$0x33] %v822_v28  ;;  %1260 = vrot.lane.b32.xlu1 %v7685_v3, %s7230_s13  ;;  %1162 = vrot.lane.b32.xlu0 %v7685_v3, %s7229_s12  ;;  %v6805_v24 = vld [vmem:[#allocation2 + $0x200] ss:$84 sps:$4 sm:$0xff]   ;;  %v5920_v12 = vcombine.high %v1435_v53, %v1435_v53  ;;  %v5919_v57 = vcombine.low %v1435_v53, %v1435_v53 }
  0xc8   : > { %v1082_v60 = vsel %vm586_vm7, %v1068_v58, %v1069_v47  ;;  %v984_v61 = vsel %vm586_vm7, %v970_v41, %v971_v21  ;;  %2146 = vmatprep.subr.bf16.mxu1 %v6803_v27  ;;  %v1213_v58 = vld [vmem:[#allocation2 + $0x25c] sm:$0x33]  ;;  %v1450_v1 = vld [vmem:[%s9668_s2 + $0x28] sm:$0xff]  ;;  %s297_s12 = sand.u32 1, %s7211_s28  }
  0xc9   : > { %v1083_v63 = vsel %vm1078_vm13, %v7740_v37, %v1082_v60  ;;  %v985_v3 = vsel %vm980_vm12, %v7742_v39, %v984_v61  ;;  %v7903_v2 = vpop.permute.xlu1 %561  ;;  %5940 = vmatmul.mubr.msk.bf16.gmra.mrb[4].mxu0 %vm1990_vm1, %v7853_v5  ;;  %v7907_v9 = vpop.permute.xlu0 %1148  ;;  %2147 = vmatpush1.bf16.msra.mxu1 %v6805_v24  ;;  %v2011_v38 = vsel %vm586_vm7, %v5919_v57, 0  ;;  %v726_v7 = vld [vmem:[#allocation2 + $0xc0] sm:$0x33]  ;;  %v922_v28 = vld [vmem:[#allocation2 + $0x168] sm:$0x33]  ;;  %v1451_v24 = vld [vmem:[%s9668_s2 + $0x30] sm:$0xff] }
  0xca   : > { %v1116_v41 = vsel %vm7470_vm6, %v1083_v63, %v1115_v43  ;;  %v1018_v37 = vsel %vm7470_vm6, %v985_v3, %v1017_v45  ;;  %v579_v39 = vrot.slane %v7903_v2, 4  ;;  %v1167_v11 = vrot.slane %v7907_v9, 4  ;;  %5943 = vmatprep.subr.msk.bf16.mxu1 %vm586_vm7, %v5920_v12  ;;  %v6807_v13 = vld [vmem:[#allocation2 + $0x10] ss:$84 sps:$4 sm:$0xff]   ;;  %2119 = vmatprep.mubr.bf16.mxu0 %v7843_v35  ;;  %v6809_v19 = vld [vmem:[#allocation2 + $0x14] ss:$84 sps:$4 sm:$0xff]  }
  0xcb   : > { %1117 = vst [vmem:[#allocation2 + $0x208] sm:$0x33] %v1116_v41  ;;  %1019 = vst [vmem:[#allocation2 + $0x1b4] sm:$0x33] %v1018_v37  ;;  %1460 = vperm.xlu1 %6773, %v1446_v50   ;;  %1455 = vperm.xlu0 %6772, %v1445_v56   ;;  %v7995_v57 = vld [vmem:[%s9667_s1 + $0x18] sm:$0xff]   ;;  %s5826_s13 = sshll.u32 %s297_s12, 3 }
  0xcc   : > { %v594_v23 = vsel %vm586_vm7, %v578_v34, %v579_v39  ;;  %v1180_v25 = vsel %vm586_vm7, %v1166_v54, %v1167_v11  ;;  %2213 = vmatprep.subr.bf16.mxu0 %v6809_v19  ;;  %v1452_v60 = vld [vmem:[%s9668_s2 + $0x38] sm:$0xff]  ;;  %s299_s20 = scalar_lea.vmem [#allocation3], %s5826_s13  ;;  %s5750_s25 = scalar_lea.sflag [#allocation4], %s297_s12 }
  0xcd   : > { %v595_v49 = vsel %vm588_vm11, %v7804_v8, %v594_v23  ;;  %v1181_v29 = vsel %vm1176_vm14, %v7770_v16, %v1180_v25  ;;  %v7943_v52 = vpop.permute.xlu1 %660  ;;  %v7945_v33 = vpop.permute.xlu0 %1246  ;;  %2149 = vmatpush1.bf16.msra.mxu1 %v2011_v38  ;;  %2214 = vmatpush1.bf16.msra.mxu0 %v6807_v13  ;;  %v1020_v41 = vld [vmem:[#allocation2 + $0x1bc] sm:$0x33]  ;;  %s5763_s21 = sshll.u32 %s299_s20, 4  ;;  %s7163_s13 = scalar_lea.vmem %s7162_s10, 256  ;;  %s9626_s21 = int_to_ptr.vmem [resolvable:$true] %s5763_s21 }
  0xce   : > { %v629_v34 = vsel %vm7470_vm6, %v595_v49, %v628_v22  ;;  %v1214_v54 = vsel %vm7470_vm6, %v1181_v29, %v1213_v58  ;;  %v678_v36 = vrot.slane %v7943_v52, 4  ;;  %v1265_v8 = vrot.slane %v7945_v33, 4  ;;  %v6812_v16 = vld [vmem:[#allocation2 + $0xb8] ss:$84 sps:$4 sm:$0xff]   ;;  %v6814_v42 = vld [vmem:[#allocation2 + $0xbc] ss:$84 sps:$4 sm:$0xff]   ;;  %p7164_p0 = scmp.lt.s32.totalorder %s9626_s21, %s7162_s10 }
  0xcf   : > { %630 = vst [vmem:[#allocation2 + $0x6c] sm:$0x33] %v629_v34  ;;  %1215 = vst [vmem:[#allocation2 + $0x25c] sm:$0x33] %v1214_v54  ;;  %1465 = vperm.xlu1 %6773, %v1447_v14   ;;  %1470 = vperm.xlu0 %6772, %v1448_v15   ;;  %v1118_v58 = vld [vmem:[#allocation2 + $0x210] sm:$0x33] }
  0xd0   : > { %v692_v55 = vsel %vm586_vm7, %v677_v0, %v678_v36  ;;  %v1278_v43 = vsel %vm586_vm7, %v1264_v17, %v1265_v8  ;;  %5944 = vmatmul.mubr.msk.bf16.vlgmr.msra.gmra.mrb[0].mxu1 %vm1990_vm1, %v7795_v6  ;;  %2215 = vmatprep.subr.bf16.mxu0 %v6814_v42  ;;  %v824_v0 = vld [vmem:[#allocation2 + $0x114] sm:$0x33]  ;;  %s7157_s26 = scalar_lea.vmem %s9626_s21, 128 }
  0xd1   : > { %v693_v45 = vsel %vm686_vm8, %v7801_v10, %v692_v55  ;;  %v1279_v26 = vsel %vm1274_vm2, %v7768_v51, %v1278_v43  ;;  %v7975_v27 = vpop.permute.xlu1 %856  ;;  %5941 = vmatmul.mubr.msk.bf16.gmra.mrb[8].mxu0 %vm1990_vm1, %v7927_v20  ;;  %v7979_v53 = vpop.permute.xlu0 %758  ;;  %2182 = vmatprep.mubr.bf16.mxu1 %v7843_v35  ;;  %p7158_p11 = scmp.ne.s32.totalorder %s9626_s21, %s7157_s26  ;;  %p7165_p1 = scmp.lt.s32.totalorder %s7163_s13, %s7157_s26 }
  0xd2   : > { %v727_v17 = vsel %vm7470_vm6, %v693_v45, %v726_v7  ;;  %v1312_v50 = vsel %vm7470_vm6, %v1279_v26, %v1311_v32  ;;  %v874_v10 = vrot.slane %v7975_v27, 4  ;;  %v776_v51 = vrot.slane %v7979_v53, 4  ;;  %2216 = vmatpush1.bf16.msra.mxu0 %v6812_v16  ;;  %v6815_v56 = vld [vmem:[#allocation2 + $0x160] ss:$84 sps:$4 sm:$0xff]   ;;  %2129 = vmatprep.mubr.bf16.mxu0 %v7843_v35  ;;  %v6817_v12 = vld [vmem:[#allocation2 + $0x164] ss:$84 sps:$4 sm:$0xff]  }
  0xd3   : > { %728 = vst [vmem:[#allocation2 + $0xc0] sm:$0x33] %v727_v17  ;;  %1313 = vst [vmem:[#allocation2 + $0x2b0] sm:$0x33] %v1312_v50  ;;  %1475 = vperm.xlu1 %6773, %v1449_v40   ;;  %1480 = vperm.xlu0 %6772, %v1450_v1   ;;  %v1314_v7 = vld [vmem:[#allocation2 + $0x2b8] sm:$0x33]  ;;  %p7159_p12 = pnand %p7158_p11, %p7315_p5  ;;  %p7166_p2 = por %p7165_p1, %p7164_p0 }
  0xd4   : > { %v888_v61 = vsel %vm586_vm7, %v873_v62, %v874_v10  ;;  %v790_v63 = vsel %vm586_vm7, %v775_v48, %v776_v51  ;;  %2217 = vmatprep.subr.bf16.mxu0 %v6817_v12  ;;  %v729_v26 = vld [vmem:[#allocation2 + $0xc8] sm:$0x33] }
  0xd5   : > { %v889_v3 = vsel %vm882_vm10, %v7831_v30, %v888_v61  ;;  %v791_v22 = vsel %vm784_vm9, %v7835_v31, %v790_v63  ;;  %v8014_v38 = vpop.permute.xlu1 %1052  ;;  %v8016_v37 = vpop.permute.xlu0 %954  ;;  %p7160_p13 = pneg %p7159_p12 }
  0xd6   : > { %v923_v62 = vsel %vm7470_vm6, %v889_v3, %v922_v28  ;;  %v825_v48 = vsel %vm7470_vm6, %v791_v22, %v824_v0  ;;  %v1070_v13 = vrot.slane %v8014_v38, 4  ;;  %v972_v30 = vrot.slane %v8016_v37, 4  ;;  %2218 = vmatpush1.bf16.msra.mxu0 %v6815_v56  ;;  %v6819_v14 = vld [vmem:[#allocation2 + $0x208] ss:$84 sps:$4 sm:$0xff]   ;;  %v6821_v31 = vld [vmem:[#allocation2 + $0x20c] ss:$84 sps:$4 sm:$0xff]  }
  0xd7   : > { %924 = vst [vmem:[#allocation2 + $0x168] sm:$0x33] %v923_v62  ;;  %826 = vst [vmem:[#allocation2 + $0x114] sm:$0x33] %v825_v48  ;;  %v6822_v15 = vld [vmem:[#allocation2 + $0x18] ss:$84 sps:$4 sm:$0xff]   ;;  %1485 = vperm.xlu1 %6773, %v1451_v24   ;;  %1490 = vperm.xlu0 %6772, %v1452_v60   ;;  %p7167_p3 = pnand %p7166_p2, %p7160_p13 }
  0xd8   : > { %v6824_v19 = vld [vmem:[#allocation2 + $0x1c] ss:$84 sps:$4 sm:$0xff]   ;;  %v1084_v23 = vsel %vm586_vm7, %v1069_v47, %v1070_v13  ;;  %v986_v25 = vsel %vm586_vm7, %v971_v21, %v972_v30  ;;  %5945 = vmatmul.mubr.msk.bf16.gmra.mrb[4].mxu1 %vm1990_vm1, %v7853_v5  ;;  %2219 = vmatprep.subr.bf16.mxu0 %v6821_v31  ;;  %v1216_v47 = vld [vmem:[#allocation2 + $0x264] sm:$0x33] }
  0xd9   : > { %v1085_v49 = vsel %vm1078_vm13, %v7869_v44, %v1084_v23  ;;  %v987_v29 = vsel %vm980_vm12, %v7871_v46, %v986_v25  ;;  %v8040_v32 = vpop.permute.xlu1 %1248  ;;  %5942 = vmatmul.mubr.msk.bf16.gmra.mrb[12].mxu0 %vm1990_vm1, %v7995_v57  ;;  %v8044_v34 = vpop.permute.xlu0 %1150  ;;  %2286 = vmatprep.subr.bf16.mxu1 %v6824_v19  ;;  %v827_v62 = vld [vmem:[#allocation2 + $0x11c] sm:$0x33] }
  0xda   : > { %v1119_v21 = vsel %vm7470_vm6, %v1085_v49, %v1118_v58  ;;  %v1021_v54 = vsel %vm7470_vm6, %v987_v29, %v1020_v41  ;;  %v1266_v44 = vrot.slane %v8040_v32, 4  ;;  %v1168_v46 = vrot.slane %v8044_v34, 4  ;;  %2220 = vmatpush1.bf16.msra.mxu0 %v6819_v14  ;;  %v1436_v16 = vld [vmem:[#allocation2 + $0x2b0] sm:$0xff]  ;;  %2287 = vmatpush1.bf16.msra.mxu1 %v6822_v15 }
  0xdb   : > { %1120 = vst [vmem:[#allocation2 + $0x210] sm:$0x33] %v1119_v21  ;;  %1022 = vst [vmem:[#allocation2 + $0x1bc] sm:$0x33] %v1021_v54  ;;  %v5922_v40 = vcombine.high %v1436_v16, %v1436_v16  ;;  %v5921_v42 = vcombine.low %v1436_v16, %v1436_v16  ;;  %2192 = vmatprep.mubr.bf16.mxu1 %v7843_v35  ;;  %2245 = vmatprep.mubr.bf16.mxu0 %v7843_v35  ;;  %v925_v41 = vld [vmem:[#allocation2 + $0x170] sm:$0x33] }
  0xdc   : > { %v1280_v1 = vsel %vm586_vm7, %v1265_v8, %v1266_v44  ;;  %v1182_v55 = vsel %vm586_vm7, %v1167_v11, %v1168_v46  ;;  %v631_v8 = vld [vmem:[#allocation2 + $0x74] sm:$0x33] }
  0xdd   : > { %v1281_v43 = vsel %vm1274_vm2, %v7945_v33, %v1280_v1  ;;  %v1183_v45 = vsel %vm1176_vm14, %v7907_v9, %v1182_v55  ;;  %v8068_v28 = vpop.permute.xlu1 %662  ;;  %5948 = vmatprep.subr.msk.bf16.mxu0 %vm586_vm7, %v5922_v40  ;;  %v8071_v0 = vpop.permute.xlu0 %563  ;;  %v2017_v17 = vsel %vm586_vm7, %v5921_v42, 0 }
  0xde   : > { %v1315_v11 = vsel %vm7470_vm6, %v1281_v43, %v1314_v7  ;;  %v1217_v50 = vsel %vm7470_vm6, %v1183_v45, %v1216_v47  ;;  %v679_v33 = vrot.slane %v8068_v28, 4  ;;  %v580_v9 = vrot.slane %v8071_v0, 4  ;;  %2222 = vmatpush1.bf16.msra.mxu0 %v2017_v17  ;;  %v6827_v56 = vld [vmem:[#allocation2 + $0xc0] ss:$84 sps:$4 sm:$0xff]   ;;  %v6829_v24 = vld [vmem:[#allocation2 + $0xc4] ss:$84 sps:$4 sm:$0xff]  }
  0xdf   : > { %1316 = vst [vmem:[#allocation2 + $0x2b8] sm:$0x33] %v1315_v11  ;;  %1218 = vst [vmem:[#allocation2 + $0x264] sm:$0x33] %v1217_v50  ;;  %2288 = vmatprep.subr.bf16.mxu1 %v6829_v24  ;;  %v1023_v47 = vld [vmem:[#allocation2 + $0x1c4] sm:$0x33] }
  0xe0   : > { %v694_v12 = vsel %vm586_vm7, %v678_v36, %v679_v33  ;;  %v596_v60 = vsel %vm586_vm7, %v579_v39, %v580_v9  ;;  %5946 = vmatmul.mubr.msk.bf16.gmra.mrb[8].mxu1 %vm1990_vm1, %v7927_v20  ;;  %v1219_v17 = vld [vmem:[#allocation2 + $0x26c] sm:$0x33] }
  0xe1   : > { %v695_v61 = vsel %vm686_vm8, %v7943_v52, %v694_v12  ;;  %v597_v63 = vsel %vm588_vm11, %v7903_v2, %v596_v60  ;;  %v8096_v3 = vpop.permute.xlu1 %858  ;;  %5949 = vmatmul.mubr.msk.bf16.vlgmr.msra.gmra.mrb[16].mxu0 %vm1990_vm1, %v7795_v6  ;;  %v8100_v36 = vpop.permute.xlu0 %760  ;;  %2289 = vmatpush1.bf16.msra.mxu1 %v6827_v56 }
  0xe2   : > { %v730_v39 = vsel %vm7470_vm6, %v695_v61, %v729_v26  ;;  %v632_v22 = vsel %vm7470_vm6, %v597_v63, %v631_v8  ;;  %v875_v58 = vrot.slane %v8096_v3, 4  ;;  %v777_v52 = vrot.slane %v8100_v36, 4  ;;  %v6830_v2 = vld [vmem:[#allocation2 + $0x168] ss:$84 sps:$4 sm:$0xff]   ;;  %2202 = vmatprep.mubr.bf16.mxu1 %v7843_v35  ;;  %v6832_v48 = vld [vmem:[#allocation2 + $0x16c] ss:$84 sps:$4 sm:$0xff]   ;;  %2255 = vmatprep.mubr.bf16.mxu0 %v7843_v35 }
  0xe3   : > { %731 = vst [vmem:[#allocation2 + $0xc8] sm:$0x33] %v730_v39  ;;  %633 = vst [vmem:[#allocation2 + $0x74] sm:$0x33] %v632_v22  ;;  %2290 = vmatprep.subr.bf16.mxu1 %v6832_v48  ;;  %v634_v8 = vld [vmem:[#allocation2 + $0x7c] sm:$0x33] }
  0xe4   : > { %v890_v14 = vsel %vm586_vm7, %v874_v10, %v875_v58  ;;  %v792_v31 = vsel %vm586_vm7, %v776_v51, %v777_v52  ;;  %v732_v22 = vld [vmem:[#allocation2 + $0xd0] sm:$0x33] }
  0xe5   : > { %v891_v15 = vsel %vm882_vm10, %v7975_v27, %v890_v14  ;;  %v793_v19 = vsel %vm784_vm9, %v7979_v53, %v792_v31  ;;  %v8124_v23 = vpop.permute.xlu1 %1054  ;;  %v8126_v25 = vpop.permute.xlu0 %956  ;;  %2291 = vmatpush1.bf16.msra.mxu1 %v6830_v2  ;;  %v1121_v53 = vld [vmem:[#allocation2 + $0x218] sm:$0x33]  ;;  %v1317_v2 = vld [vmem:[#allocation2 + $0x2c0] sm:$0x33] }
  0xe6   : > { %v926_v10 = vsel %vm7470_vm6, %v891_v15, %v925_v41  ;;  %v828_v49 = vsel %vm7470_vm6, %v793_v19, %v827_v62  ;;  %v1071_v29 = vrot.slane %v8124_v23, 4  ;;  %v973_v51 = vrot.slane %v8126_v25, 4  ;;  %v6833_v27 = vld [vmem:[#allocation2 + $0x210] ss:$84 sps:$4 sm:$0xff]   ;;  %v1437_v7 = vld [vmem:[#allocation2 + $0x2b8] sm:$0xff] }
  0xe7   : > { %927 = vst [vmem:[#allocation2 + $0x170] sm:$0x33] %v926_v10  ;;  %829 = vst [vmem:[#allocation2 + $0x11c] sm:$0x33] %v828_v49  ;;  %v6835_v21 = vld [vmem:[#allocation2 + $0x214] ss:$84 sps:$4 sm:$0xff]   ;;  %v5924_v54 = vcombine.high %v1437_v7, %v1437_v7  ;;  %v5923_v43 = vcombine.low %v1437_v7, %v1437_v7 }
  0xe8   : > { %v1086_v16 = vsel %vm586_vm7, %v1070_v13, %v1071_v29  ;;  %v988_v40 = vsel %vm586_vm7, %v972_v30, %v973_v51  ;;  %5947 = vmatmul.mubr.msk.bf16.gmra.mrb[12].mxu1 %vm1990_vm1, %v7995_v57  ;;  %2292 = vmatprep.subr.bf16.mxu1 %v6835_v21  ;;  %v928_v49 = vld [vmem:[#allocation2 + $0x178] sm:$0x33] }
  0xe9   : > { %v1087_v42 = vsel %vm1078_vm13, %v8014_v38, %v1086_v16  ;;  %v989_v1 = vsel %vm980_vm12, %v8016_v37, %v988_v40  ;;  %v8150_v55 = vpop.permute.xlu1 %565  ;;  %5950 = vmatmul.mubr.msk.bf16.gmra.mrb[20].mxu0 %vm1990_vm1, %v7853_v5  ;;  %v8154_v13 = vpop.permute.xlu0 %1152  ;;  %2293 = vmatpush1.bf16.msra.mxu1 %v6833_v27  ;;  %v2023_v63 = vsel %vm586_vm7, %v5923_v43, 0  ;;  %v830_v27 = vld [vmem:[#allocation2 + $0x124] sm:$0x33] }
  0xea   : > { %v1122_v30 = vsel %vm7470_vm6, %v1087_v42, %v1121_v53  ;;  %v1024_v45 = vsel %vm7470_vm6, %v989_v1, %v1023_v47  ;;  %v581_v38 = vrot.slane %v8150_v55, 4  ;;  %v1169_v26 = vrot.slane %v8154_v13, 4  ;;  %v6837_v37 = vld [vmem:[#allocation2 + $0x20] ss:$84 sps:$4 sm:$0xff]   ;;  %2265 = vmatprep.mubr.bf16.mxu0 %v7843_v35  ;;  %5953 = vmatprep.subr.msk.bf16.mxu1 %vm586_vm7, %v5924_v54  ;;  %v6839_v11 = vld [vmem:[#allocation2 + $0x24] ss:$84 sps:$4 sm:$0xff]  }
  0xeb   : > { %1123 = vst [vmem:[#allocation2 + $0x218] sm:$0x33] %v1122_v30  ;;  %1025 = vst [vmem:[#allocation2 + $0x1c4] sm:$0x33] %v1024_v45  ;;  %2318 = vmatprep.mubr.bf16.mxu1 %v7843_v35  ;;  %2359 = vmatprep.subr.bf16.mxu0 %v6839_v11  ;;  %v1124_v16 = vld [vmem:[#allocation2 + $0x220] sm:$0x33] }
  0xec   : > { %v598_v50 = vsel %vm586_vm7, %v580_v9, %v581_v38  ;;  %v1184_v56 = vsel %vm586_vm7, %v1168_v46, %v1169_v26  ;;  %2360 = vmatpush1.bf16.msra.mxu0 %v6837_v37  ;;  %v1026_v42 = vld [vmem:[#allocation2 + $0x1cc] sm:$0x33] }
  0xed   : > { %v599_v24 = vsel %vm588_vm11, %v8071_v0, %v598_v50  ;;  %v1185_v12 = vsel %vm1176_vm14, %v8044_v34, %v1184_v56  ;;  %v8179_v60 = vpop.permute.xlu1 %664  ;;  %v8181_v61 = vpop.permute.xlu0 %1250  ;;  %2295 = vmatpush1.bf16.msra.mxu1 %v2023_v63  ;;  %v1320_v63 = vld [vmem:[#allocation2 + $0x2c8] sm:$0x33] }
  0xee   : > { %v635_v9 = vsel %vm7470_vm6, %v599_v24, %v634_v8  ;;  %v1220_v39 = vsel %vm7470_vm6, %v1185_v12, %v1219_v17  ;;  %v680_v46 = vrot.slane %v8179_v60, 4  ;;  %v1267_v0 = vrot.slane %v8181_v61, 4  ;;  %v6841_v34 = vld [vmem:[#allocation2 + $0xc8] ss:$84 sps:$4 sm:$0xff]   ;;  %v6843_v41 = vld [vmem:[#allocation2 + $0xcc] ss:$84 sps:$4 sm:$0xff]  }
  0xef   : > { %636 = vst [vmem:[#allocation2 + $0x7c] sm:$0x33] %v635_v9  ;;  %1221 = vst [vmem:[#allocation2 + $0x26c] sm:$0x33] %v1220_v39  ;;  %2361 = vmatprep.subr.bf16.mxu0 %v6843_v41  ;;  %v1222_v9 = vld [vmem:[#allocation2 + $0x274] sm:$0x33] }
  0xf0   : > { %v696_v62 = vsel %vm586_vm7, %v679_v33, %v680_v46  ;;  %v1282_v48 = vsel %vm586_vm7, %v1266_v44, %v1267_v0  ;;  %5954 = vmatmul.mubr.msk.bf16.vlgmr.msra.gmra.mrb[16].mxu1 %vm1990_vm1, %v7795_v6  ;;  %2362 = vmatpush1.bf16.msra.mxu0 %v6841_v34 }
  0xf1   : > { %v697_v14 = vsel %vm686_vm8, %v8068_v28, %v696_v62  ;;  %v1283_v31 = vsel %vm1274_vm2, %v8040_v32, %v1282_v48  ;;  %v8204_v15 = vpop.permute.xlu1 %860  ;;  %5951 = vmatmul.mubr.msk.bf16.gmra.mrb[24].mxu0 %vm1990_vm1, %v7927_v20  ;;  %v8208_v19 = vpop.permute.xlu0 %762  ;;  %2328 = vmatprep.mubr.bf16.mxu1 %v7843_v35 }
  0xf2   : > { %v733_v33 = vsel %vm7470_vm6, %v697_v14, %v732_v22  ;;  %v1318_v44 = vsel %vm7470_vm6, %v1283_v31, %v1317_v2  ;;  %v876_v10 = vrot.slane %v8204_v15, 4  ;;  %v778_v28 = vrot.slane %v8208_v19, 4  ;;  %v6844_v32 = vld [vmem:[#allocation2 + $0x170] ss:$84 sps:$4 sm:$0xff]   ;;  %v6846_v7 = vld [vmem:[#allocation2 + $0x174] ss:$84 sps:$4 sm:$0xff]   ;;  %2275 = vmatprep.mubr.bf16.mxu0 %v7843_v35 }
  0xf3   : > { %734 = vst [vmem:[#allocation2 + $0xd0] sm:$0x33] %v733_v33  ;;  %1319 = vst [vmem:[#allocation2 + $0x2c0] sm:$0x33] %v1318_v44  ;;  %2363 = vmatprep.subr.bf16.mxu0 %v6846_v7  ;;  %v735_v33 = vld [vmem:[#allocation2 + $0xd8] sm:$0x33] }
  0xf4   : > { %v892_v53 = vsel %vm586_vm7, %v875_v58, %v876_v10  ;;  %v794_v47 = vsel %vm586_vm7, %v777_v52, %v778_v28  ;;  %2364 = vmatpush1.bf16.msra.mxu0 %v6844_v32 }
  0xf5   : > { %v893_v21 = vsel %vm882_vm10, %v8096_v3, %v892_v53  ;;  %v795_v54 = vsel %vm784_vm9, %v8100_v36, %v794_v47  ;;  %v8234_v40 = vpop.permute.xlu1 %1056  ;;  %v8236_v1 = vpop.permute.xlu0 %958 }
  0xf6   : > { %v929_v58 = vsel %vm7470_vm6, %v893_v21, %v928_v49  ;;  %v831_v43 = vsel %vm7470_vm6, %v795_v54, %v830_v27  ;;  %v1072_v52 = vrot.slane %v8234_v40, 4  ;;  %v974_v3 = vrot.slane %v8236_v1, 4  ;;  %v6847_v30 = vld [vmem:[#allocation2 + $0x218] ss:$84 sps:$4 sm:$0xff]   ;;  %v6849_v36 = vld [vmem:[#allocation2 + $0x21c] ss:$84 sps:$4 sm:$0xff]  }
  0xf7   : > { %930 = vst [vmem:[#allocation2 + $0x178] sm:$0x33] %v929_v58  ;;  %832 = vst [vmem:[#allocation2 + $0x124] sm:$0x33] %v831_v43  ;;  %v6850_v45 = vld [vmem:[#allocation2 + $0x28] ss:$84 sps:$4 sm:$0xff]   ;;  %2365 = vmatprep.subr.bf16.mxu0 %v6849_v36 }
  0xf8   : > { %v6852_v37 = vld [vmem:[#allocation2 + $0x2c] ss:$84 sps:$4 sm:$0xff]   ;;  %v1088_v8 = vsel %vm586_vm7, %v1071_v29, %v1072_v52  ;;  %v990_v17 = vsel %vm586_vm7, %v973_v51, %v974_v3  ;;  %5955 = vmatmul.mubr.msk.bf16.gmra.mrb[20].mxu1 %vm1990_vm1, %v7853_v5  ;;  %2366 = vmatpush1.bf16.msra.mxu0 %v6847_v30 }
  0xf9   : > { %v1089_v11 = vsel %vm1078_vm13, %v8124_v23, %v1088_v8  ;;  %v991_v50 = vsel %vm980_vm12, %v8126_v25, %v990_v17  ;;  %v8258_v56 = vpop.permute.xlu1 %1252  ;;  %5952 = vmatmul.mubr.msk.bf16.gmra.mrb[28].mxu0 %vm1990_vm1, %v7995_v57  ;;  %v8262_v24 = vpop.permute.xlu0 %1154  ;;  %2432 = vmatprep.subr.bf16.mxu1 %v6852_v37 }
  0xfa   : > { %v1125_v29 = vsel %vm7470_vm6, %v1089_v11, %v1124_v16  ;;  %v1027_v51 = vsel %vm7470_vm6, %v991_v50, %v1026_v42  ;;  %v1268_v12 = vrot.slane %v8258_v56, 4  ;;  %v1170_v23 = vrot.slane %v8262_v24, 4  ;;  %v1438_v25 = vld [vmem:[#allocation2 + $0x2c0] sm:$0xff]  ;;  %2433 = vmatpush1.bf16.msra.mxu1 %v6850_v45  ;;  %2338 = vmatprep.mubr.bf16.mxu1 %v7843_v35 }
  0xfb   : > { %1126 = vst [vmem:[#allocation2 + $0x220] sm:$0x33] %v1125_v29  ;;  %1028 = vst [vmem:[#allocation2 + $0x1cc] sm:$0x33] %v1027_v51  ;;  %v5926_v39 = vcombine.high %v1438_v25, %v1438_v25  ;;  %v5925_v34 = vcombine.low %v1438_v25, %v1438_v25  ;;  %2391 = vmatprep.mubr.bf16.mxu0 %v7843_v35  ;;  %v931_v42 = vld [vmem:[#allocation2 + $0x180] sm:$0x33] }
  0xfc   : > { %v1284_v22 = vsel %vm586_vm7, %v1267_v0, %v1268_v12  ;;  %v1186_v2 = vsel %vm586_vm7, %v1169_v26, %v1170_v23 }
  0xfd   : > { %v1285_v41 = vsel %vm1274_vm2, %v8181_v61, %v1284_v22  ;;  %v1187_v62 = vsel %vm1176_vm14, %v8154_v13, %v1186_v2  ;;  %v8288_v48 = vpop.permute.xlu1 %666  ;;  %5958 = vmatprep.subr.msk.bf16.mxu0 %vm586_vm7, %v5926_v39  ;;  %v8291_v0 = vpop.permute.xlu0 %567  ;;  %v2029_v14 = vsel %vm586_vm7, %v5925_v34, 0  ;;  %v637_v13 = vld [vmem:[#allocation2 + $0x84] sm:$0x33] }
  0xfe   : > { %v1321_v26 = vsel %vm7470_vm6, %v1285_v41, %v1320_v63  ;;  %v1223_v31 = vsel %vm7470_vm6, %v1187_v62, %v1222_v9  ;;  %v681_v61 = vrot.slane %v8288_v48, 4  ;;  %v582_v44 = vrot.slane %v8291_v0, 4  ;;  %2368 = vmatpush1.bf16.msra.mxu0 %v2029_v14  ;;  %v6855_v32 = vld [vmem:[#allocation2 + $0xd0] ss:$84 sps:$4 sm:$0xff]   ;;  %v6857_v49 = vld [vmem:[#allocation2 + $0xd4] ss:$84 sps:$4 sm:$0xff]  }
  0xff   : > { %1322 = vst [vmem:[#allocation2 + $0x2c8] sm:$0x33] %v1321_v26  ;;  %1224 = vst [vmem:[#allocation2 + $0x274] sm:$0x33] %v1223_v31  ;;  %2434 = vmatprep.subr.bf16.mxu1 %v6857_v49  ;;  %v640_v14 = vld [vmem:[#allocation2 + $0x8c] sm:$0x33] }
 0x100   : > { %v698_v27 = vsel %vm586_vm7, %v680_v46, %v681_v61  ;;  %v600_v7 = vsel %vm586_vm7, %v581_v38, %v582_v44  ;;  %5956 = vmatmul.mubr.msk.bf16.gmra.mrb[24].mxu1 %vm1990_vm1, %v7927_v20  ;;  %v1225_v26 = vld [vmem:[#allocation2 + $0x27c] sm:$0x33] }
 0x101   : > { %v699_v53 = vsel %vm686_vm8, %v8179_v60, %v698_v27  ;;  %v601_v47 = vsel %vm588_vm11, %v8150_v55, %v600_v7  ;;  %v8314_v21 = vpop.permute.xlu1 %862  ;;  %v8316_v54 = vpop.permute.xlu0 %764  ;;  %5959 = vmatmul.mubr.msk.bf16.vlgmr.msra.gmra.mrb[32].mxu0 %vm1990_vm1, %v7795_v6  ;;  %v833_v55 = vld [vmem:[#allocation2 + $0x12c] sm:$0x33]  ;;  %2435 = vmatpush1.bf16.msra.mxu1 %v6855_v32 }
 0x102   : > { %v736_v46 = vsel %vm7470_vm6, %v699_v53, %v735_v33  ;;  %v638_v16 = vsel %vm7470_vm6, %v601_v47, %v637_v13  ;;  %v877_v38 = vrot.slane %v8314_v21, 4  ;;  %v779_v60 = vrot.slane %v8316_v54, 4  ;;  %v6858_v58 = vld [vmem:[#allocation2 + $0x178] ss:$84 sps:$4 sm:$0xff]   ;;  %v6860_v43 = vld [vmem:[#allocation2 + $0x17c] ss:$84 sps:$4 sm:$0xff]   ;;  %2348 = vmatprep.mubr.bf16.mxu1 %v7843_v35  ;;  %2401 = vmatprep.mubr.bf16.mxu0 %v7843_v35 }
 0x103   : > { %737 = vst [vmem:[#allocation2 + $0xd8] sm:$0x33] %v736_v46  ;;  %639 = vst [vmem:[#allocation2 + $0x84] sm:$0x33] %v638_v16  ;;  %2436 = vmatprep.subr.bf16.mxu1 %v6860_v43 }
 0x104   : > { %v894_v30 = vsel %vm586_vm7, %v876_v10, %v877_v38  ;;  %v796_v6 = vsel %vm586_vm7, %v778_v28, %v779_v60  ;;  %v1127_v28 = vld [vmem:[#allocation2 + $0x228] sm:$0x33] }
 0x105   : > { %v895_v36 = vsel %vm882_vm10, %v8204_v15, %v894_v30  ;;  %v797_v45 = vsel %vm784_vm9, %v8208_v19, %v796_v6  ;;  %v8344_v37 = vpop.permute.xlu1 %1058  ;;  %v8346_v8 = vpop.permute.xlu0 %960  ;;  %v1029_v19 = vld [vmem:[#allocation2 + $0x1d4] sm:$0x33]  ;;  %2437 = vmatpush1.bf16.msra.mxu1 %v6858_v58 }
 0x106   : > { %v932_v10 = vsel %vm7470_vm6, %v895_v36, %v931_v42  ;;  %v834_v17 = vsel %vm7470_vm6, %v797_v45, %v833_v55  ;;  %v1073_v11 = vrot.slane %v8344_v37, 4  ;;  %v975_v50 = vrot.slane %v8346_v8, 4  ;;  %v1439_v15 = vld [vmem:[#allocation2 + $0x2c8] sm:$0xff]  ;;  %v6861_v29 = vld [vmem:[#allocation2 + $0x220] ss:$84 sps:$4 sm:$0xff]  }
 0x107   : > { %933 = vst [vmem:[#allocation2 + $0x180] sm:$0x33] %v932_v10  ;;  %835 = vst [vmem:[#allocation2 + $0x12c] sm:$0x33] %v834_v17  ;;  %v6863_v51 = vld [vmem:[#allocation2 + $0x224] ss:$84 sps:$4 sm:$0xff]   ;;  %v5928_v9 = vcombine.high %v1439_v15, %v1439_v15  ;;  %v5927_v41 = vcombine.low %v1439_v15, %v1439_v15 }
 0x108   : > { %v1090_v25 = vsel %vm586_vm7, %v1072_v52, %v1073_v11  ;;  %v992_v63 = vsel %vm586_vm7, %v974_v3, %v975_v50  ;;  %2438 = vmatprep.subr.bf16.mxu1 %v6863_v51  ;;  %5957 = vmatmul.mubr.msk.bf16.gmra.mrb[28].mxu1 %vm1990_vm1, %v7995_v57  ;;  %v934_v36 = vld [vmem:[#allocation2 + $0x188] sm:$0x33]  ;;  %v836_v45 = vld [vmem:[#allocation2 + $0x134] sm:$0x33] }
 0x109   : > { %v1091_v39 = vsel %vm1078_vm13, %v8234_v40, %v1090_v25  ;;  %v993_v34 = vsel %vm980_vm12, %v8236_v1, %v992_v63  ;;  %v8368_v22 = vpop.permute.xlu1 %569  ;;  %v8370_v2 = vpop.permute.xlu0 %1156  ;;  %5960 = vmatmul.mubr.msk.bf16.gmra.mrb[36].mxu0 %vm1990_vm1, %v7853_v5  ;;  %2439 = vmatpush1.bf16.msra.mxu1 %v6861_v29  ;;  %v2035_v27 = vsel %vm586_vm7, %v5927_v41, 0  ;;  %v1130_v51 = vld [vmem:[#allocation2 + $0x230] sm:$0x33]  ;;  %v1032_v63 = vld [vmem:[#allocation2 + $0x1dc] sm:$0x33] }
 0x10a   : > { %v1128_v52 = vsel %vm7470_vm6, %v1091_v39, %v1127_v28  ;;  %v1030_v62 = vsel %vm7470_vm6, %v993_v34, %v1029_v19  ;;  %v583_v3 = vrot.slane %v8368_v22, 4  ;;  %v1171_v40 = vrot.slane %v8370_v2, 4  ;;  %v6865_v1 = vld [vmem:[#allocation2 + $0x30] ss:$84 sps:$4 sm:$0xff]   ;;  %v6867_v31 = vld [vmem:[#allocation2 + $0x34] ss:$84 sps:$4 sm:$0xff]   ;;  %2411 = vmatprep.mubr.bf16.mxu0 %v7843_v35  ;;  %5963 = vmatprep.subr.msk.bf16.mxu1 %vm586_vm7, %v5928_v9 }
 0x10b   : > { %1129 = vst [vmem:[#allocation2 + $0x228] sm:$0x33] %v1128_v52  ;;  %1031 = vst [vmem:[#allocation2 + $0x1d4] sm:$0x33] %v1030_v62  ;;  %2464 = vmatprep.mubr.bf16.mxu1 %v7843_v35  ;;  %2505 = vmatprep.subr.bf16.mxu0 %v6867_v31  ;;  %v738_v35 = vld [vmem:[#allocation2 + $0xe0] sm:$0x33] }
 0x10c   : > { %v602_v5 = vsel %vm586_vm7, %v582_v44, %v583_v3  ;;  %v1188_v33 = vsel %vm586_vm7, %v1170_v23, %v1171_v40  ;;  %2506 = vmatpush1.bf16.msra.mxu0 %v6865_v1  ;;  %v8443_v28 = vld [vmem:[#allocation2 + $0x94] sm:$0xff] }
 0x10d   : > { %v603_v13 = vsel %vm588_vm11, %v8291_v0, %v602_v5  ;;  %v1189_v32 = vsel %vm1176_vm14, %v8262_v24, %v1188_v33  ;;  %v8399_v49 = vpop.permute.xlu1 %668  ;;  %v8401_v44 = vpop.permute.xlu0 %1254  ;;  %v1323_v24 = vld [vmem:[#allocation2 + $0x2d0] sm:$0x33]  ;;  %2441 = vmatpush1.bf16.msra.mxu1 %v2035_v27  ;;  %v1228_v27 = vld [vmem:[#allocation2 + $0x284] sm:$0x33] }
 0x10e   : > { %v641_v23 = vsel %vm7470_vm6, %v603_v13, %v640_v14  ;;  %v1226_v7 = vsel %vm7470_vm6, %v1189_v32, %v1225_v26  ;;  %v682_v53 = vrot.slane %v8399_v49, 4  ;;  %v1269_v0 = vrot.slane %v8401_v44, 4  ;;  %v6869_v47 = vld [vmem:[#allocation2 + $0xd8] ss:$84 sps:$4 sm:$0xff]   ;;  %v6871_v46 = vld [vmem:[#allocation2 + $0xdc] ss:$84 sps:$4 sm:$0xff]  }
 0x10f   : > { %642 = vst [vmem:[#allocation2 + $0x8c] sm:$0x33] %v641_v23  ;;  %1227 = vst [vmem:[#allocation2 + $0x27c] sm:$0x33] %v1226_v7  ;;  %2507 = vmatprep.subr.bf16.mxu0 %v6871_v46  ;;  %v1326_v32 = vld [vmem:[#allocation2 + $0x2d8] sm:$0x33] }
 0x110   : > { %v700_v16 = vsel %vm586_vm7, %v681_v61, %v682_v53  ;;  %v1286_v42 = vsel %vm586_vm7, %v1268_v12, %v1269_v0  ;;  %2508 = vmatpush1.bf16.msra.mxu0 %v6869_v47 }
 0x111   : > { %v701_v55 = vsel %vm686_vm8, %v8288_v48, %v700_v16  ;;  %v1287_v58 = vsel %vm1274_vm2, %v8258_v56, %v1286_v42  ;;  %v8424_v43 = vpop.permute.xlu1 %864  ;;  %v8426_v30 = vpop.permute.xlu0 %766  ;;  %5961 = vmatmul.mubr.msk.bf16.gmra.mrb[40].mxu0 %vm1990_vm1, %v7927_v20  ;;  %v8439_v56 = vld [vmem:[%s9667_s1] sm:$0xff]  }
 0x112   : > { %v739_v61 = vsel %vm7470_vm6, %v701_v55, %v738_v35  ;;  %v1324_v6 = vsel %vm7470_vm6, %v1287_v58, %v1323_v24  ;;  %v878_v12 = vrot.slane %v8424_v43, 4  ;;  %v780_v48 = vrot.slane %v8426_v30, 4  ;;  %5964 = vmatmul.mubr.msk.bf16.vlgmr.msra.gmra.mrb[32].mxu1 %vm1990_vm1, %v8439_v56  ;;  %v6872_v10 = vld [vmem:[#allocation2 + $0x180] ss:$84 sps:$4 sm:$0xff]   ;;  %v6874_v17 = vld [vmem:[#allocation2 + $0x184] ss:$84 sps:$4 sm:$0xff]   ;;  %2421 = vmatprep.mubr.bf16.mxu0 %v8443_v28 }
 0x113   : > { %740 = vst [vmem:[#allocation2 + $0xe0] sm:$0x33] %v739_v61  ;;  %1325 = vst [vmem:[#allocation2 + $0x2d0] sm:$0x33] %v1324_v6  ;;  %2474 = vmatprep.mubr.bf16.mxu1 %v8443_v28  ;;  %2509 = vmatprep.subr.bf16.mxu0 %v6874_v17  ;;  %v741_v55 = vld [vmem:[#allocation2 + $0xe8] sm:$0x33] }
 0x114   : > { %v896_v20 = vsel %vm586_vm7, %v877_v38, %v878_v12  ;;  %v798_v15 = vsel %vm586_vm7, %v779_v60, %v780_v48  ;;  %2510 = vmatpush1.bf16.msra.mxu0 %v6872_v10 }
 0x115   : > { %v897_v19 = vsel %vm882_vm10, %v8314_v21, %v896_v20  ;;  %v799_v29 = vsel %vm784_vm9, %v8316_v54, %v798_v15  ;;  %v8461_v25 = vpop.permute.xlu1 %1060  ;;  %v8463_v38 = vpop.permute.xlu0 %962 }
 0x116   : > { %v935_v9 = vsel %vm7470_vm6, %v897_v19, %v934_v36  ;;  %v837_v60 = vsel %vm7470_vm6, %v799_v29, %v836_v45  ;;  %v1074_v39 = vrot.slane %v8461_v25, 4  ;;  %v976_v21 = vrot.slane %v8463_v38, 4  ;;  %v6875_v34 = vld [vmem:[#allocation2 + $0x228] ss:$84 sps:$4 sm:$0xff]   ;;  %v6877_v54 = vld [vmem:[#allocation2 + $0x22c] ss:$84 sps:$4 sm:$0xff]  }
 0x117   : > { %936 = vst [vmem:[#allocation2 + $0x188] sm:$0x33] %v935_v9  ;;  %838 = vst [vmem:[#allocation2 + $0x134] sm:$0x33] %v837_v60  ;;  %v6878_v41 = vld [vmem:[#allocation2 + $0x38] ss:$84 sps:$4 sm:$0xff]   ;;  %2511 = vmatprep.subr.bf16.mxu0 %v6877_v54 }
 0x118   : > { %v6880_v52 = vld [vmem:[#allocation2 + $0x3c] ss:$84 sps:$4 sm:$0xff]   ;;  %v1092_v62 = vsel %vm586_vm7, %v1073_v11, %v1074_v39  ;;  %v994_v1 = vsel %vm586_vm7, %v975_v50, %v976_v21  ;;  %2512 = vmatpush1.bf16.msra.mxu0 %v6875_v34 }
 0x119   : > { %v1093_v14 = vsel %vm1078_vm13, %v8344_v37, %v1092_v62  ;;  %v995_v26 = vsel %vm980_vm12, %v8346_v8, %v994_v1  ;;  %v8485_v31 = vpop.permute.xlu1 %1256  ;;  %v8487_v5 = vpop.permute.xlu0 %1158  ;;  %2578 = vmatprep.subr.bf16.mxu1 %v6880_v52  ;;  %5962 = vmatmul.mubr.msk.bf16.gmra.mrb[44].mxu0 %vm1990_vm1, %v7995_v57  ;;  %v8500_v8 = vld [vmem:[%s9667_s1 + $0x8] sm:$0xff]   ;;  %v937_v29 = vld [vmem:[#allocation2 + $0x190] sm:$0x33]  ;;  %v1133_v52 = vld [vmem:[#allocation2 + $0x238] sm:$0x33] }
 0x11a   : > { %v1131_v11 = vsel %vm7470_vm6, %v1093_v14, %v1130_v51  ;;  %v1033_v33 = vsel %vm7470_vm6, %v995_v26, %v1032_v63  ;;  %v1270_v50 = vrot.slane %v8485_v31, 4  ;;  %v1172_v37 = vrot.slane %v8487_v5, 4  ;;  %5965 = vmatmul.mubr.msk.bf16.gmra.mrb[36].mxu1 %vm1990_vm1, %v8500_v8  ;;  %v1440_v13 = vld [vmem:[#allocation2 + $0x2d0] sm:$0xff]  ;;  %2537 = vmatprep.mubr.bf16.mxu0 %v8443_v28  ;;  %v839_v51 = vld [vmem:[#allocation2 + $0x13c] sm:$0x33] }
 0x11b   : > { %1132 = vst [vmem:[#allocation2 + $0x230] sm:$0x33] %v1131_v11  ;;  %1034 = vst [vmem:[#allocation2 + $0x1dc] sm:$0x33] %v1033_v33  ;;  %2579 = vmatpush1.bf16.msra.mxu1 %v6878_v41  ;;  %v5930_v23 = vcombine.high %v1440_v13, %v1440_v13  ;;  %v5929_v7 = vcombine.low %v1440_v13, %v1440_v13  ;;  %2484 = vmatprep.mubr.bf16.mxu1 %v8443_v28  ;;  %v1035_v26 = vld [vmem:[#allocation2 + $0x1e4] sm:$0x33] }
 0x11c   : > { %v1288_v57 = vsel %vm586_vm7, %v1269_v0, %v1270_v50  ;;  %v1190_v35 = vsel %vm586_vm7, %v1171_v40, %v1172_v37 }
 0x11d   : > { %v1289_v24 = vsel %vm1274_vm2, %v8401_v44, %v1288_v57  ;;  %v1191_v47 = vsel %vm1176_vm14, %v8370_v2, %v1190_v35  ;;  %v8520_v46 = vpop.permute.xlu1 %670  ;;  %5968 = vmatprep.subr.msk.bf16.mxu0 %vm586_vm7, %v5930_v23  ;;  %v8523_v0 = vpop.permute.xlu0 %571  ;;  %v2041_v16 = vsel %vm586_vm7, %v5929_v7, 0  ;;  %v643_v2 = vld [vmem:[#allocation2 + $0x94] sm:$0x33] }
 0x11e   : > { %v1327_v40 = vsel %vm7470_vm6, %v1289_v24, %v1326_v32  ;;  %v1229_v42 = vsel %vm7470_vm6, %v1191_v47, %v1228_v27  ;;  %v683_v44 = vrot.slane %v8520_v46, 4  ;;  %v584_v58 = vrot.slane %v8523_v0, 4  ;;  %2514 = vmatpush1.bf16.msra.mxu0 %v2041_v16  ;;  %v6883_v61 = vld [vmem:[#allocation2 + $0xe0] ss:$84 sps:$4 sm:$0xff]   ;;  %v6885_v6 = vld [vmem:[#allocation2 + $0xe4] ss:$84 sps:$4 sm:$0xff]  }
 0x11f   : > { %1328 = vst [vmem:[#allocation2 + $0x2d8] sm:$0x33] %v1327_v40  ;;  %1230 = vst [vmem:[#allocation2 + $0x284] sm:$0x33] %v1229_v42  ;;  %2580 = vmatprep.subr.bf16.mxu1 %v6885_v6 }
 0x120   : > { %v702_v36 = vsel %vm586_vm7, %v682_v53, %v683_v44  ;;  %v604_v45 = vsel %vm586_vm7, %v583_v3, %v584_v58  ;;  %2581 = vmatpush1.bf16.msra.mxu1 %v6883_v61  ;;  %v747_v61 = vld [vmem:[#allocation2 + $0xf8] sm:$0x3] }
 0x121   : > { %v703_v10 = vsel %vm686_vm8, %v8399_v49, %v702_v36  ;;  %v605_v17 = vsel %vm588_vm11, %v8368_v22, %v604_v45  ;;  %v8546_v20 = vpop.permute.xlu1 %866  ;;  %v8548_v15 = vpop.permute.xlu0 %768  ;;  %5969 = vmatmul.mubr.msk.bf16.vlgmr.msra.gmra.mrb[48].mxu0 %vm1990_vm1, %v8439_v56  ;;  %v8561_v22 = vld [vmem:[%s9667_s1 + $0x10] sm:$0xff]  }
 0x122   : > { %v742_v53 = vsel %vm7470_vm6, %v703_v10, %v741_v55  ;;  %v644_v19 = vsel %vm7470_vm6, %v605_v17, %v643_v2  ;;  %v879_v3 = vrot.slane %v8546_v20, 4  ;;  %v781_v49 = vrot.slane %v8548_v15, 4  ;;  %5966 = vmatmul.mubr.msk.bf16.gmra.mrb[40].mxu1 %vm1990_vm1, %v8561_v22  ;;  %v6886_v63 = vld [vmem:[#allocation2 + $0x188] ss:$84 sps:$4 sm:$0xff]   ;;  %v6888_v9 = vld [vmem:[#allocation2 + $0x18c] ss:$84 sps:$4 sm:$0xff]   ;;  %2547 = vmatprep.mubr.bf16.mxu0 %v8443_v28 }
 0x123   : > { %743 = vst [vmem:[#allocation2 + $0xe8] sm:$0x33] %v742_v53  ;;  %645 = vst [vmem:[#allocation2 + $0x94] sm:$0x33] %v644_v19  ;;  %2494 = vmatprep.mubr.bf16.mxu1 %v8443_v28  ;;  %2582 = vmatprep.subr.bf16.mxu1 %v6888_v9  ;;  %v646_v55 = vld [vmem:[#allocation2 + $0x9c] sm:$0x33] }
 0x124   : > { %v898_v60 = vsel %vm586_vm7, %v878_v12, %v879_v3  ;;  %v800_v34 = vsel %vm586_vm7, %v780_v48, %v781_v49  ;;  %2583 = vmatpush1.bf16.msra.mxu1 %v6886_v63  ;;  %v1231_v36 = vld [vmem:[#allocation2 + $0x28c] sm:$0x33] }
 0x125   : > { %v899_v54 = vsel %vm882_vm10, %v8424_v43, %v898_v60  ;;  %v801_v41 = vsel %vm784_vm9, %v8426_v30, %v800_v34  ;;  %v8581_v62 = vpop.permute.xlu1 %1062  ;;  %v8583_v1 = vpop.permute.xlu0 %964  ;;  %v649_v30 = vld [vmem:[#allocation2 + $0xa4] sm:$0x3]  ;;  %v744_v60 = vld [vmem:[#allocation2 + $0xf0] sm:$0x33] }
 0x126   : > { %v938_v12 = vsel %vm7470_vm6, %v899_v54, %v937_v29  ;;  %v840_v48 = vsel %vm7470_vm6, %v801_v41, %v839_v51  ;;  %v1075_v14 = vrot.slane %v8581_v62, 4  ;;  %v977_v43 = vrot.slane %v8583_v1, 4  ;;  %v1441_v11 = vld [vmem:[#allocation2 + $0x2d8] sm:$0xff]  ;;  %v6889_v33 = vld [vmem:[#allocation2 + $0x230] ss:$84 sps:$4 sm:$0xff]  }
 0x127   : > { %939 = vst [vmem:[#allocation2 + $0x190] sm:$0x33] %v938_v12  ;;  %841 = vst [vmem:[#allocation2 + $0x13c] sm:$0x33] %v840_v48  ;;  %v6891_v13 = vld [vmem:[#allocation2 + $0x234] ss:$84 sps:$4 sm:$0xff]   ;;  %v5932_v23 = vcombine.high %v1441_v11, %v1441_v11  ;;  %v5931_v47 = vcombine.low %v1441_v11, %v1441_v11 }
 0x128   : > { %v1094_v32 = vsel %vm586_vm7, %v1074_v39, %v1075_v14  ;;  %v996_v27 = vsel %vm586_vm7, %v976_v21, %v977_v43  ;;  %2584 = vmatprep.subr.bf16.mxu1 %v6891_v13  ;;  %v943_v54 = vld [vmem:[#allocation2 + $0x1a0] sm:$0x3] }
 0x129   : > { %v1095_v7 = vsel %vm1078_vm13, %v8461_v25, %v1094_v32  ;;  %v997_v57 = vsel %vm980_vm12, %v8463_v38, %v996_v27  ;;  %v574_v35 = vpop.permute.xlu1 %573  ;;  %v8605_v24 = vpop.permute.xlu0 %1160  ;;  %5970 = vmatmul.mubr.msk.bf16.gmra.mrb[52].mxu0 %vm1990_vm1, %v8500_v8  ;;  %v8618_v25 = vld [vmem:[%s9667_s1 + $0x18] sm:$0xff]   ;;  %2585 = vmatpush1.bf16.msra.mxu1 %v6889_v33  ;;  %v2047_v19 = vsel %vm586_vm7, %v5931_v47, 0  ;;  %v1329_v41 = vld [vmem:[#allocation2 + $0x2e0] sm:$0x33]  ;;  %v1041_v47 = vld [vmem:[#allocation2 + $0x1f4] sm:$0x3] }
 0x12a   : > { %v1134_v39 = vsel %vm7470_vm6, %v1095_v7, %v1133_v52  ;;  %v1036_v16 = vsel %vm7470_vm6, %v997_v57, %v1035_v26  ;;  %v585_v40 = vrot.slane %v574_v35, 4  ;;  %v650_v21 = vsel %vm7674_vm0, %v574_v35, %v649_v30  ;;  %5967 = vmatmul.mubr.msk.bf16.gmra.mrb[44].mxu1 %vm1990_vm1, %v8618_v25  ;;  %v6893_v38 = vld [vmem:[#allocation2 + $0x40] ss:$84 sps:$4 sm:$0xff]   ;;  %v6895_v42 = vld [vmem:[#allocation2 + $0x44] ss:$84 sps:$4 sm:$0xff]   ;;  %2557 = vmatprep.mubr.bf16.mxu0 %v8443_v28 }
 0x12b   : > { %1135 = vst [vmem:[#allocation2 + $0x238] sm:$0x33] %v1134_v39  ;;  %1037 = vst [vmem:[#allocation2 + $0x1e4] sm:$0x33] %v1036_v16  ;;  %v1173_v2 = vrot.slane %v8605_v24, 4  ;;  %5973 = vmatprep.subr.msk.bf16.mxu1 %vm586_vm7, %v5932_v23  ;;  %2651 = vmatprep.subr.bf16.mxu0 %v6895_v42 }
 0x12c   : > { %651 = vst [vmem:[#allocation2 + $0xa4] sm:$0x3] %v650_v21  ;;  %v606_v6 = vsel %vm586_vm7, %v584_v58, %v585_v40  ;;  %2652 = vmatpush1.bf16.msra.mxu0 %v6893_v38  ;;  %2610 = vmatprep.mubr.bf16.mxu1 %v8443_v28  ;;  %v845_v52 = vld [vmem:[#allocation2 + $0x14c] sm:$0x3]  ;;  %v940_v26 = vld [vmem:[#allocation2 + $0x198] sm:$0x33] }
 0x12d   : > { %v607_v45 = vsel %vm588_vm11, %v8523_v0, %v606_v6  ;;  %v1192_v10 = vsel %vm586_vm7, %v1172_v37, %v1173_v2  ;;  %v673_v17 = vpop.permute.xlu1 %672  ;;  %v8635_v53 = vpop.permute.xlu0 %1258  ;;  %2587 = vmatpush1.bf16.msra.mxu1 %v2047_v19  ;;  %v1139_v7 = vld [vmem:[#allocation2 + $0x248] sm:$0x3]  ;;  %v1136_v40 = vld [vmem:[#allocation2 + $0x240] sm:$0x33]  ;;  %v1335_v42 = vld [vmem:[#allocation2 + $0x2f0] sm:$0x3] }
 0x12e   : > { %v647_v58 = vsel %vm7470_vm6, %v607_v45, %v646_v55  ;;  %v1193_v0 = vsel %vm1176_vm14, %v8487_v5, %v1192_v10  ;;  %v684_v29 = vrot.slane %v673_v17, 4  ;;  %v748_v51 = vsel %vm7674_vm0, %v673_v17, %v747_v61  ;;  %v6897_v63 = vld [vmem:[#allocation2 + $0xe8] ss:$84 sps:$4 sm:$0xff]   ;;  %v6899_v37 = vld [vmem:[#allocation2 + $0xec] ss:$84 sps:$4 sm:$0xff]  }
 0x12f   : > { %648 = vst [vmem:[#allocation2 + $0x9c] sm:$0x33] %v647_v58  ;;  %v1232_v9 = vsel %vm7470_vm6, %v1193_v0, %v1231_v36  ;;  %749 = vst [vmem:[#allocation2 + $0xf8] sm:$0x3] %v748_v51  ;;  %v1271_v34 = vrot.slane %v8635_v53, 4  ;;  %2653 = vmatprep.subr.bf16.mxu0 %v6899_v37 }
 0x130   : > { %1233 = vst [vmem:[#allocation2 + $0x28c] sm:$0x33] %v1232_v9  ;;  %v704_v5 = vsel %vm586_vm7, %v683_v44, %v684_v29  ;;  %2654 = vmatpush1.bf16.msra.mxu0 %v6897_v63  ;;  %v842_v35 = vld [vmem:[#allocation2 + $0x144] sm:$0x33]  ;;  %v1038_v58 = vld [vmem:[#allocation2 + $0x1ec] sm:$0x33] }
 0x131   : > { %v705_v12 = vsel %vm686_vm8, %v8520_v46, %v704_v5  ;;  %v1290_v48 = vsel %vm586_vm7, %v1270_v50, %v1271_v34  ;;  %v869_v11 = vpop.permute.xlu1 %868  ;;  %v771_v30 = vpop.permute.xlu0 %770  ;;  %5971 = vmatmul.mubr.msk.bf16.gmra.mrb[56].mxu0 %vm1990_vm1, %v8561_v22  ;;  %v1237_v0 = vld [vmem:[#allocation2 + $0x29c] sm:$0x3] }
 0x132   : > { %v745_v33 = vsel %vm7470_vm6, %v705_v12, %v744_v60  ;;  %v1291_v44 = vsel %vm1274_vm2, %v8485_v31, %v1290_v48  ;;  %v880_v13 = vrot.slane %v869_v11, 4  ;;  %v944_v46 = vsel %vm7674_vm0, %v869_v11, %v943_v54  ;;  %5974 = vmatmul.mubr.msk.bf16.vlgmr.msra.gmra.mrb[48].mxu1 %vm1990_vm1, %v8439_v56  ;;  %v6900_v50 = vld [vmem:[#allocation2 + $0x190] ss:$84 sps:$4 sm:$0xff]   ;;  %v6902_v32 = vld [vmem:[#allocation2 + $0x194] ss:$84 sps:$4 sm:$0xff]   ;;  %2567 = vmatprep.mubr.bf16.mxu0 %v8443_v28 }
 0x133   : > { %746 = vst [vmem:[#allocation2 + $0xf0] sm:$0x33] %v745_v33  ;;  %v1330_v27 = vsel %vm7470_vm6, %v1291_v44, %v1329_v41  ;;  %945 = vst [vmem:[#allocation2 + $0x1a0] sm:$0x3] %v944_v46  ;;  %v782_v23 = vrot.slane %v771_v30, 4  ;;  %v846_v31 = vsel %vm7674_vm0, %v771_v30, %v845_v52  ;;  %2620 = vmatprep.mubr.bf16.mxu1 %v8443_v28  ;;  %2655 = vmatprep.subr.bf16.mxu0 %v6902_v32 }
 0x134   : > { %1331 = vst [vmem:[#allocation2 + $0x2e0] sm:$0x33] %v1330_v27  ;;  %v900_v57 = vsel %vm586_vm7, %v879_v3, %v880_v13  ;;  %847 = vst [vmem:[#allocation2 + $0x14c] sm:$0x3] %v846_v31  ;;  %2656 = vmatpush1.bf16.msra.mxu0 %v6900_v50  ;;  %v1234_v12 = vld [vmem:[#allocation2 + $0x294] sm:$0x33] }
 0x135   : > { %v901_v39 = vsel %vm882_vm10, %v8546_v20, %v900_v57  ;;  %v802_v16 = vsel %vm586_vm7, %v781_v49, %v782_v23  ;;  %v1065_v21 = vpop.permute.xlu1 %1064  ;;  %v967_v38 = vpop.permute.xlu0 %966  ;;  %v6911_v44 = vld [vmem:[#allocation2 + $0x50] ss:$84 sps:$4 sm:$0xff]  }
 0x136   : > { %v941_v55 = vsel %vm7470_vm6, %v901_v39, %v940_v26  ;;  %v803_v3 = vsel %vm784_vm9, %v8548_v15, %v802_v16  ;;  %v1076_v61 = vrot.slane %v1065_v21, 4  ;;  %v1140_v6 = vsel %vm7674_vm0, %v1065_v21, %v1139_v7  ;;  %v6906_v20 = vld [vmem:[#allocation2 + $0x48] ss:$84 sps:$4 sm:$0xff]   ;;  %v6908_v36 = vld [vmem:[#allocation2 + $0x4c] ss:$84 sps:$4 sm:$0xff]  }
 0x137   : > { %942 = vst [vmem:[#allocation2 + $0x198] sm:$0x33] %v941_v55  ;;  %v843_v49 = vsel %vm7470_vm6, %v803_v3, %v842_v35  ;;  %1141 = vst [vmem:[#allocation2 + $0x248] sm:$0x3] %v1140_v6  ;;  %v978_v45 = vrot.slane %v967_v38, 4  ;;  %v1042_v10 = vsel %vm7674_vm0, %v967_v38, %v1041_v47  ;;  %2724 = vmatprep.subr.bf16.mxu1 %v6908_v36  ;;  %v6927_v35 = vld [vmem:[%s9669_s3 + $0x40] sm:$0xff]  }
 0x138   : > { %v6903_v17 = vld [vmem:[#allocation2 + $0x238] ss:$84 sps:$4 sm:$0xff]   ;;  %v6905_v19 = vld [vmem:[#allocation2 + $0x23c] ss:$84 sps:$4 sm:$0xff]   ;;  %844 = vst [vmem:[#allocation2 + $0x144] sm:$0x33] %v843_v49  ;;  %v1096_v15 = vsel %vm586_vm7, %v1075_v14, %v1076_v61  ;;  %2725 = vmatpush1.bf16.msra.mxu1 %v6906_v20 }
 0x139   : > { %1043 = vst [vmem:[#allocation2 + $0x1f4] sm:$0x3] %v1042_v10  ;;  %v1097_v29 = vsel %vm1078_vm13, %v8581_v62, %v1096_v15  ;;  %v998_v51 = vsel %vm586_vm7, %v977_v43, %v978_v45  ;;  %v1261_v63 = vpop.permute.xlu1 %1260  ;;  %2657 = vmatprep.subr.bf16.mxu0 %v6905_v19  ;;  %v1163_v37 = vpop.permute.xlu0 %1162  ;;  %5972 = vmatmul.mubr.msk.bf16.gmra.mrb[60].mxu0 %vm1990_vm1, %v8618_v25  ;;  %v1332_v43 = vld [vmem:[#allocation2 + $0x2e8] sm:$0x33]  ;;  %v6928_v16 = vld [vmem:[%s9669_s3] sm:$0xff]   ;;  %v6931_v55 = vld [vmem:[%s9669_s3 + $0x50] sm:$0xff]  }
 0x13a   : > { %v1137_v9 = vsel %vm7470_vm6, %v1097_v29, %v1136_v40  ;;  %v999_v14 = vsel %vm980_vm12, %v8583_v1, %v998_v51  ;;  %v1272_v60 = vrot.slane %v1261_v63, 4  ;;  %v1336_v54 = vsel %vm7674_vm0, %v1261_v63, %v1335_v42  ;;  %5975 = vmatmul.mubr.msk.bf16.gmra.mrb[52].mxu1 %vm1990_vm1, %v8500_v8  ;;  %2658 = vmatpush1.bf16.msra.mxu0 %v6903_v17  ;;  %v6929_v40 = vld [vmem:[%s9669_s3 + $0x48] sm:$0xff]   ;;  %v6936_v21 = vld [vmem:[%s9669_s3 + $0xc0] sm:$0xff]   ;;  %v6932_v3 = vld [vmem:[%s9669_s3 + $0x10] sm:$0xff]  }
 0x13b   : > { %1138 = vst [vmem:[#allocation2 + $0x240] sm:$0x33] %v1137_v9  ;;  %v1039_v62 = vsel %vm7470_vm6, %v999_v14, %v1038_v58  ;;  %1337 = vst [vmem:[#allocation2 + $0x2f0] sm:$0x3] %v1336_v54  ;;  %v1174_v5 = vrot.slane %v1163_v37, 4  ;;  %v1238_v1 = vsel %vm7674_vm0, %v1163_v37, %v1237_v0  ;;  %v1442_v41 = vld [vmem:[#allocation2 + $0x2e0] sm:$0xff]  ;;  %2630 = vmatprep.mubr.bf16.mxu1 %v8443_v28  ;;  %2683 = vmatprep.mubr.bf16.mxu0 %v8443_v28 }
 0x13c   : > { %1040 = vst [vmem:[#allocation2 + $0x1ec] sm:$0x33] %v1039_v62  ;;  %v1292_v52 = vsel %vm586_vm7, %v1271_v34, %v1272_v60  ;;  %1239 = vst [vmem:[#allocation2 + $0x29c] sm:$0x3] %v1238_v1  ;;  %v5934_v48 = vcombine.high %v1442_v41, %v1442_v41  ;;  %v5933_v26 = vcombine.low %v1442_v41, %v1442_v41  ;;  %v6930_v42 = vld [vmem:[%s9669_s3 + $0x8] sm:$0xff]   ;;  %v6933_v61 = vld [vmem:[%s9669_s3 + $0x58] sm:$0xff]  }
 0x13d   : > { %v1293_v11 = vsel %vm1274_vm2, %v8635_v53, %v1292_v52  ;;  %v1194_v59 = vsel %vm586_vm7, %v1173_v2, %v1174_v5  ;;  %v6934_v6 = vld [vmem:[%s9669_s3 + $0x18] sm:$0xff]   ;;  %v6935_v20 = vld [vmem:[%s9669_s3 + $0x60] sm:$0xff]   ;;  %v6940_v45 = vld [vmem:[%s9669_s3 + $0xc8] sm:$0xff]  }
 0x13e   : > { %v1333_v30 = vsel %vm7470_vm6, %v1293_v11, %v1332_v43  ;;  %v1195_v33 = vsel %vm1176_vm14, %v8605_v24, %v1194_v59  ;;  %5978 = vmatprep.subr.msk.bf16.mxu0 %vm586_vm7, %v5934_v48  ;;  %v2053_v34 = vsel %vm586_vm7, %v5933_v26, 0  ;;  %v6915_v24 = vld [vmem:[#allocation2 + $0xf8] ss:$84 sps:$4 sm:$0xff]   ;;  %v6937_v36 = vld [vmem:[%s9669_s3 + $0x20] sm:$0xff]   ;;  %v6945_v19 = vld [vmem:[%s9669_s3 + $0x30] sm:$0xff]  }
 0x13f   : > { %1334 = vst [vmem:[#allocation2 + $0x2e8] sm:$0x33] %v1333_v30  ;;  %v1235_v13 = vsel %vm7470_vm6, %v1195_v33, %v1234_v12  ;;  %2660 = vmatpush1.bf16.msra.mxu0 %v2053_v34  ;;  %v6912_v53 = vld [vmem:[#allocation2 + $0xf0] ss:$84 sps:$4 sm:$0xff]   ;;  %v6914_v46 = vld [vmem:[#allocation2 + $0xf4] ss:$84 sps:$4 sm:$0xff]  }
 0x140   : > { %1236 = vst [vmem:[#allocation2 + $0x294] sm:$0x33] %v1235_v13  ;;  %6680 = vmatprep.subr.bf16.mxu0 %v6911_v44  ;;  %2726 = vmatprep.subr.bf16.mxu1 %v6914_v46  ;;  %v6919_v18 = vld [vmem:[#allocation2 + $0x1a0] ss:$84 sps:$4 sm:$0xff]   ;;  %v6941_v10 = vld [vmem:[%s9669_s3 + $0x28] sm:$0xff]   ;;  %v6947_v58 = vld [vmem:[%s9669_s3 + $0x78] sm:$0xff]  }
 0x141   : > { %2727 = vmatpush1.bf16.msra.mxu1 %v6912_v53  ;;  %v6938_v49 = vld [vmem:[%s9669_s3 + $0x80] sm:$0xff]   ;;  %v6942_v17 = vld [vmem:[%s9669_s3 + $0x88] sm:$0xff]   ;;  %v6946_v15 = vld [vmem:[%s9669_s3 + $0x90] sm:$0xff]  }
 0x142   : > { %5976 = vmatmul.mubr.msk.bf16.gmra.mrb[56].mxu1 %vm1990_vm1, %v8561_v22  ;;  %5979 = vmatmul.mubr.msk.bf16.vlgmr.msra.gmra.mrb[64].mxu0 %vm1990_vm1, %v8439_v56  ;;  %v6926_v39 = vld [vmem:[#allocation2 + $0x2f0] ss:$0 sps:$4 sm:$0xff]   ;;  %v6948_v0 = vld [vmem:[%s9669_s3 + $0xd8] sm:$0xff]   ;;  %v6951_v63 = vld [vmem:[%s9669_s3 + $0xe0] sm:$0xff]  }
 0x143   : > { %6681 = vmatpush3.bf16.msra.mxu0 %v6911_v44  ;;  %v6916_v2 = vld [vmem:[#allocation2 + $0x198] ss:$84 sps:$4 sm:$0xff]   ;;  %v6918_v50 = vld [vmem:[#allocation2 + $0x19c] ss:$84 sps:$4 sm:$0xff]   ;;  %2640 = vmatprep.mubr.bf16.mxu1 %v8443_v28  ;;  %v2065_v38 = vsel %vm586_vm7, %v6926_v39, 0  ;;  %v6953_v37 = vld [vmem:[%s9669_s3 + $0xa0] sm:$0xff]  }
 0x144   : > { %6682 = vmatprep.subr.bf16.mxu0 %v6915_v24  ;;  %2728 = vmatprep.subr.bf16.mxu1 %v6918_v50  ;;  %v6924_v7 = vld [vmem:[#allocation2 + $0x248] ss:$84 sps:$4 sm:$0xff]   ;;  %v6959_v60 = vld [vmem:[%s9669_s3 + $0xf0] sm:$0xff]   ;;  %v6968_v5 = vld [vmem:[%s9669_s3 + $0x1c0] sm:$0xff]  }
 0x145   : > { %2693 = vmatprep.mubr.bf16.mxu0 %v8443_v28  ;;  %2729 = vmatpush1.bf16.msra.mxu1 %v6916_v2  ;;  %v6949_v29 = vld [vmem:[%s9669_s3 + $0x98] sm:$0xff]   ;;  %v6955_v9 = vld [vmem:[%s9669_s3 + $0xe8] sm:$0xff]   ;;  %v6961_v54 = vld [vmem:[%s9669_s3 + $0xb0] sm:$0xff]  }
 0x146   : > { %v1443_v32 = vld [vmem:[#allocation2 + $0x2e8] sm:$0xff]  ;;  %v6950_v51 = vld [vmem:[%s9669_s3 + $0x38] sm:$0xff]  }
 0x147   : > { %6683 = vmatpush3.bf16.msra.mxu0 %v6915_v24  ;;  %v6920_v27 = vld [vmem:[#allocation2 + $0x240] ss:$84 sps:$4 sm:$0xff]   ;;  %v6922_v23 = vld [vmem:[#allocation2 + $0x244] ss:$84 sps:$4 sm:$0xff]   ;;  %v5936_v31 = vcombine.high %v1443_v32, %v1443_v32  ;;  %v5935_v57 = vcombine.low %v1443_v32, %v1443_v32  ;;  %v6957_v14 = vld [vmem:[%s9669_s3 + $0xa8] sm:$0xff]  }
 0x148   : > { %6684 = vmatprep.subr.bf16.mxu0 %v6919_v18  ;;  %2730 = vmatprep.subr.bf16.mxu1 %v6922_v23  ;;  %v6963_v62 = vld [vmem:[%s9669_s3 + $0xf8] sm:$0xff]  }
 0x149   : > { %2731 = vmatpush1.bf16.msra.mxu1 %v6920_v27  ;;  %v2059_v47 = vsel %vm586_vm7, %v5935_v57, 0  ;;  %v6965_v43 = vld [vmem:[%s9669_s3 + $0xb8] sm:$0xff]  }
 0x14a   : > { %5977 = vmatmul.mubr.msk.bf16.gmra.mrb[60].mxu1 %vm1990_vm1, %v8618_v25  ;;  %5980 = vmatmul.mubr.msk.bf16.gmra.mrb[68].mxu0 %vm1990_vm1, %v8500_v8  ;;  %v8874_v41 = vpop.permute.xlu0 %1455  ;;  %v8877_v26 = vpop.permute.xlu1 %1460 }
 0x14b   : > { %6685 = vmatpush3.bf16.msra.mxu0 %v6919_v18  ;;  %5983 = vmatprep.subr.msk.bf16.mxu1 %vm586_vm7, %v5936_v31  ;;  %v6954_v18 = vld [vmem:[%s9669_s3 + $0x100] sm:$0xff]   ;;  %v6956_v31 = vld [vmem:[%s9669_s3 + $0x148] sm:$0xff]  }
 0x14c   : > { %6686 = vmatprep.subr.bf16.mxu0 %v6924_v7  ;;  %2703 = vmatprep.mubr.bf16.mxu0 %v8443_v28 }
 0x14d   : > { %2756 = vmatprep.mubr.bf16.mxu1 %v8443_v28  ;;  %2733 = vmatpush1.bf16.msra.mxu1 %v2059_v47 }
 0x14e   : > { %6224 = vmatprep.subr.bf16.mxu1 %v6927_v35  ;;  %v8882_v24 = vpop.permute.xlu1 %1465  ;;  %v8888_v27 = vpop.permute.xlu0 %1470 }
 0x14f   : > { %6687 = vmatpush3.bf16.msra.mxu0 %v6924_v7 }
 0x150   : > { %6722 = vmatprep.subr.msk.bf16.mxu0 %vm586_vm7, %v6926_v39 }
 0x152   : > { %5981 = vmatmul.mubr.msk.bf16.gmra.mrb[72].mxu0 %vm1990_vm1, %v8561_v22  ;;  %5984 = vmatmul.mubr.msk.bf16.vlgmr.msra.gmra.mrb[64].mxu1 %vm1990_vm1, %v8439_v56 }
 0x153   : > { %6689 = vmatpush3.bf16.msra.mxu0 %v2065_v38  ;;  %2713 = vmatprep.mubr.bf16.mxu0 %v8443_v28  ;;  %v6960_v38 = vld [vmem:[%s9669_s3 + $0x150] sm:$0xff]  }
 0x154   : > { %2766 = vmatprep.mubr.bf16.mxu1 %v8443_v28  ;;  %6225 = vmatpush3.bf16.msra.mxu1 %v6928_v16  ;;  %v6958_v16 = vld [vmem:[%s9669_s3 + $0x108] sm:$0xff]  }
 0x155   : > { %6226 = vmatprep.subr.bf16.mxu1 %v6929_v40  ;;  %6264 = vmatprep.subr.bf16.mxu0 %v6936_v21 }
 0x158   : > { %6227 = vmatpush3.bf16.msra.mxu1 %v6930_v42 }
 0x159   : > { %6228 = vmatprep.subr.bf16.mxu1 %v6931_v55 }
 0x15a   : > { %5982 = vmatmul.mubr.msk.bf16.gmra.mrb[76].mxu0 %vm1990_vm1, %v8618_v25  ;;  %5985 = vmatmul.mubr.msk.bf16.gmra.mrb[68].mxu1 %vm1990_vm1, %v8500_v8 }
 0x15b   : > { %2776 = vmatprep.mubr.bf16.mxu1 %v8443_v28  ;;  %6690 = vmatprep.mubr.msk.bf16.mxu0 %vm1990_vm1, %v8439_v56  ;;  %v6939_v56 = vld [vmem:[%s9669_s3 + $0x68] sm:$0xff]  }
 0x15c   : > { %6229 = vmatpush3.bf16.msra.mxu1 %v6932_v3  ;;  %v8902_v3 = vpop.permute.xlu1 %1475 }
 0x15d   : > { %6230 = vmatprep.subr.bf16.mxu1 %v6933_v61 }
 0x160   : > { %6231 = vmatpush3.bf16.msra.mxu1 %v6934_v6  ;;  %v8904_v6 = vpop.permute.xlu0 %1480 }
 0x161   : > { %6232 = vmatprep.subr.bf16.mxu1 %v6935_v20 }
 0x162   : > { %5986 = vmatmul.mubr.msk.bf16.gmra.mrb[72].mxu1 %vm1990_vm1, %v8561_v22  ;;  %6691 = vmatmul.mubr.msk.bf16.vlgmr.msra.gmra.mrb[80].mxu0 %vm1990_vm1, %v8500_v8  ;;  %v6943_v8 = vld [vmem:[%s9669_s3 + $0xd0] sm:$0xff]  }
 0x163   : > { %2786 = vmatprep.mubr.bf16.mxu1 %v8443_v28  ;;  %6694 = vmatprep.mubr.msk.bf16.mxu0 %vm1990_vm1, %v8561_v22  ;;  %v6944_v22 = vld [vmem:[%s9669_s3 + $0x70] sm:$0xff]  }
 0x164   : > { %6233 = vmatpush3.bf16.msra.mxu1 %v6937_v36  ;;  %6265 = vmatpush3.bf16.msra.mxu0 %v6938_v49 }
 0x165   : > { %6234 = vmatprep.subr.bf16.mxu1 %v6939_v56  ;;  %6266 = vmatprep.subr.bf16.mxu0 %v6940_v45 }
 0x168   : > { %6235 = vmatpush3.bf16.msra.mxu1 %v6941_v10  ;;  %6267 = vmatpush3.bf16.msra.mxu0 %v6942_v17  ;;  %v6962_v10 = vld [vmem:[%s9669_s3 + $0x110] sm:$0xff]  }
 0x169   : > { %6268 = vmatprep.subr.bf16.mxu0 %v6943_v8  ;;  %6236 = vmatprep.subr.bf16.mxu1 %v6944_v22 }
 0x16a   : > { %5987 = vmatmul.mubr.msk.bf16.gmra.mrb[76].mxu1 %vm1990_vm1, %v8618_v25  ;;  %6695 = vmatmul.mubr.msk.bf16.gmra.mrb[84].mxu0 %vm1990_vm1, %v8618_v25  ;;  %v6952_v25 = vld [vmem:[%s9669_s3 + $0x140] sm:$0xff]  }
 0x16c   : > { %6237 = vmatpush3.bf16.msra.mxu1 %v6945_v19  ;;  %6269 = vmatpush3.bf16.msra.mxu0 %v6946_v15  ;;  %v6964_v15 = vld [vmem:[%s9669_s3 + $0x158] sm:$0xff]  }
 0x16d   : > { %6238 = vmatprep.subr.bf16.mxu1 %v6947_v58  ;;  %6270 = vmatprep.subr.bf16.mxu0 %v6948_v0 }
 0x170   : > { %6271 = vmatpush3.bf16.msra.mxu0 %v6949_v29  ;;  %6239 = vmatpush3.bf16.msra.mxu1 %v6950_v51 }
 0x171   : > { %6272 = vmatprep.subr.bf16.mxu0 %v6951_v63  ;;  %6304 = vmatprep.subr.bf16.mxu1 %v6952_v25 }
 0x174   : > { %6273 = vmatpush3.bf16.msra.mxu0 %v6953_v37 }
 0x175   : > { %6274 = vmatprep.subr.bf16.mxu0 %v6955_v9 }
 0x178   : > { %6275 = vmatpush3.bf16.msra.mxu0 %v6957_v14 }
 0x179   : > { %6276 = vmatprep.subr.bf16.mxu0 %v6959_v60 }
 0x17c   : > { %6277 = vmatpush3.bf16.msra.mxu0 %v6961_v54  ;;  %v6966_v54 = vld [vmem:[%s9669_s3 + $0x118] sm:$0xff]  }
 0x17d   : > { %6278 = vmatprep.subr.bf16.mxu0 %v6963_v62 }
 0x180   : > { %6279 = vmatpush3.bf16.msra.mxu0 %v6965_v43 }
 0x181   : > { %6344 = vmatprep.subr.bf16.mxu0 %v6968_v5 }
 0x194   : > { %v2101_v1 = vpop.f32.mrb[0].mxu0 }
 0x195   : > { %v2103_v52 = vpop.f32.mrb[1].mxu0  ;;  %v2102_v12 = vadd.f32 %v2101_v1, %v8874_v41 }
 0x196   : > { %v2105_v48 = vpop.f32.mrb[2].mxu0  ;;  %v2104_v11 = vadd.f32 %v2103_v52, %v8874_v41  ;;  %v6967_v52 = vld [vmem:[%s9669_s3 + $0x160] sm:$0xff]  }
 0x197   : > { %v2107_v59 = vpop.f32.mrb[3].mxu0  ;;  %v2106_v30 = vadd.f32 %v2105_v48, %v8877_v26  ;;  %v2862_v34 = vmax.f32 %v2102_v12, 0.0  ;;  %v8926_v12 = vpop.permute.xlu1 %1485 }
 0x198   : > { %v2108_v33 = vadd.f32 %v2107_v59, %v8877_v26  ;;  %v2863_v53 = vmax.f32 %v2104_v11, 0.0 }
 0x199   : > { %v2883_v44 = vmax.f32 %v2106_v30, 0.0  ;;  %v8928_v30 = vpop.permute.xlu0 %1490 }
 0x19a   : > { %v2884_v13 = vmax.f32 %v2108_v33, 0.0 }
 0x19b   : > { %v3030_v46 = vpack.c.bf16 %v2883_v44, %v2862_v34 }
 0x19c   : > { %v2111_v2 = vpop.f32.mrb[4].mxu0  ;;  %v3031_v50 = vpack.c.bf16 %v2884_v13, %v2863_v53  ;;  %v6970_v13 = vld [vmem:[%s9669_s3 + $0x180] sm:$0xff]  }
 0x19d   : > { %v2112_v32 = vadd.f32 %v2111_v2, %v8882_v24  ;;  %v2113_v23 = vpop.f32.mrb[5].mxu0 }
 0x19e   : > { %v2114_v7 = vadd.f32 %v2113_v23, %v8882_v24  ;;  %v2115_v57 = vpop.f32.mrb[6].mxu0  ;;  %4490 = vmatprep.mubr.bf16.mxu1 %v3031_v50 }
 0x19f   : > { %v2116_v35 = vadd.f32 %v2115_v57, %v8888_v27  ;;  %v2117_v47 = vpop.f32.mrb[7].mxu0  ;;  %4491 = vmatmul.mubr.bf16.vlgmr.msra.gmra.mrb[80].mxu1 %v3030_v46  ;;  %v2904_v40 = vmax.f32 %v2112_v32, 0.0  ;;  %v6972_v32 = vld [vmem:[%s9669_s3 + $0x1c8] sm:$0xff]  }
 0x1a0   : > { %v2118_v39 = vadd.f32 %v2117_v47, %v8888_v27  ;;  %6305 = vmatpush3.bf16.msra.mxu1 %v6954_v18  ;;  %v2905_v42 = vmax.f32 %v2114_v7, 0.0  ;;  %v6969_v18 = vld [vmem:[%s9669_s3 + $0x120] sm:$0xff]  }
 0x1a1   : > { %v2925_v21 = vmax.f32 %v2116_v35, 0.0  ;;  %6306 = vmatprep.subr.bf16.mxu1 %v6956_v31  ;;  %v6971_v35 = vld [vmem:[%s9669_s3 + $0x168] sm:$0xff]  }
 0x1a2   : > { %v2926_v55 = vmax.f32 %v2118_v39, 0.0 }
 0x1a3   : > { %v3051_v61 = vpack.c.bf16 %v2925_v21, %v2904_v40  ;;  %v2174_v20 = vpop.f32.mrb[0].mxu1 }
 0x1a4   : > { %v3052_v36 = vpack.c.bf16 %v2926_v55, %v2905_v42  ;;  %v2121_v49 = vpop.f32.mrb[8].mxu0  ;;  %v2175_v56 = vadd.f32 %v2174_v20, %v8874_v41  ;;  %6307 = vmatpush3.bf16.msra.mxu1 %v6958_v16  ;;  %v2176_v45 = vpop.f32.mrb[1].mxu1  ;;  %v6974_v55 = vld [vmem:[%s9669_s3 + $0x188] sm:$0xff]  }
 0x1a5   : > { %v2122_v17 = vadd.f32 %v2121_v49, %v8902_v3  ;;  %v2123_v8 = vpop.f32.mrb[9].mxu0  ;;  %v2177_v22 = vadd.f32 %v2176_v45, %v8874_v41  ;;  %v2178_v19 = vpop.f32.mrb[2].mxu1  ;;  %6308 = vmatprep.subr.bf16.mxu1 %v6960_v38  ;;  %v6973_v49 = vld [vmem:[%s9669_s3 + $0x128] sm:$0xff]  }
 0x1a6   : > { %v2124_v58 = vadd.f32 %v2123_v8, %v8902_v3  ;;  %v2125_v0 = vpop.f32.mrb[10].mxu0  ;;  %v2179_v29 = vadd.f32 %v2178_v19, %v8877_v26  ;;  %4498 = vmatprep.mubr.bf16.mxu1 %v3052_v36  ;;  %v2180_v51 = vpop.f32.mrb[3].mxu1  ;;  %v2864_v9 = vmax.f32 %v2175_v56, 0.0  ;;  %v6976_v56 = vld [vmem:[%s9669_s3 + $0x1d0] sm:$0xff]  }
 0x1a7   : > { %v2126_v63 = vadd.f32 %v2125_v0, %v8904_v6  ;;  %v2127_v25 = vpop.f32.mrb[11].mxu0  ;;  %v2181_v37 = vadd.f32 %v2180_v51, %v8877_v26  ;;  %4499 = vmatmul.mubr.bf16.gmra.mrb[84].mxu1 %v3051_v61  ;;  %v2946_v62 = vmax.f32 %v2122_v17, 0.0  ;;  %v2865_v43 = vmax.f32 %v2177_v22, 0.0  ;;  %v6975_v22 = vld [vmem:[%s9669_s3 + $0x170] sm:$0xff]  }
 0x1a8   : > { %v2885_v14 = vmax.f32 %v2179_v29, 0.0  ;;  %v2128_v60 = vadd.f32 %v2127_v25, %v8904_v6  ;;  %6309 = vmatpush3.bf16.msra.mxu1 %v6962_v10  ;;  %v2947_v48 = vmax.f32 %v2124_v58, 0.0 }
 0x1a9   : > { %v2967_v5 = vmax.f32 %v2126_v63, 0.0  ;;  %v2886_v1 = vmax.f32 %v2181_v37, 0.0  ;;  %6310 = vmatprep.subr.bf16.mxu1 %v6964_v15  ;;  %v6978_v63 = vld [vmem:[%s9669_s3 + $0x190] sm:$0xff]  }
 0x1aa   : > { %v3032_v11 = vpack.c.bf16 %v2885_v14, %v2864_v9  ;;  %v2968_v59 = vmax.f32 %v2128_v60, 0.0  ;;  %v6977_v60 = vld [vmem:[%s9669_s3 + $0x130] sm:$0xff]  }
 0x1ab   : > { %v3072_v33 = vpack.c.bf16 %v2967_v5, %v2946_v62  ;;  %v3033_v34 = vpack.c.bf16 %v2886_v1, %v2865_v43  ;;  %v2184_v44 = vpop.f32.mrb[4].mxu1 }
 0x1ac   : > { %v3073_v53 = vpack.c.bf16 %v2968_v59, %v2947_v48  ;;  %v2131_v46 = vpop.f32.mrb[12].mxu0  ;;  %v2185_v2 = vadd.f32 %v2184_v44, %v8882_v24  ;;  %6311 = vmatpush3.bf16.msra.mxu1 %v6966_v54  ;;  %v2186_v50 = vpop.f32.mrb[5].mxu1  ;;  %v6980_v54 = vld [vmem:[%s9669_s3 + $0x1d8] sm:$0xff]  }
 0x1ad   : > { %v2132_v23 = vadd.f32 %v2131_v46, %v8926_v12  ;;  %v2133_v31 = vpop.f32.mrb[13].mxu0  ;;  %v2187_v7 = vadd.f32 %v2186_v50, %v8882_v24  ;;  %v2188_v57 = vpop.f32.mrb[6].mxu1  ;;  %4555 = vmatprep.mubr.bf16.mxu0 %v3033_v34  ;;  %6312 = vmatprep.subr.bf16.mxu1 %v6967_v52  ;;  %v6979_v52 = vld [vmem:[%s9669_s3 + $0x178] sm:$0xff]  }
 0x1ae   : > { %v2134_v47 = vadd.f32 %v2133_v31, %v8926_v12  ;;  %v2135_v39 = vpop.f32.mrb[14].mxu0  ;;  %v2189_v16 = vadd.f32 %v2188_v57, %v8888_v27  ;;  %4506 = vmatprep.mubr.bf16.mxu1 %v3073_v53  ;;  %v2190_v40 = vpop.f32.mrb[7].mxu1  ;;  %4556 = vmatmul.mubr.bf16.vlgmr.msra.gmra.mrb[88].mxu0 %v3032_v11  ;;  %v2906_v61 = vmax.f32 %v2185_v2, 0.0  ;;  %v6982_v53 = vld [vmem:[%s9669_s3 + $0x198] sm:$0xff]  }
 0x1af   : > { %v2136_v21 = vadd.f32 %v2135_v39, %v8928_v30  ;;  %v2137_v38 = vpop.f32.mrb[15].mxu0  ;;  %v2191_v42 = vadd.f32 %v2190_v40, %v8888_v27  ;;  %4507 = vmatmul.mubr.bf16.gmra.mrb[88].mxu1 %v3072_v33  ;;  %6345 = vmatpush3.bf16.msra.mxu0 %v6970_v13  ;;  %v2988_v45 = vmax.f32 %v2132_v23, 0.0  ;;  %v2907_v10 = vmax.f32 %v2187_v7, 0.0 }
 0x1b0   : > { %v2927_v20 = vmax.f32 %v2189_v16, 0.0  ;;  %v2138_v36 = vadd.f32 %v2137_v38, %v8928_v30  ;;  %6313 = vmatpush3.bf16.msra.mxu1 %v6969_v18  ;;  %6346 = vmatprep.subr.bf16.mxu0 %v6972_v32  ;;  %v2989_v19 = vmax.f32 %v2134_v47, 0.0  ;;  %v6981_v18 = vld [vmem:[%s9669_s3 + $0x138] sm:$0xff]   ;;  %v6983_v32 = vld [vmem:[%s9669_s3 + $0x1e0] sm:$0xff]  }
 0x1b1   : > { %v3009_v17 = vmax.f32 %v2136_v21, 0.0  ;;  %v2928_v8 = vmax.f32 %v2191_v42, 0.0  ;;  %6314 = vmatprep.subr.bf16.mxu1 %v6971_v35  ;;  %v6984_v35 = vld [vmem:[%s9669_s3 + $0x240] sm:$0xff]  }
 0x1b2   : > { %v3053_v15 = vpack.c.bf16 %v2927_v20, %v2906_v61  ;;  %v3010_v58 = vmax.f32 %v2138_v36, 0.0  ;;  %v6985_v42 = vld [vmem:[%s9669_s3 + $0x1a0] sm:$0xff]  }
 0x1b3   : > { %v3093_v0 = vpack.c.bf16 %v3009_v17, %v2988_v45  ;;  %v3054_v29 = vpack.c.bf16 %v2928_v8, %v2907_v10  ;;  %v2194_v51 = vpop.f32.mrb[8].mxu1  ;;  %6347 = vmatpush3.bf16.msra.mxu0 %v6974_v55 }
 0x1b4   : > { %v3094_v25 = vpack.c.bf16 %v3010_v58, %v2989_v19  ;;  %v2195_v37 = vadd.f32 %v2194_v51, %v8902_v3  ;;  %v2247_v9 = vpop.f32.mrb[16].mxu0  ;;  %6315 = vmatpush3.bf16.msra.mxu1 %v6973_v49  ;;  %v2196_v14 = vpop.f32.mrb[9].mxu1  ;;  %6348 = vmatprep.subr.bf16.mxu0 %v6976_v56  ;;  %v6986_v49 = vld [vmem:[%s9669_s3 + $0x200] sm:$0xff]   ;;  %v6987_v56 = vld [vmem:[%s9669_s3 + $0x1e8] sm:$0xff]  }
 0x1b5   : > { %v2248_v62 = vadd.f32 %v2247_v9, %v8874_v41  ;;  %v2197_v43 = vadd.f32 %v2196_v14, %v8902_v3  ;;  %v2249_v5 = vpop.f32.mrb[17].mxu0  ;;  %v2198_v1 = vpop.f32.mrb[10].mxu1  ;;  %4563 = vmatprep.mubr.bf16.mxu0 %v3054_v29  ;;  %6316 = vmatprep.subr.bf16.mxu1 %v6975_v22  ;;  %v6988_v22 = vld [vmem:[%s9669_s3 + $0x248] sm:$0xff]  }
 0x1b6   : > { %v2250_v48 = vadd.f32 %v2249_v5, %v8874_v41  ;;  %v2199_v11 = vadd.f32 %v2198_v1, %v8904_v6  ;;  %v2251_v59 = vpop.f32.mrb[18].mxu0  ;;  %4514 = vmatprep.mubr.bf16.mxu1 %v3094_v25  ;;  %v2200_v33 = vpop.f32.mrb[11].mxu1  ;;  %4564 = vmatmul.mubr.bf16.gmra.mrb[92].mxu0 %v3053_v15  ;;  %v2948_v46 = vmax.f32 %v2195_v37, 0.0  ;;  %v6989_v25 = vld [vmem:[%s9669_s3 + $0x1a8] sm:$0xff]  }
 0x1b7   : > { %v2252_v34 = vadd.f32 %v2251_v59, %v8877_v26  ;;  %v2201_v44 = vadd.f32 %v2200_v33, %v8904_v6  ;;  %v2253_v13 = vpop.f32.mrb[19].mxu0  ;;  %4515 = vmatmul.mubr.bf16.gmra.mrb[92].mxu1 %v3093_v0  ;;  %6349 = vmatpush3.bf16.msra.mxu0 %v6978_v63  ;;  %v2866_v23 = vmax.f32 %v2248_v62, 0.0  ;;  %v2949_v31 = vmax.f32 %v2197_v43, 0.0 }
 0x1b8   : > { %v2969_v2 = vmax.f32 %v2199_v11, 0.0  ;;  %v2254_v50 = vadd.f32 %v2253_v13, %v8877_v26  ;;  %6317 = vmatpush3.bf16.msra.mxu1 %v6977_v60  ;;  %6350 = vmatprep.subr.bf16.mxu0 %v6980_v54  ;;  %v2867_v47 = vmax.f32 %v2250_v48, 0.0  ;;  %v6990_v60 = vld [vmem:[%s9669_s3 + $0x208] sm:$0xff]   ;;  %v6991_v54 = vld [vmem:[%s9669_s3 + $0x1f0] sm:$0xff]  }
 0x1b9   : > { %v2887_v7 = vmax.f32 %v2252_v34, 0.0  ;;  %v2970_v57 = vmax.f32 %v2201_v44, 0.0  ;;  %6318 = vmatprep.subr.bf16.mxu1 %v6979_v52  ;;  %v6992_v52 = vld [vmem:[%s9669_s3 + $0x250] sm:$0xff]  }
 0x1ba   : > { %v3074_v39 = vpack.c.bf16 %v2969_v2, %v2948_v46  ;;  %v2888_v16 = vmax.f32 %v2254_v50, 0.0  ;;  %v6993_v44 = vld [vmem:[%s9669_s3 + $0x1b0] sm:$0xff]   ;;  %v6995_v2 = vld [vmem:[%s9669_s3 + $0x1f8] sm:$0xff]  }
 0x1bb   : > { %v3034_v40 = vpack.c.bf16 %v2887_v7, %v2866_v23  ;;  %v3075_v21 = vpack.c.bf16 %v2970_v57, %v2949_v31  ;;  %v2204_v38 = vpop.f32.mrb[12].mxu1  ;;  %6351 = vmatpush3.bf16.msra.mxu0 %v6982_v53  ;;  %v6994_v46 = vld [vmem:[%s9669_s3 + $0x210] sm:$0xff]   ;;  %v6996_v23 = vld [vmem:[%s9669_s3 + $0x258] sm:$0xff]  }
 0x1bc   : > { %v3035_v55 = vpack.c.bf16 %v2888_v16, %v2867_v47  ;;  %v2205_v61 = vadd.f32 %v2204_v38, %v8926_v12  ;;  %v2257_v20 = vpop.f32.mrb[20].mxu0  ;;  %6319 = vmatpush3.bf16.msra.mxu1 %v6981_v18  ;;  %v2206_v36 = vpop.f32.mrb[13].mxu1  ;;  %6352 = vmatprep.subr.bf16.mxu0 %v6983_v32 }
 0x1bd   : > { %v2258_v45 = vadd.f32 %v2257_v20, %v8882_v24  ;;  %v2207_v10 = vadd.f32 %v2206_v36, %v8926_v12  ;;  %v2259_v17 = vpop.f32.mrb[21].mxu0  ;;  %v2208_v8 = vpop.f32.mrb[14].mxu1  ;;  %4571 = vmatprep.mubr.bf16.mxu0 %v3075_v21  ;;  %6384 = vmatprep.subr.bf16.mxu1 %v6984_v35  ;;  %v6997_v21 = vld [vmem:[%s9669_s3 + $0x1b8] sm:$0xff]   ;;  %v7000_v20 = vld [vmem:[%s9669_s3 + $0x2c0] sm:$0xff]  }
 0x1be   : > { %v2260_v19 = vadd.f32 %v2259_v17, %v8882_v24  ;;  %v2209_v15 = vadd.f32 %v2208_v8, %v8928_v30  ;;  %v2261_v58 = vpop.f32.mrb[22].mxu0  ;;  %4620 = vmatprep.mubr.bf16.mxu1 %v3035_v55  ;;  %v2210_v0 = vpop.f32.mrb[15].mxu1  ;;  %4572 = vmatmul.mubr.bf16.gmra.mrb[96].mxu0 %v3074_v39  ;;  %v2990_v37 = vmax.f32 %v2205_v61, 0.0  ;;  %v6998_v61 = vld [vmem:[%s9669_s3 + $0x218] sm:$0xff]  }
 0x1bf   : > { %v2262_v29 = vadd.f32 %v2261_v58, %v8888_v27  ;;  %v2211_v51 = vadd.f32 %v2210_v0, %v8928_v30  ;;  %v2263_v63 = vpop.f32.mrb[23].mxu0  ;;  %4621 = vmatmul.mubr.bf16.vlgmr.msra.gmra.mrb[96].mxu1 %v3034_v40  ;;  %6353 = vmatpush3.bf16.msra.mxu0 %v6985_v42  ;;  %v2908_v62 = vmax.f32 %v2258_v45, 0.0  ;;  %v2991_v43 = vmax.f32 %v2207_v10, 0.0  ;;  %v6999_v45 = vld [vmem:[%s9669_s3 + $0x260] sm:$0xff]  }
 0x1c0   : > { %v3011_v9 = vmax.f32 %v2209_v15, 0.0  ;;  %v2264_v14 = vadd.f32 %v2263_v63, %v8888_v27  ;;  %6385 = vmatpush3.bf16.msra.mxu1 %v6986_v49  ;;  %6354 = vmatprep.subr.bf16.mxu0 %v6987_v56  ;;  %v2909_v48 = vmax.f32 %v2260_v19, 0.0  ;;  %v7001_v63 = vld [vmem:[%s9669_s3 + $0x220] sm:$0xff]  }
 0x1c1   : > { %v2929_v5 = vmax.f32 %v2262_v29, 0.0  ;;  %v3012_v1 = vmax.f32 %v2211_v51, 0.0  ;;  %6386 = vmatprep.subr.bf16.mxu1 %v6988_v22 }
 0x1c2   : > { %v3095_v11 = vpack.c.bf16 %v3011_v9, %v2990_v37  ;;  %v2930_v59 = vmax.f32 %v2264_v14, 0.0 }
 0x1c3   : > { %v3055_v33 = vpack.c.bf16 %v2929_v5, %v2908_v62  ;;  %v3096_v34 = vpack.c.bf16 %v3012_v1, %v2991_v43  ;;  %6355 = vmatpush3.bf16.msra.mxu0 %v6989_v25  ;;  %v2320_v18 = vpop.f32.mrb[16].mxu1 }
 0x1c4   : > { %v3056_v13 = vpack.c.bf16 %v2930_v59, %v2909_v48  ;;  %v2267_v53 = vpop.f32.mrb[24].mxu0  ;;  %6387 = vmatpush3.bf16.msra.mxu1 %v6990_v60  ;;  %6356 = vmatprep.subr.bf16.mxu0 %v6991_v54  ;;  %v2321_v31 = vadd.f32 %v2320_v18, %v8874_v41  ;;  %v2322_v57 = vpop.f32.mrb[17].mxu1  ;;  %v7002_v60 = vld [vmem:[%s9669_s3 + $0x280] sm:$0xff]   ;;  %v7003_v54 = vld [vmem:[%s9669_s3 + $0x268] sm:$0xff]  }
 0x1c5   : > { %v2268_v50 = vadd.f32 %v2267_v53, %v8902_v3  ;;  %v2269_v32 = vpop.f32.mrb[25].mxu0  ;;  %4579 = vmatprep.mubr.bf16.mxu0 %v3096_v34  ;;  %6388 = vmatprep.subr.bf16.mxu1 %v6992_v52  ;;  %v2323_v47 = vadd.f32 %v2322_v57, %v8874_v41  ;;  %v2324_v16 = vpop.f32.mrb[18].mxu1  ;;  %v7004_v52 = vld [vmem:[%s9669_s3 + $0x2c8] sm:$0xff]  }
 0x1c6   : > { %v2270_v7 = vadd.f32 %v2269_v32, %v8902_v3  ;;  %v2271_v35 = vpop.f32.mrb[26].mxu0  ;;  %4628 = vmatprep.mubr.bf16.mxu1 %v3056_v13  ;;  %4580 = vmatmul.mubr.bf16.gmra.mrb[100].mxu0 %v3095_v11  ;;  %v2325_v38 = vadd.f32 %v2324_v16, %v8877_v26  ;;  %v2326_v55 = vpop.f32.mrb[19].mxu1  ;;  %v2868_v10 = vmax.f32 %v2321_v31, 0.0  ;;  %v7005_v53 = vld [vmem:[%s9669_s3 + $0x228] sm:$0xff]   ;;  %v7007_v32 = vld [vmem:[%s9669_s3 + $0x270] sm:$0xff]  }
 0x1c7   : > { %v2272_v39 = vadd.f32 %v2271_v35, %v8904_v6  ;;  %v2273_v40 = vpop.f32.mrb[27].mxu0  ;;  %4629 = vmatmul.mubr.bf16.gmra.mrb[100].mxu1 %v3055_v33  ;;  %6357 = vmatpush3.bf16.msra.mxu0 %v6993_v44  ;;  %v2950_v36 = vmax.f32 %v2268_v50, 0.0  ;;  %v2327_v56 = vadd.f32 %v2326_v55, %v8877_v26  ;;  %v2869_v19 = vmax.f32 %v2323_v47, 0.0  ;;  %v7006_v18 = vld [vmem:[%s9669_s3 + $0x288] sm:$0xff]   ;;  %v7008_v35 = vld [vmem:[%s9669_s3 + $0x2d0] sm:$0xff]  }
 0x1c8   : > { %v2274_v42 = vadd.f32 %v2273_v40, %v8904_v6  ;;  %6389 = vmatpush3.bf16.msra.mxu1 %v6994_v46  ;;  %6358 = vmatprep.subr.bf16.mxu0 %v6995_v2  ;;  %v2951_v17 = vmax.f32 %v2270_v7, 0.0  ;;  %v2889_v8 = vmax.f32 %v2325_v38, 0.0  ;;  %v7009_v38 = vld [vmem:[%s9669_s3 + $0x230] sm:$0xff]  }
 0x1c9   : > { %v2971_v49 = vmax.f32 %v2272_v39, 0.0  ;;  %6390 = vmatprep.subr.bf16.mxu1 %v6996_v23  ;;  %v2890_v58 = vmax.f32 %v2327_v56, 0.0 }
 0x1ca   : > { %v2972_v22 = vmax.f32 %v2274_v42, 0.0  ;;  %v3036_v0 = vpack.c.bf16 %v2889_v8, %v2868_v10 }
 0x1cb   : > { %v3076_v15 = vpack.c.bf16 %v2971_v49, %v2950_v36  ;;  %6359 = vmatpush3.bf16.msra.mxu0 %v6997_v21  ;;  %v3037_v25 = vpack.c.bf16 %v2890_v58, %v2869_v19  ;;  %v2330_v9 = vpop.f32.mrb[20].mxu1  ;;  %v7011_v36 = vld [vmem:[%s9669_s3 + $0x278] sm:$0xff]  }
 0x1cc   : > { %v3077_v29 = vpack.c.bf16 %v2972_v22, %v2951_v17  ;;  %v2277_v51 = vpop.f32.mrb[28].mxu0  ;;  %6391 = vmatpush3.bf16.msra.mxu1 %v6998_v61  ;;  %6424 = vmatprep.subr.bf16.mxu0 %v7000_v20  ;;  %v2331_v62 = vadd.f32 %v2330_v9, %v8882_v24  ;;  %v2332_v5 = vpop.f32.mrb[21].mxu1  ;;  %v7010_v20 = vld [vmem:[%s9669_s3 + $0x290] sm:$0xff]   ;;  %v7012_v17 = vld [vmem:[%s9669_s3 + $0x2d8] sm:$0xff]  }
 0x1cd   : > { %v2278_v37 = vadd.f32 %v2277_v51, %v8926_v12  ;;  %v2279_v14 = vpop.f32.mrb[29].mxu0  ;;  %6392 = vmatprep.subr.bf16.mxu1 %v6999_v45  ;;  %v2333_v48 = vadd.f32 %v2332_v5, %v8882_v24  ;;  %v2334_v59 = vpop.f32.mrb[22].mxu1  ;;  %4685 = vmatprep.mubr.bf16.mxu0 %v3037_v25  ;;  %v7014_v9 = vld [vmem:[%s9669_s3 + $0x298] sm:$0xff]   ;;  %v7015_v5 = vld [vmem:[%s9669_s3 + $0x2e0] sm:$0xff]  }
 0x1ce   : > { %v2280_v43 = vadd.f32 %v2279_v14, %v8926_v12  ;;  %v2281_v1 = vpop.f32.mrb[30].mxu0  ;;  %4636 = vmatprep.mubr.bf16.mxu1 %v3077_v29  ;;  %v2335_v34 = vadd.f32 %v2334_v59, %v8888_v27  ;;  %v2336_v13 = vpop.f32.mrb[23].mxu1  ;;  %4686 = vmatmul.mubr.bf16.vlgmr.msra.gmra.mrb[104].mxu0 %v3036_v0  ;;  %v2910_v23 = vmax.f32 %v2331_v62, 0.0  ;;  %v7016_v14 = vld [vmem:[%s9669_s3 + $0x340] sm:$0xff]  }
 0x1cf   : > { %v2282_v11 = vadd.f32 %v2281_v1, %v8928_v30  ;;  %v2283_v33 = vpop.f32.mrb[31].mxu0  ;;  %4637 = vmatmul.mubr.bf16.gmra.mrb[104].mxu1 %v3076_v15  ;;  %v2992_v46 = vmax.f32 %v2278_v37, 0.0  ;;  %v2337_v50 = vadd.f32 %v2336_v13, %v8888_v27  ;;  %6425 = vmatpush3.bf16.msra.mxu0 %v7002_v60  ;;  %v2911_v47 = vmax.f32 %v2333_v48, 0.0 }
 0x1d0   : > { %v2284_v44 = vadd.f32 %v2283_v33, %v8928_v30  ;;  %6393 = vmatpush3.bf16.msra.mxu1 %v7001_v63  ;;  %v2993_v31 = vmax.f32 %v2280_v43, 0.0  ;;  %v2931_v7 = vmax.f32 %v2335_v34, 0.0  ;;  %6426 = vmatprep.subr.bf16.mxu0 %v7004_v52  ;;  %v7013_v63 = vld [vmem:[%s9669_s3 + $0x238] sm:$0xff]  }
 0x1d1   : > { %v3013_v2 = vmax.f32 %v2282_v11, 0.0  ;;  %6394 = vmatprep.subr.bf16.mxu1 %v7003_v54  ;;  %v2932_v16 = vmax.f32 %v2337_v50, 0.0 }
 0x1d2   : > { %v3014_v57 = vmax.f32 %v2284_v44, 0.0  ;;  %v3057_v40 = vpack.c.bf16 %v2931_v7, %v2910_v23  ;;  %v7020_v7 = vld [vmem:[%s9669_s3 + $0x348] sm:$0xff]  }
 0x1d3   : > { %v3097_v39 = vpack.c.bf16 %v3013_v2, %v2992_v46  ;;  %v3058_v42 = vpack.c.bf16 %v2932_v16, %v2911_v47  ;;  %v2340_v55 = vpop.f32.mrb[24].mxu1  ;;  %6427 = vmatpush3.bf16.msra.mxu0 %v7006_v18  ;;  %v7017_v46 = vld [vmem:[%s9669_s3 + $0x2a0] sm:$0xff]  }
 0x1d4   : > { %v3098_v21 = vpack.c.bf16 %v3014_v57, %v2993_v31  ;;  %6395 = vmatpush3.bf16.msra.mxu1 %v7005_v53  ;;  %v2393_v61 = vpop.f32.mrb[32].mxu0  ;;  %v2341_v49 = vadd.f32 %v2340_v55, %v8902_v3  ;;  %v2342_v45 = vpop.f32.mrb[25].mxu1  ;;  %6428 = vmatprep.subr.bf16.mxu0 %v7008_v35  ;;  %v7018_v2 = vld [vmem:[%s9669_s3 + $0x300] sm:$0xff]   ;;  %v7019_v31 = vld [vmem:[%s9669_s3 + $0x2e8] sm:$0xff]  }
 0x1d5   : > { %6396 = vmatprep.subr.bf16.mxu1 %v7007_v32  ;;  %v2394_v56 = vadd.f32 %v2393_v61, %v8874_v41  ;;  %v2395_v10 = vpop.f32.mrb[33].mxu0  ;;  %v2343_v8 = vadd.f32 %v2342_v45, %v8902_v3  ;;  %v2344_v19 = vpop.f32.mrb[26].mxu1  ;;  %4693 = vmatprep.mubr.bf16.mxu0 %v3058_v42  ;;  %v7021_v61 = vld [vmem:[%s9669_s3 + $0x2a8] sm:$0xff]  }
 0x1d6   : > { %4644 = vmatprep.mubr.bf16.mxu1 %v3098_v21  ;;  %v2396_v22 = vadd.f32 %v2395_v10, %v8874_v41  ;;  %v2397_v15 = vpop.f32.mrb[34].mxu0  ;;  %v2345_v58 = vadd.f32 %v2344_v19, %v8904_v6  ;;  %v2346_v29 = vpop.f32.mrb[27].mxu1  ;;  %4694 = vmatmul.mubr.bf16.gmra.mrb[108].mxu0 %v3057_v40  ;;  %v2952_v60 = vmax.f32 %v2341_v49, 0.0  ;;  %v7023_v10 = vld [vmem:[%s9669_s3 + $0x2f0] sm:$0xff]  }
 0x1d7   : > { %4645 = vmatmul.mubr.bf16.gmra.mrb[108].mxu1 %v3097_v39  ;;  %v2398_v0 = vadd.f32 %v2397_v15, %v8877_v26  ;;  %v2399_v51 = vpop.f32.mrb[35].mxu0  ;;  %v2347_v25 = vadd.f32 %v2346_v29, %v8904_v6  ;;  %6429 = vmatpush3.bf16.msra.mxu0 %v7010_v20  ;;  %v2870_v54 = vmax.f32 %v2394_v56, 0.0  ;;  %v2953_v1 = vmax.f32 %v2343_v8, 0.0  ;;  %v7022_v20 = vld [vmem:[%s9669_s3 + $0x308] sm:$0xff]  }
 0x1d8   : > { %6397 = vmatpush3.bf16.msra.mxu1 %v7009_v38  ;;  %v2400_v37 = vadd.f32 %v2399_v51, %v8877_v26  ;;  %v2973_v62 = vmax.f32 %v2345_v58, 0.0  ;;  %6430 = vmatprep.subr.bf16.mxu0 %v7012_v17  ;;  %v2871_v52 = vmax.f32 %v2396_v22, 0.0  ;;  %v7024_v17 = vld [vmem:[%s9669_s3 + $0x350] sm:$0xff]  }
 0x1d9   : > { %6398 = vmatprep.subr.bf16.mxu1 %v7011_v36  ;;  %v2891_v43 = vmax.f32 %v2398_v0, 0.0  ;;  %v2974_v48 = vmax.f32 %v2347_v25, 0.0 }
 0x1da   : > { %v2892_v11 = vmax.f32 %v2400_v37, 0.0  ;;  %v3078_v59 = vpack.c.bf16 %v2973_v62, %v2952_v60  ;;  %v7025_v37 = vld [vmem:[%s9669_s3 + $0x2b0] sm:$0xff]  }
 0x1db   : > { %v3038_v33 = vpack.c.bf16 %v2891_v43, %v2870_v54  ;;  %v3079_v34 = vpack.c.bf16 %v2974_v48, %v2953_v1  ;;  %v2350_v13 = vpop.f32.mrb[28].mxu1  ;;  %6431 = vmatpush3.bf16.msra.mxu0 %v7014_v9  ;;  %v7026_v9 = vld [vmem:[%s9669_s3 + $0x310] sm:$0xff]   ;;  %v7027_v43 = vld [vmem:[%s9669_s3 + $0x2f8] sm:$0xff]  }
 0x1dc   : > { %6399 = vmatpush3.bf16.msra.mxu1 %v7013_v63  ;;  %v3039_v44 = vpack.c.bf16 %v2892_v11, %v2871_v52  ;;  %v2403_v53 = vpop.f32.mrb[36].mxu0  ;;  %v2351_v50 = vadd.f32 %v2350_v13, %v8926_v12  ;;  %v2352_v32 = vpop.f32.mrb[29].mxu1  ;;  %6432 = vmatprep.subr.bf16.mxu0 %v7015_v5  ;;  %v7028_v5 = vld [vmem:[%s9669_s3 + $0x358] sm:$0xff]  }
 0x1dd   : > { %6464 = vmatprep.subr.bf16.mxu1 %v7016_v14  ;;  %v2404_v18 = vadd.f32 %v2403_v53, %v8882_v24  ;;  %v2405_v23 = vpop.f32.mrb[37].mxu0  ;;  %v2353_v57 = vadd.f32 %v2352_v32, %v8926_v12  ;;  %v2354_v47 = vpop.f32.mrb[30].mxu1  ;;  %4701 = vmatprep.mubr.bf16.mxu0 %v3079_v34 }
 0x1de   : > { %v2406_v35 = vadd.f32 %v2405_v23, %v8882_v24  ;;  %v2407_v39 = vpop.f32.mrb[38].mxu0  ;;  %4750 = vmatprep.mubr.bf16.mxu1 %v3039_v44  ;;  %v2355_v16 = vadd.f32 %v2354_v47, %v8928_v30  ;;  %v2356_v21 = vpop.f32.mrb[31].mxu1  ;;  %4702 = vmatmul.mubr.bf16.gmra.mrb[112].mxu0 %v3078_v59  ;;  %v2994_v36 = vmax.f32 %v2351_v50, 0.0 }
 0x1df   : > { %v2408_v40 = vadd.f32 %v2407_v39, %v8888_v27  ;;  %v2409_v38 = vpop.f32.mrb[39].mxu0  ;;  %4751 = vmatmul.mubr.bf16.vlgmr.msra.gmra.mrb[112].mxu1 %v3038_v33  ;;  %v2357_v42 = vadd.f32 %v2356_v21, %v8928_v30  ;;  %6433 = vmatpush3.bf16.msra.mxu0 %v7017_v46  ;;  %v2912_v49 = vmax.f32 %v2404_v18, 0.0  ;;  %v2995_v8 = vmax.f32 %v2353_v57, 0.0  ;;  %v7029_v46 = vld [vmem:[%s9669_s3 + $0x2b8] sm:$0xff]  }
 0x1e0   : > { %v2410_v55 = vadd.f32 %v2409_v38, %v8888_v27  ;;  %6465 = vmatpush3.bf16.msra.mxu1 %v7018_v2  ;;  %v3015_v56 = vmax.f32 %v2355_v16, 0.0  ;;  %6434 = vmatprep.subr.bf16.mxu0 %v7019_v31  ;;  %v2913_v22 = vmax.f32 %v2406_v35, 0.0  ;;  %v7030_v2 = vld [vmem:[%s9669_s3 + $0x318] sm:$0xff]   ;;  %v7031_v31 = vld [vmem:[%s9669_s3 + $0x360] sm:$0xff]  }
 0x1e1   : > { %v2933_v45 = vmax.f32 %v2408_v40, 0.0  ;;  %6466 = vmatprep.subr.bf16.mxu1 %v7020_v7  ;;  %v3016_v19 = vmax.f32 %v2357_v42, 0.0  ;;  %v7032_v7 = vld [vmem:[%s9669_s3 + $0x3c0] sm:$0xff]  }
 0x1e2   : > { %v2934_v15 = vmax.f32 %v2410_v55, 0.0  ;;  %v3099_v58 = vpack.c.bf16 %v3015_v56, %v2994_v36 }
 0x1e3   : > { %v3059_v0 = vpack.c.bf16 %v2933_v45, %v2912_v49  ;;  %v3100_v29 = vpack.c.bf16 %v3016_v19, %v2995_v8  ;;  %6435 = vmatpush3.bf16.msra.mxu0 %v7021_v61  ;;  %v7033_v61 = vld [vmem:[%s9669_s3 + $0x320] sm:$0xff]  }
 0x1e4   : > { %v3060_v51 = vpack.c.bf16 %v2934_v15, %v2913_v22  ;;  %v2413_v63 = vpop.f32.mrb[40].mxu0  ;;  %6467 = vmatpush3.bf16.msra.mxu1 %v7022_v20  ;;  %6436 = vmatprep.subr.bf16.mxu0 %v7023_v10  ;;  %v7034_v20 = vld [vmem:[%s9669_s3 + $0x380] sm:$0xff]   ;;  %v7035_v10 = vld [vmem:[%s9669_s3 + $0x368] sm:$0xff]  }
 0x1e5   : > { %v2466_v25 = vpop.f32.mrb[32].mxu1  ;;  %v2414_v14 = vadd.f32 %v2413_v63, %v8902_v3  ;;  %v2415_v54 = vpop.f32.mrb[41].mxu0  ;;  %6468 = vmatprep.subr.bf16.mxu1 %v7024_v17  ;;  %4709 = vmatprep.mubr.bf16.mxu0 %v3100_v29  ;;  %v7036_v17 = vld [vmem:[%s9669_s3 + $0x3c8] sm:$0xff]  }
 0x1e6   : > { %v2467_v60 = vadd.f32 %v2466_v25, %v8874_v41  ;;  %v2468_v62 = vpop.f32.mrb[33].mxu1  ;;  %v2416_v1 = vadd.f32 %v2415_v54, %v8902_v3  ;;  %v2417_v48 = vpop.f32.mrb[42].mxu0  ;;  %4758 = vmatprep.mubr.bf16.mxu1 %v3060_v51  ;;  %4710 = vmatmul.mubr.bf16.gmra.mrb[116].mxu0 %v3099_v58 }
 0x1e7   : > { %v2469_v52 = vadd.f32 %v2468_v62, %v8874_v41  ;;  %v2470_v11 = vpop.f32.mrb[34].mxu1  ;;  %v2418_v59 = vadd.f32 %v2417_v48, %v8904_v6  ;;  %v2419_v34 = vpop.f32.mrb[43].mxu0  ;;  %4759 = vmatmul.mubr.bf16.gmra.mrb[116].mxu1 %v3059_v0  ;;  %6437 = vmatpush3.bf16.msra.mxu0 %v7025_v37  ;;  %v2954_v50 = vmax.f32 %v2414_v14, 0.0  ;;  %v7037_v37 = vld [vmem:[%s9669_s3 + $0x328] sm:$0xff]  }
 0x1e8   : > { %v2471_v33 = vadd.f32 %v2470_v11, %v8877_v26  ;;  %v2472_v44 = vpop.f32.mrb[35].mxu1  ;;  %v2420_v13 = vadd.f32 %v2419_v34, %v8904_v6  ;;  %6469 = vmatpush3.bf16.msra.mxu1 %v7026_v9  ;;  %v2872_v18 = vmax.f32 %v2467_v60, 0.0  ;;  %6438 = vmatprep.subr.bf16.mxu0 %v7027_v43  ;;  %v2955_v57 = vmax.f32 %v2416_v1, 0.0  ;;  %v7038_v9 = vld [vmem:[%s9669_s3 + $0x388] sm:$0xff]   ;;  %v7039_v43 = vld [vmem:[%s9669_s3 + $0x370] sm:$0xff]  }
 0x1e9   : > { %v2473_v53 = vadd.f32 %v2472_v44, %v8877_v26  ;;  %v2975_v32 = vmax.f32 %v2418_v59, 0.0  ;;  %6470 = vmatprep.subr.bf16.mxu1 %v7028_v5  ;;  %v2873_v35 = vmax.f32 %v2469_v52, 0.0  ;;  %v7040_v5 = vld [vmem:[%s9669_s3 + $0x3d0] sm:$0xff]  }
 0x1ea   : > { %v2893_v23 = vmax.f32 %v2471_v33, 0.0  ;;  %v2976_v47 = vmax.f32 %v2420_v13, 0.0 }
 0x1eb   : > { %v2894_v39 = vmax.f32 %v2473_v53, 0.0  ;;  %v3080_v16 = vpack.c.bf16 %v2975_v32, %v2954_v50  ;;  %6439 = vmatpush3.bf16.msra.mxu0 %v7029_v46  ;;  %v7041_v46 = vld [vmem:[%s9669_s3 + $0x330] sm:$0xff]  }
 0x1ec   : > { %v3040_v40 = vpack.c.bf16 %v2893_v23, %v2872_v18  ;;  %v3081_v21 = vpack.c.bf16 %v2976_v47, %v2955_v57  ;;  %v2423_v42 = vpop.f32.mrb[44].mxu0  ;;  %6471 = vmatpush3.bf16.msra.mxu1 %v7030_v2  ;;  %6504 = vmatprep.subr.bf16.mxu0 %v7032_v7  ;;  %v7042_v2 = vld [vmem:[%s9669_s3 + $0x390] sm:$0xff]   ;;  %v7044_v7 = vld [vmem:[%s9669_s3 + $0x3d8] sm:$0xff]  }
 0x1ed   : > { %v3041_v38 = vpack.c.bf16 %v2894_v39, %v2873_v35  ;;  %v2476_v55 = vpop.f32.mrb[36].mxu1  ;;  %v2424_v36 = vadd.f32 %v2423_v42, %v8926_v12  ;;  %v2425_v56 = vpop.f32.mrb[45].mxu0  ;;  %6472 = vmatprep.subr.bf16.mxu1 %v7031_v31  ;;  %v7043_v31 = vld [vmem:[%s9669_s3 + $0x378] sm:$0xff]  }
 0x1ee   : > { %v2477_v49 = vadd.f32 %v2476_v55, %v8882_v24  ;;  %v2478_v45 = vpop.f32.mrb[37].mxu1  ;;  %v2426_v8 = vadd.f32 %v2425_v56, %v8926_v12  ;;  %v2427_v19 = vpop.f32.mrb[46].mxu0  ;;  %4766 = vmatprep.mubr.bf16.mxu1 %v3081_v21 }
 0x1ef   : > { %v2479_v22 = vadd.f32 %v2478_v45, %v8882_v24  ;;  %v2480_v15 = vpop.f32.mrb[38].mxu1  ;;  %4815 = vmatprep.mubr.bf16.mxu0 %v3041_v38  ;;  %v2428_v58 = vadd.f32 %v2427_v19, %v8928_v30  ;;  %v2429_v29 = vpop.f32.mrb[47].mxu0  ;;  %4767 = vmatmul.mubr.bf16.gmra.mrb[120].mxu1 %v3080_v16  ;;  %v2996_v14 = vmax.f32 %v2424_v36, 0.0 }
 0x1f0   : > { %v2481_v0 = vadd.f32 %v2480_v15, %v8888_v27  ;;  %v2482_v51 = vpop.f32.mrb[39].mxu1  ;;  %4816 = vmatmul.mubr.bf16.vlgmr.msra.gmra.mrb[120].mxu0 %v3040_v40  ;;  %v2430_v63 = vadd.f32 %v2429_v29, %v8928_v30  ;;  %6473 = vmatpush3.bf16.msra.mxu1 %v7033_v61  ;;  %v2914_v60 = vmax.f32 %v2477_v49, 0.0  ;;  %v2997_v1 = vmax.f32 %v2426_v8, 0.0  ;;  %v7045_v61 = vld [vmem:[%s9669_s3 + $0x338] sm:$0xff]  }
 0x1f1   : > { %v2483_v25 = vadd.f32 %v2482_v51, %v8888_v27  ;;  %6505 = vmatpush3.bf16.msra.mxu0 %v7034_v20  ;;  %v3017_v54 = vmax.f32 %v2428_v58, 0.0  ;;  %6474 = vmatprep.subr.bf16.mxu1 %v7035_v10  ;;  %v2915_v52 = vmax.f32 %v2479_v22, 0.0  ;;  %v7046_v20 = vld [vmem:[%s9669_s3 + $0x398] sm:$0xff]   ;;  %v7047_v10 = vld [vmem:[%s9669_s3 + $0x3e0] sm:$0xff]  }
 0x1f2   : > { %v2935_v62 = vmax.f32 %v2481_v0, 0.0  ;;  %6506 = vmatprep.subr.bf16.mxu0 %v7036_v17  ;;  %v3018_v48 = vmax.f32 %v2430_v63, 0.0  ;;  %v7048_v17 = vld [vmem:[%s9669_s3 + $0x440] sm:$0xff]  }
 0x1f3   : > { %v2936_v11 = vmax.f32 %v2483_v25, 0.0  ;;  %v3101_v59 = vpack.c.bf16 %v3017_v54, %v2996_v14 }
 0x1f4   : > { %v3061_v33 = vpack.c.bf16 %v2935_v62, %v2914_v60  ;;  %v3102_v34 = vpack.c.bf16 %v3018_v48, %v2997_v1  ;;  %v2539_v53 = vpop.f32.mrb[48].mxu0  ;;  %6475 = vmatpush3.bf16.msra.mxu1 %v7037_v37  ;;  %v7049_v37 = vld [vmem:[%s9669_s3 + $0x3a0] sm:$0xff]  }
 0x1f5   : > { %v3062_v44 = vpack.c.bf16 %v2936_v11, %v2915_v52  ;;  %v2486_v13 = vpop.f32.mrb[40].mxu1  ;;  %6507 = vmatpush3.bf16.msra.mxu0 %v7038_v9  ;;  %v2540_v18 = vadd.f32 %v2539_v53, %v8874_v41  ;;  %v2541_v23 = vpop.f32.mrb[49].mxu0  ;;  %6476 = vmatprep.subr.bf16.mxu1 %v7039_v43  ;;  %v7050_v9 = vld [vmem:[%s9669_s3 + $0x400] sm:$0xff]   ;;  %v7051_v43 = vld [vmem:[%s9669_s3 + $0x3e8] sm:$0xff]  }
 0x1f6   : > { %v2487_v50 = vadd.f32 %v2486_v13, %v8902_v3  ;;  %v2488_v32 = vpop.f32.mrb[41].mxu1  ;;  %6508 = vmatprep.subr.bf16.mxu0 %v7040_v5  ;;  %v2542_v35 = vadd.f32 %v2541_v23, %v8874_v41  ;;  %v2543_v39 = vpop.f32.mrb[50].mxu0  ;;  %4774 = vmatprep.mubr.bf16.mxu1 %v3102_v34  ;;  %v7052_v5 = vld [vmem:[%s9669_s3 + $0x448] sm:$0xff]  }
 0x1f7   : > { %v2489_v57 = vadd.f32 %v2488_v32, %v8902_v3  ;;  %v2490_v47 = vpop.f32.mrb[42].mxu1  ;;  %4823 = vmatprep.mubr.bf16.mxu0 %v3062_v44  ;;  %v2544_v40 = vadd.f32 %v2543_v39, %v8877_v26  ;;  %v2545_v38 = vpop.f32.mrb[51].mxu0  ;;  %4775 = vmatmul.mubr.bf16.gmra.mrb[124].mxu1 %v3101_v59  ;;  %v2874_v49 = vmax.f32 %v2540_v18, 0.0 }
 0x1f8   : > { %v2491_v16 = vadd.f32 %v2490_v47, %v8904_v6  ;;  %v2492_v21 = vpop.f32.mrb[43].mxu1  ;;  %4824 = vmatmul.mubr.bf16.gmra.mrb[124].mxu0 %v3061_v33  ;;  %v2546_v55 = vadd.f32 %v2545_v38, %v8877_v26  ;;  %6477 = vmatpush3.bf16.msra.mxu1 %v7041_v46  ;;  %v2956_v36 = vmax.f32 %v2487_v50, 0.0  ;;  %v2875_v22 = vmax.f32 %v2542_v35, 0.0  ;;  %v7053_v46 = vld [vmem:[%s9669_s3 + $0x3a8] sm:$0xff]  }
 0x1f9   : > { %v2493_v42 = vadd.f32 %v2492_v21, %v8904_v6  ;;  %6509 = vmatpush3.bf16.msra.mxu0 %v7042_v2  ;;  %v2895_v45 = vmax.f32 %v2544_v40, 0.0  ;;  %6478 = vmatprep.subr.bf16.mxu1 %v7043_v31  ;;  %v2957_v8 = vmax.f32 %v2489_v57, 0.0  ;;  %v7054_v2 = vld [vmem:[%s9669_s3 + $0x408] sm:$0xff]   ;;  %v7055_v31 = vld [vmem:[%s9669_s3 + $0x3f0] sm:$0xff]  }
 0x1fa   : > { %v2977_v56 = vmax.f32 %v2491_v16, 0.0  ;;  %6510 = vmatprep.subr.bf16.mxu0 %v7044_v7  ;;  %v2896_v15 = vmax.f32 %v2546_v55, 0.0  ;;  %v7056_v7 = vld [vmem:[%s9669_s3 + $0x450] sm:$0xff]  }
 0x1fb   : > { %v2978_v19 = vmax.f32 %v2493_v42, 0.0  ;;  %v3042_v0 = vpack.c.bf16 %v2895_v45, %v2874_v49 }
 0x1fc   : > { %v3082_v58 = vpack.c.bf16 %v2977_v56, %v2956_v36  ;;  %v3043_v51 = vpack.c.bf16 %v2896_v15, %v2875_v22  ;;  %v2549_v25 = vpop.f32.mrb[52].mxu0  ;;  %6479 = vmatpush3.bf16.msra.mxu1 %v7045_v61  ;;  %v7057_v61 = vld [vmem:[%s9669_s3 + $0x3b0] sm:$0xff]  }
 0x1fd   : > { %v3083_v29 = vpack.c.bf16 %v2978_v19, %v2957_v8  ;;  %v2496_v63 = vpop.f32.mrb[44].mxu1  ;;  %6511 = vmatpush3.bf16.msra.mxu0 %v7046_v20  ;;  %v2550_v60 = vadd.f32 %v2549_v25, %v8882_v24  ;;  %v2551_v62 = vpop.f32.mrb[53].mxu0  ;;  %6544 = vmatprep.subr.bf16.mxu1 %v7048_v17  ;;  %v7058_v20 = vld [vmem:[%s9669_s3 + $0x410] sm:$0xff]   ;;  %v7060_v17 = vld [vmem:[%s9669_s3 + $0x458] sm:$0xff]  }
 0x1fe   : > { %v2497_v14 = vadd.f32 %v2496_v63, %v8926_v12  ;;  %v2498_v54 = vpop.f32.mrb[45].mxu1  ;;  %6512 = vmatprep.subr.bf16.mxu0 %v7047_v10  ;;  %v2552_v52 = vadd.f32 %v2551_v62, %v8882_v24  ;;  %v2553_v11 = vpop.f32.mrb[54].mxu0  ;;  %4880 = vmatprep.mubr.bf16.mxu1 %v3043_v51  ;;  %v7059_v10 = vld [vmem:[%s9669_s3 + $0x3f8] sm:$0xff]  }
 0x1ff   : > { %v2499_v1 = vadd.f32 %v2498_v54, %v8926_v12  ;;  %v2500_v48 = vpop.f32.mrb[46].mxu1  ;;  %4831 = vmatprep.mubr.bf16.mxu0 %v3083_v29  ;;  %v2554_v33 = vadd.f32 %v2553_v11, %v8888_v27  ;;  %v2555_v44 = vpop.f32.mrb[55].mxu0  ;;  %4881 = vmatmul.mubr.bf16.vlgmr.msra.gmra.mrb[128].mxu1 %v3042_v0  ;;  %v2916_v18 = vmax.f32 %v2550_v60, 0.0 }
 0x200   : > { %v2501_v59 = vadd.f32 %v2500_v48, %v8928_v30  ;;  %v2502_v34 = vpop.f32.mrb[47].mxu1  ;;  %4832 = vmatmul.mubr.bf16.gmra.mrb[128].mxu0 %v3082_v58  ;;  %v2556_v53 = vadd.f32 %v2555_v44, %v8888_v27  ;;  %6545 = vmatpush3.bf16.msra.mxu1 %v7050_v9  ;;  %v2998_v50 = vmax.f32 %v2497_v14, 0.0  ;;  %v2917_v35 = vmax.f32 %v2552_v52, 0.0  ;;  %v7062_v9 = vld [vmem:[%s9669_s3 + $0x418] sm:$0xff]  }
 0x201   : > { %v2503_v13 = vadd.f32 %v2502_v34, %v8928_v30  ;;  %6513 = vmatpush3.bf16.msra.mxu0 %v7049_v37  ;;  %v2937_v23 = vmax.f32 %v2554_v33, 0.0  ;;  %6546 = vmatprep.subr.bf16.mxu1 %v7052_v5  ;;  %v2999_v57 = vmax.f32 %v2499_v1, 0.0  ;;  %v7061_v37 = vld [vmem:[%s9669_s3 + $0x3b8] sm:$0xff]   ;;  %v7064_v5 = vld [vmem:[%s9669_s3 + $0x4c0] sm:$0xff]  }
 0x202   : > { %v3019_v32 = vmax.f32 %v2501_v59, 0.0  ;;  %6514 = vmatprep.subr.bf16.mxu0 %v7051_v43  ;;  %v2938_v39 = vmax.f32 %v2556_v53, 0.0  ;;  %v7063_v43 = vld [vmem:[%s9669_s3 + $0x460] sm:$0xff]  }
 0x203   : > { %v3020_v47 = vmax.f32 %v2503_v13, 0.0  ;;  %v3063_v40 = vpack.c.bf16 %v2937_v23, %v2916_v18 }
 0x204   : > { %v3103_v16 = vpack.c.bf16 %v3019_v32, %v2998_v50  ;;  %v3064_v38 = vpack.c.bf16 %v2938_v39, %v2917_v35  ;;  %v2559_v42 = vpop.f32.mrb[56].mxu0  ;;  %6547 = vmatpush3.bf16.msra.mxu1 %v7054_v2  ;;  %v7066_v2 = vld [vmem:[%s9669_s3 + $0x480] sm:$0xff]  }
 0x205   : > { %v3104_v21 = vpack.c.bf16 %v3020_v47, %v2999_v57  ;;  %v2612_v55 = vpop.f32.mrb[48].mxu1  ;;  %6515 = vmatpush3.bf16.msra.mxu0 %v7053_v46  ;;  %v2560_v36 = vadd.f32 %v2559_v42, %v8902_v3  ;;  %v2561_v56 = vpop.f32.mrb[57].mxu0  ;;  %6548 = vmatprep.subr.bf16.mxu1 %v7056_v7  ;;  %v7065_v46 = vld [vmem:[%s9669_s3 + $0x420] sm:$0xff]   ;;  %v7068_v7 = vld [vmem:[%s9669_s3 + $0x4c8] sm:$0xff]  }
 0x206   : > { %v2613_v49 = vadd.f32 %v2612_v55, %v8874_v41  ;;  %v2614_v45 = vpop.f32.mrb[49].mxu1  ;;  %6516 = vmatprep.subr.bf16.mxu0 %v7055_v31  ;;  %v2562_v8 = vadd.f32 %v2561_v56, %v8902_v3  ;;  %v2563_v19 = vpop.f32.mrb[58].mxu0  ;;  %4888 = vmatprep.mubr.bf16.mxu1 %v3064_v38  ;;  %v7067_v31 = vld [vmem:[%s9669_s3 + $0x468] sm:$0xff]  }
 0x207   : > { %v2615_v22 = vadd.f32 %v2614_v45, %v8874_v41  ;;  %v2616_v15 = vpop.f32.mrb[50].mxu1  ;;  %4839 = vmatprep.mubr.bf16.mxu0 %v3104_v21  ;;  %v2564_v58 = vadd.f32 %v2563_v19, %v8904_v6  ;;  %v2565_v29 = vpop.f32.mrb[59].mxu0  ;;  %4889 = vmatmul.mubr.bf16.gmra.mrb[132].mxu1 %v3063_v40  ;;  %v2958_v14 = vmax.f32 %v2560_v36, 0.0 }
 0x208   : > { %v2617_v0 = vadd.f32 %v2616_v15, %v8877_v26  ;;  %v2618_v51 = vpop.f32.mrb[51].mxu1  ;;  %4840 = vmatmul.mubr.bf16.gmra.mrb[132].mxu0 %v3103_v16  ;;  %v2566_v63 = vadd.f32 %v2565_v29, %v8904_v6  ;;  %6549 = vmatpush3.bf16.msra.mxu1 %v7058_v20  ;;  %v2876_v60 = vmax.f32 %v2613_v49, 0.0  ;;  %v2959_v1 = vmax.f32 %v2562_v8, 0.0  ;;  %v7070_v20 = vld [vmem:[%s9669_s3 + $0x488] sm:$0xff]  }
 0x209   : > { %v2619_v25 = vadd.f32 %v2618_v51, %v8877_v26  ;;  %6517 = vmatpush3.bf16.msra.mxu0 %v7057_v61  ;;  %v2979_v54 = vmax.f32 %v2564_v58, 0.0  ;;  %6550 = vmatprep.subr.bf16.mxu1 %v7060_v17  ;;  %v2877_v52 = vmax.f32 %v2615_v22, 0.0  ;;  %v7069_v61 = vld [vmem:[%s9669_s3 + $0x428] sm:$0xff]   ;;  %v7072_v17 = vld [vmem:[%s9669_s3 + $0x4d0] sm:$0xff]  }
 0x20a   : > { %v2897_v62 = vmax.f32 %v2617_v0, 0.0  ;;  %6518 = vmatprep.subr.bf16.mxu0 %v7059_v10  ;;  %v2980_v48 = vmax.f32 %v2566_v63, 0.0  ;;  %v7071_v10 = vld [vmem:[%s9669_s3 + $0x470] sm:$0xff]  }
 0x20b   : > { %v2898_v11 = vmax.f32 %v2619_v25, 0.0  ;;  %v3084_v59 = vpack.c.bf16 %v2979_v54, %v2958_v14 }
 0x20c   : > { %v3044_v33 = vpack.c.bf16 %v2897_v62, %v2876_v60  ;;  %v3085_v34 = vpack.c.bf16 %v2980_v48, %v2959_v1  ;;  %v2569_v13 = vpop.f32.mrb[60].mxu0  ;;  %6551 = vmatpush3.bf16.msra.mxu1 %v7062_v9  ;;  %v7074_v9 = vld [vmem:[%s9669_s3 + $0x490] sm:$0xff]  }
 0x20d   : > { %v3045_v44 = vpack.c.bf16 %v2898_v11, %v2877_v52  ;;  %v2622_v53 = vpop.f32.mrb[52].mxu1  ;;  %6519 = vmatpush3.bf16.msra.mxu0 %v7061_v37  ;;  %v2570_v50 = vadd.f32 %v2569_v13, %v8926_v12  ;;  %v2571_v32 = vpop.f32.mrb[61].mxu0  ;;  %6552 = vmatprep.subr.bf16.mxu1 %v7063_v43  ;;  %v7073_v37 = vld [vmem:[%s9669_s3 + $0x430] sm:$0xff]   ;;  %v7075_v43 = vld [vmem:[%s9669_s3 + $0x478] sm:$0xff]  }
 0x20e   : > { %v2623_v18 = vadd.f32 %v2622_v53, %v8882_v24  ;;  %v2624_v23 = vpop.f32.mrb[53].mxu1  ;;  %6584 = vmatprep.subr.bf16.mxu0 %v7064_v5  ;;  %v2572_v57 = vadd.f32 %v2571_v32, %v8926_v12  ;;  %v2573_v47 = vpop.f32.mrb[62].mxu0  ;;  %4896 = vmatprep.mubr.bf16.mxu1 %v3085_v34  ;;  %v7076_v5 = vld [vmem:[%s9669_s3 + $0x4d8] sm:$0xff]  }
 0x20f   : > { %v2625_v35 = vadd.f32 %v2624_v23, %v8882_v24  ;;  %v2626_v39 = vpop.f32.mrb[54].mxu1  ;;  %4945 = vmatprep.mubr.bf16.mxu0 %v3045_v44  ;;  %v2574_v16 = vadd.f32 %v2573_v47, %v8928_v30  ;;  %v2575_v21 = vpop.f32.mrb[63].mxu0  ;;  %4897 = vmatmul.mubr.bf16.gmra.mrb[136].mxu1 %v3084_v59  ;;  %v3000_v36 = vmax.f32 %v2570_v50, 0.0 }
 0x210   : > { %v2627_v40 = vadd.f32 %v2626_v39, %v8888_v27  ;;  %v2628_v38 = vpop.f32.mrb[55].mxu1  ;;  %4946 = vmatmul.mubr.bf16.vlgmr.msra.gmra.mrb[136].mxu0 %v3044_v33  ;;  %v2576_v42 = vadd.f32 %v2575_v21, %v8928_v30  ;;  %6553 = vmatpush3.bf16.msra.mxu1 %v7065_v46  ;;  %v2918_v49 = vmax.f32 %v2623_v18, 0.0  ;;  %v3001_v8 = vmax.f32 %v2572_v57, 0.0  ;;  %v7077_v46 = vld [vmem:[%s9669_s3 + $0x438] sm:$0xff]  }
 0x211   : > { %v2629_v55 = vadd.f32 %v2628_v38, %v8888_v27  ;;  %6585 = vmatpush3.bf16.msra.mxu0 %v7066_v2  ;;  %v3021_v56 = vmax.f32 %v2574_v16, 0.0  ;;  %6554 = vmatprep.subr.bf16.mxu1 %v7067_v31  ;;  %v2919_v22 = vmax.f32 %v2625_v35, 0.0  ;;  %v7078_v2 = vld [vmem:[%s9669_s3 + $0x498] sm:$0xff]   ;;  %v7079_v31 = vld [vmem:[%s9669_s3 + $0x4e0] sm:$0xff]  }
 0x212   : > { %v2939_v45 = vmax.f32 %v2627_v40, 0.0  ;;  %6586 = vmatprep.subr.bf16.mxu0 %v7068_v7  ;;  %v3022_v19 = vmax.f32 %v2576_v42, 0.0  ;;  %v7080_v7 = vld [vmem:[%s9669_s3 + $0x500] sm:$0xff]  }
 0x213   : > { %v2940_v15 = vmax.f32 %v2629_v55, 0.0  ;;  %v3105_v58 = vpack.c.bf16 %v3021_v56, %v3000_v36 }
 0x214   : > { %v3065_v0 = vpack.c.bf16 %v2939_v45, %v2918_v49  ;;  %v3106_v29 = vpack.c.bf16 %v3022_v19, %v3001_v8  ;;  %6555 = vmatpush3.bf16.msra.mxu1 %v7069_v61  ;;  %v7081_v61 = vld [vmem:[%s9669_s3 + $0x4a0] sm:$0xff]   ;;  %v7082_v45 = vld [vmem:[%s9669_s3 + $0x4e8] sm:$0xff]  }
 0x215   : > { %v3066_v51 = vpack.c.bf16 %v2940_v15, %v2919_v22  ;;  %v2632_v63 = vpop.f32.mrb[56].mxu1  ;;  %v2685_v25 = vpop.f32.mrb[64].mxu0  ;;  %6587 = vmatpush3.bf16.msra.mxu0 %v7070_v20  ;;  %6556 = vmatprep.subr.bf16.mxu1 %v7071_v10  ;;  %v7083_v10 = vld [vmem:[%s9669_s3 + $0x508] sm:$0xff]  }
 0x216   : > { %v2633_v14 = vadd.f32 %v2632_v63, %v8902_v3  ;;  %v2686_v60 = vadd.f32 %v2685_v25, %v8874_v41  ;;  %v2634_v54 = vpop.f32.mrb[57].mxu1  ;;  %v2687_v62 = vpop.f32.mrb[65].mxu0  ;;  %6588 = vmatprep.subr.bf16.mxu0 %v7072_v17  ;;  %4904 = vmatprep.mubr.bf16.mxu1 %v3106_v29  ;;  %v7084_v25 = vld [vmem:[%s9669_s3 + $0x4a8] sm:$0xff]  }
 0x217   : > { %v2635_v1 = vadd.f32 %v2634_v54, %v8902_v3  ;;  %v2688_v52 = vadd.f32 %v2687_v62, %v8874_v41  ;;  %v2636_v48 = vpop.f32.mrb[58].mxu1  ;;  %v2689_v11 = vpop.f32.mrb[66].mxu0  ;;  %4953 = vmatprep.mubr.bf16.mxu0 %v3066_v51  ;;  %4905 = vmatmul.mubr.bf16.gmra.mrb[140].mxu1 %v3105_v58  ;;  %v7085_v54 = vld [vmem:[%s9669_s3 + $0x4f0] sm:$0xff]  }
 0x218   : > { %v2637_v59 = vadd.f32 %v2636_v48, %v8904_v6  ;;  %v2690_v33 = vadd.f32 %v2689_v11, %v8877_v26  ;;  %v2638_v34 = vpop.f32.mrb[59].mxu1  ;;  %v2691_v44 = vpop.f32.mrb[67].mxu0  ;;  %4954 = vmatmul.mubr.bf16.gmra.mrb[140].mxu0 %v3065_v0  ;;  %6557 = vmatpush3.bf16.msra.mxu1 %v7073_v37  ;;  %v2960_v50 = vmax.f32 %v2633_v14, 0.0  ;;  %v2878_v18 = vmax.f32 %v2686_v60, 0.0  ;;  %v7086_v62 = vld [vmem:[%s9669_s3 + $0x510] sm:$0xff]  }
 0x219   : > { %v2639_v13 = vadd.f32 %v2638_v34, %v8904_v6  ;;  %v2692_v53 = vadd.f32 %v2691_v44, %v8877_v26  ;;  %6589 = vmatpush3.bf16.msra.mxu0 %v7074_v9  ;;  %6558 = vmatprep.subr.bf16.mxu1 %v7075_v43  ;;  %v2961_v57 = vmax.f32 %v2635_v1, 0.0  ;;  %v2879_v35 = vmax.f32 %v2688_v52, 0.0 }
 0x21a   : > { %v2981_v32 = vmax.f32 %v2637_v59, 0.0  ;;  %v2899_v23 = vmax.f32 %v2690_v33, 0.0  ;;  %6590 = vmatprep.subr.bf16.mxu0 %v7076_v5 }
 0x21b   : > { %v2982_v47 = vmax.f32 %v2639_v13, 0.0  ;;  %v2900_v39 = vmax.f32 %v2692_v53, 0.0  ;;  %v7087_v13 = vld [vmem:[%s9669_s3 + $0x4b0] sm:$0xff]  }
 0x21c   : > { %v3086_v16 = vpack.c.bf16 %v2981_v32, %v2960_v50  ;;  %v3046_v40 = vpack.c.bf16 %v2899_v23, %v2878_v18  ;;  %6559 = vmatpush3.bf16.msra.mxu1 %v7077_v46  ;;  %v7088_v18 = vld [vmem:[%s9669_s3 + $0x4f8] sm:$0xff]  }
 0x21d   : > { %v3087_v21 = vpack.c.bf16 %v2982_v47, %v2961_v57  ;;  %v3047_v38 = vpack.c.bf16 %v2900_v39, %v2879_v35  ;;  %v2642_v42 = vpop.f32.mrb[60].mxu1  ;;  %v2695_v55 = vpop.f32.mrb[68].mxu0  ;;  %6591 = vmatpush3.bf16.msra.mxu0 %v7078_v2  ;;  %6698 = vmatprep.subr.bf16.mxu1 %v7080_v7  ;;  %v7089_v32 = vld [vmem:[%s9669_s3 + $0x518] sm:$0xff]  }
 0x21e   : > { %v2643_v20 = vadd.f32 %v2642_v42, %v8926_v12  ;;  %v2696_v36 = vadd.f32 %v2695_v55, %v8882_v24  ;;  %v2644_v49 = vpop.f32.mrb[61].mxu1  ;;  %v2697_v56 = vpop.f32.mrb[69].mxu0  ;;  %6592 = vmatprep.subr.bf16.mxu0 %v7079_v31 }
 0x21f   : > { %v2645_v17 = vadd.f32 %v2644_v49, %v8926_v12  ;;  %v2698_v8 = vadd.f32 %v2697_v56, %v8882_v24  ;;  %v2646_v22 = vpop.f32.mrb[62].mxu1  ;;  %v2699_v19 = vpop.f32.mrb[70].mxu0  ;;  %4961 = vmatprep.mubr.bf16.mxu0 %v3087_v21  ;;  %5010 = vmatprep.mubr.bf16.mxu1 %v3047_v38  ;;  %v7090_v38 = vld [vmem:[%s9669_s3 + $0x4b8] sm:$0xff]  }
 0x220   : > { %v2647_v15 = vadd.f32 %v2646_v22, %v8928_v30  ;;  %v2700_v58 = vadd.f32 %v2699_v19, %v8888_v27  ;;  %v2648_v0 = vpop.f32.mrb[63].mxu1  ;;  %v2701_v29 = vpop.f32.mrb[71].mxu0  ;;  %4962 = vmatmul.mubr.bf16.gmra.mrb[144].mxu0 %v3086_v16  ;;  %5011 = vmatmul.mubr.bf16.vlgmr.msra.gmra.mrb[144].mxu1 %v3046_v40  ;;  %v3002_v37 = vmax.f32 %v2643_v20, 0.0  ;;  %v2920_v9 = vmax.f32 %v2696_v36, 0.0  ;;  %v7091_v36 = vld [vmem:[%s9669_s3 + $0x520] sm:$0xff]  }
 0x221   : > { %v2649_v51 = vadd.f32 %v2648_v0, %v8928_v30  ;;  %v2702_v63 = vadd.f32 %v2701_v29, %v8888_v27  ;;  %6593 = vmatpush3.bf16.msra.mxu0 %v7081_v61  ;;  %6699 = vmatpush3.bf16.msra.mxu1 %v7080_v7  ;;  %v3003_v43 = vmax.f32 %v2645_v17, 0.0  ;;  %v2921_v5 = vmax.f32 %v2698_v8, 0.0 }
 0x222   : > { %v3023_v14 = vmax.f32 %v2647_v15, 0.0  ;;  %v2941_v60 = vmax.f32 %v2700_v58, 0.0  ;;  %6594 = vmatprep.subr.bf16.mxu0 %v7082_v45  ;;  %6700 = vmatprep.subr.bf16.mxu1 %v7083_v10 }
 0x223   : > { %v3024_v1 = vmax.f32 %v2649_v51, 0.0  ;;  %v2942_v52 = vmax.f32 %v2702_v63, 0.0 }
 0x224   : > { %v3107_v48 = vpack.c.bf16 %v3023_v14, %v3002_v37  ;;  %v3067_v11 = vpack.c.bf16 %v2941_v60, %v2920_v9 }
 0x225   : > { %v3108_v59 = vpack.c.bf16 %v3024_v1, %v3003_v43  ;;  %v3068_v33 = vpack.c.bf16 %v2942_v52, %v2921_v5  ;;  %v2705_v34 = vpop.f32.mrb[72].mxu0  ;;  %v2758_v44 = vpop.f32.mrb[64].mxu1  ;;  %6595 = vmatpush3.bf16.msra.mxu0 %v7084_v25  ;;  %6701 = vmatpush3.bf16.msra.mxu1 %v7083_v10  ;;  %v7092_v25 = vld [vmem:[%s9669_s3 + $0x528] sm:$0xff]  }
 0x226   : > { %v2706_v53 = vadd.f32 %v2705_v34, %v8902_v3  ;;  %v2759_v46 = vadd.f32 %v2758_v44, %v8874_v41  ;;  %v2707_v2 = vpop.f32.mrb[73].mxu0  ;;  %v2760_v50 = vpop.f32.mrb[65].mxu1  ;;  %6596 = vmatprep.subr.bf16.mxu0 %v7085_v54  ;;  %6702 = vmatprep.subr.bf16.mxu1 %v7086_v62  ;;  %v7093_v34 = vld [vmem:[%s9669_s3 + $0x530] sm:$0xff]  }
 0x227   : > { %v2708_v23 = vadd.f32 %v2707_v2, %v8902_v3  ;;  %v2761_v31 = vadd.f32 %v2760_v50, %v8874_v41  ;;  %v2709_v7 = vpop.f32.mrb[74].mxu0  ;;  %v2762_v57 = vpop.f32.mrb[66].mxu1  ;;  %4969 = vmatprep.mubr.bf16.mxu0 %v3108_v59  ;;  %5018 = vmatprep.mubr.bf16.mxu1 %v3068_v33 }
 0x228   : > { %v2710_v35 = vadd.f32 %v2709_v7, %v8904_v6  ;;  %v2763_v47 = vadd.f32 %v2762_v57, %v8877_v26  ;;  %v2711_v39 = vpop.f32.mrb[75].mxu0  ;;  %v2764_v16 = vpop.f32.mrb[67].mxu1  ;;  %4970 = vmatmul.mubr.bf16.gmra.mrb[148].mxu0 %v3107_v48  ;;  %5019 = vmatmul.mubr.bf16.gmra.mrb[148].mxu1 %v3067_v11  ;;  %v2962_v42 = vmax.f32 %v2706_v53, 0.0  ;;  %v2880_v55 = vmax.f32 %v2759_v46, 0.0 }
 0x229   : > { %v2712_v40 = vadd.f32 %v2711_v39, %v8904_v6  ;;  %v2765_v21 = vadd.f32 %v2764_v16, %v8877_v26  ;;  %6597 = vmatpush3.bf16.msra.mxu0 %v7087_v13  ;;  %6703 = vmatpush3.bf16.msra.mxu1 %v7086_v62  ;;  %v2963_v49 = vmax.f32 %v2708_v23, 0.0  ;;  %v2881_v56 = vmax.f32 %v2761_v31, 0.0  ;;  %v7094_v39 = vld [vmem:[%s9669_s3 + $0x538] sm:$0xff]  }
 0x22a   : > { %v2983_v61 = vmax.f32 %v2710_v35, 0.0  ;;  %v2901_v20 = vmax.f32 %v2763_v47, 0.0  ;;  %6598 = vmatprep.subr.bf16.mxu0 %v7088_v18  ;;  %6704 = vmatprep.subr.bf16.mxu1 %v7089_v32 }
 0x22b   : > { %v2984_v45 = vmax.f32 %v2712_v40, 0.0  ;;  %v2902_v10 = vmax.f32 %v2765_v21, 0.0 }
 0x22c   : > { %v3088_v17 = vpack.c.bf16 %v2983_v61, %v2962_v42  ;;  %v3048_v8 = vpack.c.bf16 %v2901_v20, %v2880_v55 }
 0x22d   : > { %v3089_v22 = vpack.c.bf16 %v2984_v45, %v2963_v49  ;;  %v3049_v19 = vpack.c.bf16 %v2902_v10, %v2881_v56  ;;  %v2715_v15 = vpop.f32.mrb[76].mxu0  ;;  %v2768_v58 = vpop.f32.mrb[68].mxu1  ;;  %6599 = vmatpush3.bf16.msra.mxu0 %v7090_v38  ;;  %6705 = vmatpush3.bf16.msra.mxu1 %v7089_v32 }
 0x22e   : > { %v2716_v0 = vadd.f32 %v2715_v15, %v8926_v12  ;;  %v2769_v29 = vadd.f32 %v2768_v58, %v8882_v24  ;;  %v2717_v51 = vpop.f32.mrb[77].mxu0  ;;  %v2770_v63 = vpop.f32.mrb[69].mxu1  ;;  %6706 = vmatprep.subr.bf16.mxu1 %v7091_v36 }
 0x22f   : > { %v2718_v37 = vadd.f32 %v2717_v51, %v8926_v12  ;;  %v2771_v9 = vadd.f32 %v2770_v63, %v8882_v24  ;;  %v2719_v14 = vpop.f32.mrb[78].mxu0  ;;  %v2772_v60 = vpop.f32.mrb[70].mxu1  ;;  %5026 = vmatprep.mubr.bf16.mxu1 %v3089_v22  ;;  %5075 = vmatprep.mubr.bf16.mxu0 %v3049_v19 }
 0x230   : > { %v2720_v54 = vadd.f32 %v2719_v14, %v8928_v30  ;;  %v2773_v62 = vadd.f32 %v2772_v60, %v8888_v27  ;;  %v2721_v43 = vpop.f32.mrb[79].mxu0  ;;  %v2774_v5 = vpop.f32.mrb[71].mxu1  ;;  %5027 = vmatmul.mubr.bf16.gmra.mrb[152].mxu1 %v3088_v17  ;;  %5076 = vmatmul.mubr.bf16.vlgmr.msra.gmra.mrb[152].mxu0 %v3048_v8  ;;  %v3004_v48 = vmax.f32 %v2716_v0, 0.0  ;;  %v2922_v11 = vmax.f32 %v2769_v29, 0.0 }
 0x231   : > { %v2722_v1 = vadd.f32 %v2721_v43, %v8928_v30  ;;  %v2775_v52 = vadd.f32 %v2774_v5, %v8888_v27  ;;  %6707 = vmatpush3.bf16.msra.mxu1 %v7091_v36  ;;  %v3005_v44 = vmax.f32 %v2718_v37, 0.0  ;;  %v2923_v13 = vmax.f32 %v2771_v9, 0.0 }
 0x232   : > { %v3025_v59 = vmax.f32 %v2720_v54, 0.0  ;;  %v2943_v33 = vmax.f32 %v2773_v62, 0.0  ;;  %6708 = vmatprep.subr.bf16.mxu1 %v7092_v25 }
 0x233   : > { %v3026_v53 = vmax.f32 %v2722_v1, 0.0  ;;  %v2944_v46 = vmax.f32 %v2775_v52, 0.0 }
 0x234   : > { %v3109_v2 = vpack.c.bf16 %v3025_v59, %v3004_v48  ;;  %v3069_v50 = vpack.c.bf16 %v2943_v33, %v2922_v11 }
 0x235   : > { %v3110_v18 = vpack.c.bf16 %v3026_v53, %v3005_v44  ;;  %v3070_v32 = vpack.c.bf16 %v2944_v46, %v2923_v13  ;;  %v2778_v23 = vpop.f32.mrb[72].mxu1  ;;  %v6692_v31 = vpop.f32.mrb[80].mxu0  ;;  %6709 = vmatpush3.bf16.msra.mxu1 %v7092_v25 }
 0x236   : > { %v2779_v7 = vadd.f32 %v2778_v23, %v8902_v3  ;;  %v2840_v57 = vadd.f32 %v6692_v31, %v8882_v24  ;;  %v2780_v35 = vpop.f32.mrb[73].mxu1  ;;  %v2831_v47 = vpop.f32.mrb[81].mxu0  ;;  %6710 = vmatprep.subr.bf16.mxu1 %v7093_v34 }
 0x237   : > { %v2781_v16 = vadd.f32 %v2780_v35, %v8902_v3  ;;  %v2832_v40 = vadd.f32 %v2831_v47, %v8874_v41  ;;  %v2782_v21 = vpop.f32.mrb[74].mxu1  ;;  %v6693_v38 = vpop.f32.mrb[82].mxu0  ;;  %5034 = vmatprep.mubr.bf16.mxu1 %v3110_v18  ;;  %5083 = vmatprep.mubr.bf16.mxu0 %v3070_v32 }
 0x238   : > { %v2783_v42 = vadd.f32 %v2782_v21, %v8904_v6  ;;  %v2843_v55 = vadd.f32 %v6693_v38, %v8888_v27  ;;  %v2784_v24 = vpop.f32.mrb[75].mxu1  ;;  %v2834_v61 = vpop.f32.mrb[83].mxu0  ;;  %5035 = vmatmul.mubr.bf16.gmra.mrb[156].mxu1 %v3109_v2  ;;  %5084 = vmatmul.mubr.bf16.gmra.mrb[156].mxu0 %v3069_v50  ;;  %v2964_v49 = vmax.f32 %v2779_v7, 0.0  ;;  %v2924_v56 = vmax.f32 %v2840_v57, 0.0 }
 0x239   : > { %v2785_v20 = vadd.f32 %v2784_v24, %v8904_v6  ;;  %v2835_v36 = vadd.f32 %v2834_v61, %v8877_v26  ;;  %6711 = vmatpush3.bf16.msra.mxu1 %v7093_v34  ;;  %v2965_v10 = vmax.f32 %v2781_v16, 0.0  ;;  %v2882_v17 = vmax.f32 %v2832_v40, 0.0 }
 0x23a   : > { %v2985_v41 = vmax.f32 %v2783_v42, 0.0  ;;  %v2945_v45 = vmax.f32 %v2843_v55, 0.0  ;;  %6712 = vmatprep.subr.bf16.mxu1 %v7094_v39 }
 0x23b   : > { %v2986_v8 = vmax.f32 %v2785_v20, 0.0  ;;  %v2903_v22 = vmax.f32 %v2835_v36, 0.0 }
 0x23c   : > { %v3090_v19 = vpack.c.bf16 %v2985_v41, %v2964_v49  ;;  %v3071_v27 = vpack.c.bf16 %v2945_v45, %v2924_v56 }
 0x23d   : > { %v3091_v15 = vpack.c.bf16 %v2986_v8, %v2965_v10  ;;  %v3050_v58 = vpack.c.bf16 %v2903_v22, %v2882_v17  ;;  %v2788_v0 = vpop.f32.mrb[76].mxu1  ;;  %v6696_v29 = vpop.f32.mrb[84].mxu0  ;;  %6713 = vmatpush3.bf16.msra.mxu1 %v7094_v39 }
 0x23e   : > { %v2789_v51 = vadd.f32 %v2788_v0, %v8926_v12  ;;  %v2856_v26 = vadd.f32 %v6696_v29, %v8926_v12  ;;  %v2790_v63 = vpop.f32.mrb[77].mxu1  ;;  %v2847_v25 = vpop.f32.mrb[85].mxu0 }
 0x23f   : > { %v2791_v37 = vadd.f32 %v2790_v63, %v8926_v12  ;;  %v2848_v9 = vadd.f32 %v2847_v25, %v8902_v3  ;;  %v2792_v14 = vpop.f32.mrb[78].mxu1  ;;  %v6697_v60 = vpop.f32.mrb[86].mxu0  ;;  %5091 = vmatprep.mubr.bf16.mxu0 %v3091_v15  ;;  %6714 = vmatprep.mubr.bf16.mxu1 %v3050_v58 }
 0x240   : > { %v2793_v54 = vadd.f32 %v2792_v14, %v8928_v30  ;;  %v2859_v62 = vadd.f32 %v6697_v60, %v8928_v30  ;;  %v2794_v43 = vpop.f32.mrb[79].mxu1  ;;  %v2850_v5 = vpop.f32.mrb[87].mxu0  ;;  %5092 = vmatmul.mubr.bf16.gmra.mrb[160].mxu0 %v3090_v19  ;;  %6715 = vmatmul.mubr.bf16.vlgmr.msra.gmra.mrb[160].mxu1 %v3071_v27  ;;  %v3006_v48 = vmax.f32 %v2789_v51, 0.0  ;;  %v3008_v12 = vmax.f32 %v2856_v26, 0.0 }
 0x241   : > { %v2795_v1 = vadd.f32 %v2794_v43, %v8928_v30  ;;  %v2851_v52 = vadd.f32 %v2850_v5, %v8904_v6  ;;  %v3007_v59 = vmax.f32 %v2791_v37, 0.0  ;;  %v2966_v33 = vmax.f32 %v2848_v9, 0.0 }
 0x242   : > { %v3027_v11 = vmax.f32 %v2793_v54, 0.0  ;;  %v3029_v3 = vmax.f32 %v2859_v62, 0.0 }
 0x243   : > { %v3028_v34 = vmax.f32 %v2795_v1, 0.0  ;;  %v2987_v44 = vmax.f32 %v2851_v52, 0.0 }
 0x244   : > { %v3111_v13 = vpack.c.bf16 %v3027_v11, %v3006_v48  ;;  %v3113_v53 = vpack.c.bf16 %v3029_v3, %v3008_v12 }
 0x245   : > { %v3112_v46 = vpack.c.bf16 %v3028_v34, %v3007_v59  ;;  %v3092_v2 = vpack.c.bf16 %v2987_v44, %v2966_v33 }
 0x247   : > { %5099 = vmatprep.mubr.bf16.mxu0 %v3112_v46  ;;  %6718 = vmatprep.mubr.bf16.mxu1 %v3092_v2 }
 0x248   : > { %5100 = vmatmul.mubr.bf16.gmra.mrb[164].mxu0 %v3111_v13  ;;  %6719 = vmatmul.mubr.bf16.gmra.mrb[164].mxu1 %v3113_v53 }
 0x249   : > { %5347 = vmatprep.mubr.bf16.mxu1 %v8443_v28  ;;  %5388 = vmatprep.mubr.bf16.mxu0 %v8443_v28 }
 0x272   : > { %v6240_v6 = vpop.f32.mrb[80].mxu1 }
 0x273   : > { %v6241_v30 = vpop.f32.mrb[81].mxu1 }
 0x274   : > { %v6242_v50 = vadd.f32 %v6241_v30, %v6240_v6  ;;  %v6243_v18 = vpop.f32.mrb[82].mxu1 }
 0x275   : > { %v6244_v32 = vpop.f32.mrb[83].mxu1 }
 0x276   : > { %v6245_v23 = vadd.f32 %v6244_v32, %v6243_v18 }
 0x27a   : > { %v6246_v31 = vpop.f32.mrb[84].mxu1 }
 0x27b   : > { %v6247_v7 = vpop.f32.mrb[85].mxu1 }
 0x27c   : > { %v6248_v57 = vadd.f32 %v6247_v7, %v6246_v31  ;;  %v6249_v35 = vpop.f32.mrb[86].mxu1 }
 0x27d   : > { %v6250_v47 = vpop.f32.mrb[87].mxu1 }
 0x27e   : > { %v6251_v39 = vadd.f32 %v6250_v47, %v6249_v35 }
 0x281   : > { %v6280_v16 = vpop.f32.mrb[88].mxu0 }
 0x282   : > { %v6252_v40 = vpop.f32.mrb[88].mxu1  ;;  %v6281_v21 = vpop.f32.mrb[89].mxu0 }
 0x283   : > { %v6253_v38 = vpop.f32.mrb[89].mxu1  ;;  %v6282_v42 = vadd.f32 %v6281_v21, %v6280_v16  ;;  %v6283_v55 = vpop.f32.mrb[90].mxu0 }
 0x284   : > { %v6254_v24 = vadd.f32 %v6253_v38, %v6252_v40  ;;  %v6255_v28 = vpop.f32.mrb[90].mxu1  ;;  %v6284_v61 = vpop.f32.mrb[91].mxu0 }
 0x285   : > { %v4558_v20 = vadd.f32 %v6282_v42, %v6242_v50  ;;  %v6256_v36 = vpop.f32.mrb[91].mxu1  ;;  %v6285_v49 = vadd.f32 %v6284_v61, %v6283_v55 }
 0x286   : > { %v6257_v56 = vadd.f32 %v6256_v36, %v6255_v28 }
 0x287   : > { %v4561_v41 = vadd.f32 %v6285_v49, %v6245_v23  ;;  %v7095_v49 = vld [vmem:[%s9670_s4 + $0x8] ss:$16 sps:$4 sm:$0xff]  }
 0x289   : > { %v6286_v45 = vpop.f32.mrb[92].mxu0 }
 0x28a   : > { %v6258_v10 = vpop.f32.mrb[92].mxu1  ;;  %v6287_v17 = vpop.f32.mrb[93].mxu0 }
 0x28b   : > { %v6259_v8 = vpop.f32.mrb[93].mxu1  ;;  %v6288_v22 = vadd.f32 %v6287_v17, %v6286_v45  ;;  %v6289_v19 = vpop.f32.mrb[94].mxu0  ;;  %v7100_v45 = vld [vmem:[%s9670_s4 + $0x2c] ss:$16 sps:$4 sm:$0xff]   ;;  %v7103_v17 = vld [vmem:[%s9670_s4 + $0x4] ss:$16 sps:$4 sm:$0xff]  }
 0x28c   : > { %v6260_v27 = vadd.f32 %v6259_v8, %v6258_v10  ;;  %v6261_v15 = vpop.f32.mrb[94].mxu1  ;;  %v6290_v58 = vpop.f32.mrb[95].mxu0  ;;  %v7101_v10 = vld [vmem:[%s9670_s4] ss:$16 sps:$4 sm:$0xff]   ;;  %5315 = vmatprep.subr.bf16.mxu1 %v7103_v17 }
 0x28d   : > { %v4566_v0 = vadd.f32 %v6288_v22, %v6248_v57  ;;  %v6262_v29 = vpop.f32.mrb[95].mxu1  ;;  %v6291_v51 = vadd.f32 %v6290_v58, %v6289_v19  ;;  %v7106_v22 = vld [vmem:[%s9670_s4 + $0x24] ss:$16 sps:$4 sm:$0xff]   ;;  %5316 = vmatpush1.bf16.msra.mxu1 %v7101_v10 }
 0x28e   : > { %v6263_v26 = vadd.f32 %v6262_v29, %v6261_v15  ;;  %v7109_v29 = vld [vmem:[%s9670_s4 + $0x4c] ss:$16 sps:$4 sm:$0xff]   ;;  %5317 = vmatprep.subr.bf16.mxu1 %v7106_v22 }
 0x28f   : > { %v4569_v63 = vadd.f32 %v6291_v51, %v6251_v39 }
 0x291   : > { %v6292_v25 = vpop.f32.mrb[96].mxu0 }
 0x292   : > { %v6320_v37 = vpop.f32.mrb[96].mxu1  ;;  %v6293_v9 = vpop.f32.mrb[97].mxu0 }
 0x293   : > { %v6294_v14 = vadd.f32 %v6293_v9, %v6292_v25  ;;  %v6321_v60 = vpop.f32.mrb[97].mxu1  ;;  %v6295_v54 = vpop.f32.mrb[98].mxu0  ;;  %v7112_v25 = vld [vmem:[%s9670_s4 + $0x44] ss:$16 sps:$4 sm:$0xff]  }
 0x294   : > { %v6322_v62 = vadd.f32 %v6321_v60, %v6320_v37  ;;  %v6323_v43 = vpop.f32.mrb[98].mxu1  ;;  %v6296_v5 = vpop.f32.mrb[99].mxu0 }
 0x295   : > { %v4574_v1 = vadd.f32 %v6294_v14, %v6254_v24  ;;  %v6297_v52 = vadd.f32 %v6296_v5, %v6295_v54  ;;  %v6324_v48 = vpop.f32.mrb[99].mxu1 }
 0x296   : > { %v4623_v12 = vadd.f32 %v6322_v62, %v4558_v20  ;;  %v6325_v11 = vadd.f32 %v6324_v48, %v6323_v43  ;;  %v7107_v43 = vld [vmem:[%s9670_s4 + $0x48] ss:$16 sps:$4 sm:$0xff]   ;;  %v7118_v48 = vld [vmem:[%s9670_s4 + $0x6c] ss:$16 sps:$4 sm:$0xff]  }
 0x297   : > { %v4577_v3 = vadd.f32 %v6297_v52, %v6257_v56  ;;  %v7097_v56 = vld [vmem:[%s9670_s4 + $0xc] ss:$16 sps:$4 sm:$0xff]   ;;  %v7110_v52 = vld [vmem:[%s9670_s4 + $0x40] ss:$16 sps:$4 sm:$0xff]  }
 0x298   : > { %v4626_v59 = vadd.f32 %v6325_v11, %v4561_v41  ;;  %5356 = vmatprep.subr.bf16.mxu0 %v7097_v56  ;;  %v7115_v11 = vld [vmem:[%s9670_s4 + $0x64] ss:$16 sps:$4 sm:$0xff]  }
 0x299   : > { %v6298_v33 = vpop.f32.mrb[100].mxu0  ;;  %5357 = vmatpush1.bf16.msra.mxu0 %v7095_v49 }
 0x29a   : > { %v6326_v34 = vpop.f32.mrb[100].mxu1  ;;  %v6299_v44 = vpop.f32.mrb[101].mxu0  ;;  %5358 = vmatprep.subr.bf16.mxu0 %v7100_v45 }
 0x29b   : > { %v6300_v13 = vadd.f32 %v6299_v44, %v6298_v33  ;;  %v6327_v53 = vpop.f32.mrb[101].mxu1  ;;  %v6301_v46 = vpop.f32.mrb[102].mxu0  ;;  %v7113_v44 = vld [vmem:[%s9670_s4 + $0x60] ss:$16 sps:$4 sm:$0xff]  }
 0x29c   : > { %v6328_v2 = vadd.f32 %v6327_v53, %v6326_v34  ;;  %v6329_v6 = vpop.f32.mrb[102].mxu1  ;;  %v6302_v30 = vpop.f32.mrb[103].mxu0 }
 0x29d   : > { %v4582_v50 = vadd.f32 %v6300_v13, %v6260_v27  ;;  %v6303_v18 = vadd.f32 %v6302_v30, %v6301_v46  ;;  %v6330_v32 = vpop.f32.mrb[103].mxu1  ;;  %v7098_v27 = vld [vmem:[%s9670_s4 + $0x28] ss:$16 sps:$4 sm:$0xff]  }
 0x29e   : > { %v4631_v23 = vadd.f32 %v6328_v2, %v4566_v0  ;;  %v6331_v31 = vadd.f32 %v6330_v32, %v6329_v6  ;;  %v7104_v0 = vld [vmem:[%s9670_s4 + $0x20] ss:$16 sps:$4 sm:$0xff]   ;;  %5359 = vmatpush1.bf16.msra.mxu0 %v7098_v27 }
 0x29f   : > { %v4585_v7 = vadd.f32 %v6303_v18, %v6263_v26  ;;  %5318 = vmatpush1.bf16.msra.mxu1 %v7104_v0  ;;  %5360 = vmatprep.subr.bf16.mxu0 %v7109_v29 }
 0x2a0   : > { %v4634_v57 = vadd.f32 %v6331_v31, %v4569_v63  ;;  %5319 = vmatprep.subr.bf16.mxu1 %v7112_v25 }
 0x2a1   : > { %v6360_v47 = vpop.f32.mrb[104].mxu0 }
 0x2a2   : > { %v6332_v35 = vpop.f32.mrb[104].mxu1  ;;  %v6361_v40 = vpop.f32.mrb[105].mxu0  ;;  %5361 = vmatpush1.bf16.msra.mxu0 %v7107_v43 }
 0x2a3   : > { %v6333_v39 = vpop.f32.mrb[105].mxu1  ;;  %v6362_v38 = vadd.f32 %v6361_v40, %v6360_v47  ;;  %v6363_v42 = vpop.f32.mrb[106].mxu0  ;;  %5320 = vmatpush1.bf16.msra.mxu1 %v7110_v52  ;;  %5362 = vmatprep.subr.bf16.mxu0 %v7118_v48 }
 0x2a4   : > { %v6334_v16 = vadd.f32 %v6333_v39, %v6332_v35  ;;  %v6335_v21 = vpop.f32.mrb[106].mxu1  ;;  %v6364_v61 = vpop.f32.mrb[107].mxu0  ;;  %5321 = vmatprep.subr.bf16.mxu1 %v7115_v11 }
 0x2a5   : > { %v6336_v55 = vpop.f32.mrb[107].mxu1  ;;  %v4688_v20 = vadd.f32 %v6362_v38, %v4623_v12  ;;  %v6365_v36 = vadd.f32 %v6364_v61, %v6363_v42 }
 0x2a6   : > { %v9462_v24 = vadd.f32 %v6334_v16, %v4574_v1  ;;  %v6337_v28 = vadd.f32 %v6336_v55, %v6335_v21 }
 0x2a7   : > { %v4691_v8 = vadd.f32 %v6365_v36, %v4626_v59  ;;  %v7116_v59 = vld [vmem:[%s9670_s4 + $0x68] ss:$16 sps:$4 sm:$0xff]   ;;  %5322 = vmatpush1.bf16.msra.mxu1 %v7113_v44 }
 0x2a8   : > { %v4642_v41 = vadd.f32 %v6337_v28, %v4577_v3  ;;  %5363 = vmatpush1.bf16.msra.mxu0 %v7116_v59 }
 0x2a9   : > { %v6366_v15 = vpop.f32.mrb[108].mxu0 }
 0x2aa   : > { %v6338_v19 = vpop.f32.mrb[108].mxu1  ;;  %v6367_v26 = vpop.f32.mrb[109].mxu0 }
 0x2ab   : > { %v6339_v58 = vpop.f32.mrb[109].mxu1  ;;  %v6368_v37 = vadd.f32 %v6367_v26, %v6366_v15  ;;  %v6369_v9 = vpop.f32.mrb[110].mxu0 }
 0x2ac   : > { %v6340_v51 = vadd.f32 %v6339_v58, %v6338_v19  ;;  %v6341_v63 = vpop.f32.mrb[110].mxu1  ;;  %v6370_v62 = vpop.f32.mrb[111].mxu0 }
 0x2ad   : > { %v6342_v14 = vpop.f32.mrb[111].mxu1  ;;  %v4696_v5 = vadd.f32 %v6368_v37, %v4631_v23  ;;  %v6371_v1 = vadd.f32 %v6370_v62, %v6369_v9 }
 0x2ae   : > { %v4647_v60 = vadd.f32 %v6340_v51, %v4582_v50  ;;  %v6343_v54 = vadd.f32 %v6342_v14, %v6341_v63 }
 0x2af   : > { %v4699_v3 = vadd.f32 %v6371_v1, %v4634_v57 }
 0x2b0   : > { %v4650_v12 = vadd.f32 %v6343_v54, %v4585_v7 }
 0x2b1   : > { %v6372_v33 = vpop.f32.mrb[112].mxu0 }
 0x2b2   : > { %v6400_v34 = vpop.f32.mrb[112].mxu1  ;;  %v6373_v13 = vpop.f32.mrb[113].mxu0 }
 0x2b3   : > { %v6401_v53 = vpop.f32.mrb[113].mxu1  ;;  %v6374_v46 = vadd.f32 %v6373_v13, %v6372_v33  ;;  %v6375_v6 = vpop.f32.mrb[114].mxu0 }
 0x2b4   : > { %v6402_v2 = vadd.f32 %v6401_v53, %v6400_v34  ;;  %v6403_v30 = vpop.f32.mrb[114].mxu1  ;;  %v6376_v50 = vpop.f32.mrb[115].mxu0 }
 0x2b5   : > { %v6404_v18 = vpop.f32.mrb[115].mxu1  ;;  %v4704_v32 = vadd.f32 %v6374_v46, %v9462_v24  ;;  %v6377_v31 = vadd.f32 %v6376_v50, %v6375_v6 }
 0x2b6   : > { %v4753_v23 = vadd.f32 %v6402_v2, %v4688_v20  ;;  %v6405_v7 = vadd.f32 %v6404_v18, %v6403_v30 }
 0x2b7   : > { %v4707_v57 = vadd.f32 %v6377_v31, %v4642_v41 }
 0x2b8   : > { %v4756_v35 = vadd.f32 %v6405_v7, %v4691_v8 }
 0x2b9   : > { %v6378_v47 = vpop.f32.mrb[116].mxu0 }
 0x2ba   : > { %v6406_v39 = vpop.f32.mrb[116].mxu1  ;;  %v6379_v16 = vpop.f32.mrb[117].mxu0 }
 0x2bb   : > { %v6407_v40 = vpop.f32.mrb[117].mxu1  ;;  %v6380_v21 = vadd.f32 %v6379_v16, %v6378_v47  ;;  %v6381_v42 = vpop.f32.mrb[118].mxu0 }
 0x2bc   : > { %v6408_v38 = vadd.f32 %v6407_v40, %v6406_v39  ;;  %v6409_v55 = vpop.f32.mrb[118].mxu1  ;;  %v6382_v28 = vpop.f32.mrb[119].mxu0 }
 0x2bd   : > { %v6410_v61 = vpop.f32.mrb[119].mxu1  ;;  %v4712_v36 = vadd.f32 %v6380_v21, %v4647_v60  ;;  %v6383_v56 = vadd.f32 %v6382_v28, %v6381_v42 }
 0x2be   : > { %v4761_v49 = vadd.f32 %v6408_v38, %v4696_v5  ;;  %v6411_v24 = vadd.f32 %v6410_v61, %v6409_v55 }
 0x2bf   : > { %v4715_v20 = vadd.f32 %v6383_v56, %v4650_v12 }
 0x2c0   : > { %v4764_v45 = vadd.f32 %v6411_v24, %v4699_v3 }
 0x2c2   : > { %v6412_v10 = vpop.f32.mrb[120].mxu1 }
 0x2c3   : > { %v6440_v17 = vpop.f32.mrb[120].mxu0  ;;  %v6413_v41 = vpop.f32.mrb[121].mxu1 }
 0x2c4   : > { %v6441_v8 = vpop.f32.mrb[121].mxu0  ;;  %v6414_v22 = vadd.f32 %v6413_v41, %v6412_v10  ;;  %v6415_v27 = vpop.f32.mrb[122].mxu1 }
 0x2c5   : > { %v6442_v19 = vadd.f32 %v6441_v8, %v6440_v17  ;;  %v6443_v15 = vpop.f32.mrb[122].mxu0  ;;  %v6416_v58 = vpop.f32.mrb[123].mxu1 }
 0x2c6   : > { %v6444_v0 = vpop.f32.mrb[123].mxu0  ;;  %v4769_v29 = vadd.f32 %v6414_v22, %v4704_v32  ;;  %v6417_v26 = vadd.f32 %v6416_v58, %v6415_v27 }
 0x2c7   : > { %v4818_v51 = vadd.f32 %v6442_v19, %v4753_v23  ;;  %v6445_v63 = vadd.f32 %v6444_v0, %v6443_v15 }
 0x2c8   : > { %v4772_v25 = vadd.f32 %v6417_v26, %v4707_v57 }
 0x2c9   : > { %v4821_v37 = vadd.f32 %v6445_v63, %v4756_v35 }
 0x2ca   : > { %v6418_v9 = vpop.f32.mrb[124].mxu1 }
 0x2cb   : > { %v6446_v14 = vpop.f32.mrb[124].mxu0  ;;  %v6419_v60 = vpop.f32.mrb[125].mxu1 }
 0x2cc   : > { %v6447_v54 = vpop.f32.mrb[125].mxu0  ;;  %v6420_v62 = vadd.f32 %v6419_v60, %v6418_v9  ;;  %v6421_v5 = vpop.f32.mrb[126].mxu1 }
 0x2cd   : > { %v6448_v43 = vadd.f32 %v6447_v54, %v6446_v14  ;;  %v6449_v1 = vpop.f32.mrb[126].mxu0  ;;  %v6422_v52 = vpop.f32.mrb[127].mxu1 }
 0x2ce   : > { %v6450_v48 = vpop.f32.mrb[127].mxu0  ;;  %v4777_v12 = vadd.f32 %v6420_v62, %v4712_v36  ;;  %v6423_v3 = vadd.f32 %v6422_v52, %v6421_v5 }
 0x2cf   : > { %v4826_v11 = vadd.f32 %v6448_v43, %v4761_v49  ;;  %v6451_v59 = vadd.f32 %v6450_v48, %v6449_v1 }
 0x2d0   : > { %v4780_v33 = vadd.f32 %v6423_v3, %v4715_v20 }
 0x2d1   : > { %v4829_v34 = vadd.f32 %v6451_v59, %v4764_v45 }
 0x2d2   : > { %v6480_v13 = vpop.f32.mrb[128].mxu1 }
 0x2d3   : > { %v6452_v44 = vpop.f32.mrb[128].mxu0  ;;  %v6481_v46 = vpop.f32.mrb[129].mxu1 }
 0x2d4   : > { %v6453_v53 = vpop.f32.mrb[129].mxu0  ;;  %v6482_v6 = vadd.f32 %v6481_v46, %v6480_v13  ;;  %v6483_v50 = vpop.f32.mrb[130].mxu1 }
 0x2d5   : > { %v6454_v2 = vadd.f32 %v6453_v53, %v6452_v44  ;;  %v6455_v30 = vpop.f32.mrb[130].mxu0  ;;  %v6484_v32 = vpop.f32.mrb[131].mxu1 }
 0x2d6   : > { %v6456_v18 = vpop.f32.mrb[131].mxu0  ;;  %v4883_v31 = vadd.f32 %v6482_v6, %v4818_v51  ;;  %v6485_v57 = vadd.f32 %v6484_v32, %v6483_v50 }
 0x2d7   : > { %v4834_v23 = vadd.f32 %v6454_v2, %v4769_v29  ;;  %v6457_v7 = vadd.f32 %v6456_v18, %v6455_v30 }
 0x2d8   : > { %v4886_v47 = vadd.f32 %v6485_v57, %v4821_v37 }
 0x2d9   : > { %v4837_v35 = vadd.f32 %v6457_v7, %v4772_v25 }
 0x2da   : > { %v6486_v16 = vpop.f32.mrb[132].mxu1 }
 0x2db   : > { %v6458_v39 = vpop.f32.mrb[132].mxu0  ;;  %v6487_v21 = vpop.f32.mrb[133].mxu1 }
 0x2dc   : > { %v6459_v40 = vpop.f32.mrb[133].mxu0  ;;  %v6488_v42 = vadd.f32 %v6487_v21, %v6486_v16  ;;  %v6489_v28 = vpop.f32.mrb[134].mxu1 }
 0x2dd   : > { %v6460_v38 = vadd.f32 %v6459_v40, %v6458_v39  ;;  %v6461_v55 = vpop.f32.mrb[134].mxu0  ;;  %v6490_v36 = vpop.f32.mrb[135].mxu1 }
 0x2de   : > { %v6462_v61 = vpop.f32.mrb[135].mxu0  ;;  %v4891_v56 = vadd.f32 %v6488_v42, %v4826_v11  ;;  %v6491_v20 = vadd.f32 %v6490_v36, %v6489_v28 }
 0x2df   : > { %v4842_v49 = vadd.f32 %v6460_v38, %v4777_v12  ;;  %v6463_v24 = vadd.f32 %v6462_v61, %v6461_v55 }
 0x2e0   : > { %v4894_v10 = vadd.f32 %v6491_v20, %v4829_v34 }
 0x2e1   : > { %v4845_v45 = vadd.f32 %v6463_v24, %v4780_v33 }
 0x2e2   : > { %v6492_v17 = vpop.f32.mrb[136].mxu1 }
 0x2e3   : > { %v6520_v41 = vpop.f32.mrb[136].mxu0  ;;  %v6493_v8 = vpop.f32.mrb[137].mxu1 }
 0x2e4   : > { %v6521_v22 = vpop.f32.mrb[137].mxu0  ;;  %v6494_v19 = vadd.f32 %v6493_v8, %v6492_v17  ;;  %v6495_v15 = vpop.f32.mrb[138].mxu1  ;;  %v7120_v8 = vld [vmem:[%s9672_s6 + $0xc0] sm:$0xff]  }
 0x2e5   : > { %v6522_v27 = vadd.f32 %v6521_v22, %v6520_v41  ;;  %v6523_v58 = vpop.f32.mrb[138].mxu0  ;;  %v6496_v0 = vpop.f32.mrb[139].mxu1  ;;  %v7119_v41 = vld [vmem:[%s9672_s6 + $0x40] sm:$0xff]   ;;  %6658 = vmatprep.subr.bf16.mxu0 %v7120_v8 }
 0x2e6   : > { %v6524_v29 = vpop.f32.mrb[139].mxu0  ;;  %v4899_v51 = vadd.f32 %v6494_v19, %v4834_v23  ;;  %v6497_v63 = vadd.f32 %v6496_v0, %v6495_v15  ;;  %6636 = vmatprep.subr.bf16.mxu1 %v7119_v41 }
 0x2e7   : > { %v4948_v26 = vadd.f32 %v6522_v27, %v4883_v31  ;;  %v6525_v25 = vadd.f32 %v6524_v29, %v6523_v58 }
 0x2e8   : > { %v4902_v37 = vadd.f32 %v6497_v63, %v4837_v35 }
 0x2e9   : > { %v4951_v9 = vadd.f32 %v6525_v25, %v4886_v47 }
 0x2ea   : > { %v6498_v14 = vpop.f32.mrb[140].mxu1 }
 0x2eb   : > { %v6526_v60 = vpop.f32.mrb[140].mxu0  ;;  %v6499_v54 = vpop.f32.mrb[141].mxu1 }
 0x2ec   : > { %v6527_v62 = vpop.f32.mrb[141].mxu0  ;;  %v6500_v43 = vadd.f32 %v6499_v54, %v6498_v14  ;;  %v6501_v1 = vpop.f32.mrb[142].mxu1 }
 0x2ed   : > { %v6528_v5 = vadd.f32 %v6527_v62, %v6526_v60  ;;  %v6529_v52 = vpop.f32.mrb[142].mxu0  ;;  %v6502_v48 = vpop.f32.mrb[143].mxu1 }
 0x2ee   : > { %v6530_v12 = vpop.f32.mrb[143].mxu0  ;;  %v4907_v11 = vadd.f32 %v6500_v43, %v4842_v49  ;;  %v6503_v59 = vadd.f32 %v6502_v48, %v6501_v1 }
 0x2ef   : > { %v4956_v3 = vadd.f32 %v6528_v5, %v4891_v56  ;;  %v6531_v33 = vadd.f32 %v6530_v12, %v6529_v52 }
 0x2f0   : > { %v4910_v34 = vadd.f32 %v6503_v59, %v4845_v45 }
 0x2f1   : > { %v4959_v44 = vadd.f32 %v6531_v33, %v4894_v10 }
 0x2f3   : > { %v6532_v13 = vpop.f32.mrb[144].mxu0  ;;  %v6560_v53 = vpop.f32.mrb[144].mxu1 }
 0x2f4   : > { %v6533_v46 = vpop.f32.mrb[145].mxu0  ;;  %v6561_v2 = vpop.f32.mrb[145].mxu1 }
 0x2f5   : > { %v6534_v6 = vadd.f32 %v6533_v46, %v6532_v13  ;;  %v6562_v30 = vadd.f32 %v6561_v2, %v6560_v53  ;;  %v6535_v50 = vpop.f32.mrb[146].mxu0  ;;  %v6563_v18 = vpop.f32.mrb[146].mxu1 }
 0x2f6   : > { %v6536_v32 = vpop.f32.mrb[147].mxu0  ;;  %v6564_v23 = vpop.f32.mrb[147].mxu1 }
 0x2f7   : > { %v4964_v31 = vadd.f32 %v6534_v6, %v4899_v51  ;;  %v5013_v7 = vadd.f32 %v6562_v30, %v4948_v26  ;;  %v6537_v57 = vadd.f32 %v6536_v32, %v6535_v50  ;;  %v6565_v35 = vadd.f32 %v6564_v23, %v6563_v18 }
 0x2f9   : > { %v4967_v47 = vadd.f32 %v6537_v57, %v4902_v37  ;;  %v5016_v39 = vadd.f32 %v6565_v35, %v4951_v9 }
 0x2fb   : > { %v6538_v16 = vpop.f32.mrb[148].mxu0  ;;  %v6566_v40 = vpop.f32.mrb[148].mxu1 }
 0x2fc   : > { %v6539_v21 = vpop.f32.mrb[149].mxu0  ;;  %v6567_v38 = vpop.f32.mrb[149].mxu1 }
 0x2fd   : > { %v6540_v42 = vadd.f32 %v6539_v21, %v6538_v16  ;;  %v6568_v55 = vadd.f32 %v6567_v38, %v6566_v40  ;;  %v6541_v28 = vpop.f32.mrb[150].mxu0  ;;  %v6569_v61 = vpop.f32.mrb[150].mxu1 }
 0x2fe   : > { %v6542_v36 = vpop.f32.mrb[151].mxu0  ;;  %v6570_v49 = vpop.f32.mrb[151].mxu1 }
 0x2ff   : > { %v4972_v56 = vadd.f32 %v6540_v42, %v4907_v11  ;;  %v5021_v24 = vadd.f32 %v6568_v55, %v4956_v3  ;;  %v6543_v20 = vadd.f32 %v6542_v36, %v6541_v28  ;;  %v6571_v45 = vadd.f32 %v6570_v49, %v6569_v61 }
 0x301   : > { %v4975_v10 = vadd.f32 %v6543_v20, %v4910_v34  ;;  %v5024_v17 = vadd.f32 %v6571_v45, %v4959_v44 }
 0x303   : > { %v6572_v22 = vpop.f32.mrb[152].mxu1  ;;  %v6600_v19 = vpop.f32.mrb[152].mxu0 }
 0x304   : > { %v6573_v27 = vpop.f32.mrb[153].mxu1  ;;  %v6601_v15 = vpop.f32.mrb[153].mxu0 }
 0x305   : > { %v6574_v58 = vadd.f32 %v6573_v27, %v6572_v22  ;;  %v6602_v0 = vadd.f32 %v6601_v15, %v6600_v19  ;;  %v6575_v29 = vpop.f32.mrb[154].mxu1  ;;  %v6603_v51 = vpop.f32.mrb[154].mxu0 }
 0x306   : > { %v6576_v26 = vpop.f32.mrb[155].mxu1  ;;  %v6604_v63 = vpop.f32.mrb[155].mxu0 }
 0x307   : > { %v5029_v25 = vadd.f32 %v6574_v58, %v4964_v31  ;;  %v6577_v37 = vadd.f32 %v6576_v26, %v6575_v29  ;;  %v6605_v9 = vadd.f32 %v6604_v63, %v6603_v51  ;;  %v5078_v14 = vadd.f32 %v6602_v0, %v5013_v7  ;;  %v7121_v0 = vld [vmem:[%s9672_s6] sm:$0xff]   ;;  %v7123_v51 = vld [vmem:[%s9672_s6 + $0x48] sm:$0xff]  }
 0x308   : > { %v7122_v29 = vld [vmem:[%s9672_s6 + $0x80] sm:$0xff]   ;;  %v7124_v26 = vld [vmem:[%s9672_s6 + $0xc8] sm:$0xff]  }
 0x309   : > { %v5032_v60 = vadd.f32 %v6577_v37, %v4967_v47  ;;  %v5081_v54 = vadd.f32 %v6605_v9, %v5016_v39  ;;  %v7126_v37 = vld [vmem:[%s9672_s6 + $0x88] sm:$0xff]   ;;  %v7127_v9 = vld [vmem:[%s9672_s6 + $0x50] sm:$0xff]  }
 0x30b   : > { %v6578_v62 = vpop.f32.mrb[156].mxu1  ;;  %v6606_v43 = vpop.f32.mrb[156].mxu0 }
 0x30c   : > { %v6579_v5 = vpop.f32.mrb[157].mxu1  ;;  %v6607_v1 = vpop.f32.mrb[157].mxu0 }
 0x30d   : > { %v6580_v52 = vadd.f32 %v6579_v5, %v6578_v62  ;;  %v6608_v48 = vadd.f32 %v6607_v1, %v6606_v43  ;;  %v6581_v12 = vpop.f32.mrb[158].mxu1  ;;  %v6609_v11 = vpop.f32.mrb[158].mxu0  ;;  %v7131_v62 = vld [vmem:[%s9672_s6 + $0x58] sm:$0xff]  }
 0x30e   : > { %v6582_v3 = vpop.f32.mrb[159].mxu1  ;;  %v6610_v59 = vpop.f32.mrb[159].mxu0  ;;  %v7132_v43 = vld [vmem:[%s9672_s6 + $0xd8] sm:$0xff]  }
 0x30f   : > { %v5037_v33 = vadd.f32 %v6580_v52, %v4972_v56  ;;  %v6583_v34 = vadd.f32 %v6582_v3, %v6581_v12  ;;  %v6611_v44 = vadd.f32 %v6610_v59, %v6609_v11  ;;  %v5086_v13 = vadd.f32 %v6608_v48, %v5021_v24  ;;  %v7133_v5 = vld [vmem:[%s9672_s6 + $0x18] sm:$0xff]   ;;  %v7135_v52 = vld [vmem:[%s9672_s6 + $0x60] sm:$0xff]   ;;  %v7139_v3 = vld [vmem:[%s9672_s6 + $0x68] sm:$0xff]  }
 0x310   : > { %v7134_v1 = vld [vmem:[%s9672_s6 + $0x98] sm:$0xff]   ;;  %v7136_v48 = vld [vmem:[%s9672_s6 + $0xe0] sm:$0xff]   ;;  %v7140_v59 = vld [vmem:[%s9672_s6 + $0xe8] sm:$0xff]  }
 0x311   : > { %v5040_v53 = vadd.f32 %v6583_v34, %v4975_v10  ;;  %v5089_v46 = vadd.f32 %v6611_v44, %v5024_v17  ;;  %v7137_v12 = vld [vmem:[%s9672_s6 + $0x20] sm:$0xff]   ;;  %v7142_v34 = vld [vmem:[%s9672_s6 + $0xa8] sm:$0xff]   ;;  %v7143_v44 = vld [vmem:[%s9672_s6 + $0x70] sm:$0xff]  }
 0x312   : > { %v7138_v11 = vld [vmem:[%s9672_s6 + $0xa0] sm:$0xff]  }
 0x313   : > { %v6612_v2 = vpop.f32.mrb[160].mxu0  ;;  %v6716_v6 = vpop.f32.mrb[160].mxu1 }
 0x314   : > { %v5151_v30 = vadd.f32 %v6716_v6, %v5086_v13  ;;  %v6613_v50 = vpop.f32.mrb[161].mxu0  ;;  %v5142_v18 = vpop.f32.mrb[161].mxu1  ;;  %v7144_v13 = vld [vmem:[%s9672_s6 + $0xf0] sm:$0xff]   ;;  %v7148_v6 = vld [vmem:[%s9672_s6 + $0xf8] sm:$0xff]  }
 0x315   : > { %v6614_v32 = vadd.f32 %v6613_v50, %v6612_v2  ;;  %v5143_v23 = vadd.f32 %v5142_v18, %v5078_v14  ;;  %v6615_v31 = vpop.f32.mrb[162].mxu0  ;;  %v6717_v7 = vpop.f32.mrb[162].mxu1  ;;  %v7128_v14 = vld [vmem:[%s9672_s6 + $0xd0] sm:$0xff]   ;;  %v7147_v2 = vld [vmem:[%s9672_s6 + $0x78] sm:$0xff]   ;;  %v5197_v18 = vsub.s32 0, %v7432_v4 }
 0x316   : > { %v5154_v57 = vadd.f32 %v6717_v7, %v5089_v46  ;;  %v6616_v35 = vpop.f32.mrb[163].mxu0  ;;  %v5145_v47 = vpop.f32.mrb[163].mxu1  ;;  %v7146_v46 = vld [vmem:[%s9672_s6 + $0xb0] sm:$0xff]   ;;  %v7150_v50 = vld [vmem:[%s9672_s6 + $0xb8] sm:$0xff]   ;;  %v5209_v7 = vsub.s32 3, %v7432_v4 }
 0x317   : > { %v6617_v39 = vadd.f32 %v6616_v35, %v6615_v31  ;;  %v5146_v16 = vadd.f32 %v5145_v47, %v5081_v54  ;;  %v5094_v40 = vadd.f32 %v6614_v32, %v5029_v25  ;;  %v7125_v25 = vld [vmem:[%s9672_s6 + $0x8] sm:$0xff]   ;;  %v7130_v54 = vld [vmem:[%s9672_s6 + $0x90] sm:$0xff]   ;;  %v5205_v32 = vsub.s32 2, %v7432_v4 }
 0x318   : > { %v5174_v21 = vpack.c.bf16 %v5154_v57, %v5151_v30  ;;  %v7149_v30 = vld [vmem:[%s9672_s6 + $0x38] sm:$0xff]   ;;  %v5201_v31 = vsub.s32 1, %v7432_v4 }
 0x319   : > { %v5173_v38 = vpack.c.bf16 %v5146_v16, %v5143_v23  ;;  %v5097_v42 = vadd.f32 %v6617_v39, %v5032_v60  ;;  %v7129_v60 = vld [vmem:[%s9672_s6 + $0x10] sm:$0xff]   ;;  %v5193_v23 = vld [vmem:[%s9671_s5] sm:$0xf] }
 0x31a   : > { %v5198_v57 = vrot.slane %v5193_v23, %v5197_v18  ;;  %v5206_v35 = vrot.slane %v5193_v23, %v5205_v32  ;;  %v5202_v47 = vrot.slane %v5193_v23, %v5201_v31  ;;  %v5210_v39 = vrot.slane %v5193_v23, %v5209_v7 }
 0x31b   : > { %v6618_v55 = vpop.f32.mrb[164].mxu0  ;;  %v6720_v28 = vpop.f32.mrb[164].mxu1  ;;  %5215 = vxpose.xlu1.c.b16.start [1/4] (short) (narrow) %v5173_v38, 16 }
 0x31c   : > { %v6619_v61 = vpop.f32.mrb[165].mxu0  ;;  %v5158_v36 = vpop.f32.mrb[165].mxu1 }
 0x31d   : > { %v6620_v49 = vadd.f32 %v6619_v61, %v6618_v55  ;;  %v5159_v56 = vadd.f32 %v5158_v36, %v5094_v40  ;;  %v6621_v24 = vpop.f32.mrb[166].mxu0  ;;  %v6721_v20 = vpop.f32.mrb[166].mxu1 }
 0x31e   : > { %v6622_v45 = vpop.f32.mrb[167].mxu0  ;;  %v5161_v10 = vpop.f32.mrb[167].mxu1 }
 0x31f   : > { %v5102_v17 = vadd.f32 %v6620_v49, %v5037_v33  ;;  %v6623_v41 = vadd.f32 %v6622_v45, %v6621_v24  ;;  %v5162_v8 = vadd.f32 %v5161_v10, %v5097_v42  ;;  %5216 = vxpose.xlu1.c.b16.cont [2/4] (short) (narrow) %v5174_v21, 16  ;;  %v7141_v33 = vld [vmem:[%s9672_s6 + $0x28] sm:$0xff]  }
 0x321   : > { %v5167_v22 = vadd.f32 %v6720_v28, %v5102_v17  ;;  %v5105_v19 = vadd.f32 %v6623_v41, %v5040_v53  ;;  %v5175_v27 = vpack.c.bf16 %v5162_v8, %v5159_v56  ;;  %v7145_v53 = vld [vmem:[%s9672_s6 + $0x30] sm:$0xff]  }
 0x323   : > { %v5170_v15 = vadd.f32 %v6721_v20, %v5105_v19  ;;  %5217 = vxpose.xlu1.c.b16.cont [3/4] (short) (narrow) %v5175_v27, 16 }
 0x325   : > { %v5176_v58 = vpack.c.bf16 %v5170_v15, %v5167_v22  ;;  %v6178_v15 = vld [vmem:[%s9673_s7] ss:$0 sm:$0xff] }
 0x327   : > { %5218 = vxpose.xlu1.c.b16.end [4/4] (short) (narrow) %v5176_v58, 16 }
 0x381   : > { %v5223_v63 = vpop.trf.xlu1 }
 0x382   : > { %6176 = vmatmul.mubr.msk.bf16.vlgmr.msra.gmra.mrb[168].mxu1 %vm5311_vm3, %v5223_v63  ;;  %6177 = vmatmul.mubr.msk.bf16.vlgmr.msra.gmra.mrb[168].mxu0 %vm5311_vm3, %v5223_v63 }
 0x383   : > { %6637 = vmatpush3.bf16.msra.mxu1 %v7121_v0  ;;  %6659 = vmatpush3.bf16.msra.mxu0 %v7122_v29 }
 0x384   : > { %6638 = vmatprep.subr.bf16.mxu1 %v7123_v51  ;;  %6660 = vmatprep.subr.bf16.mxu0 %v7124_v26 }
 0x387   : > { %6639 = vmatpush3.bf16.msra.mxu1 %v7125_v25  ;;  %6661 = vmatpush3.bf16.msra.mxu0 %v7126_v37 }
 0x388   : > { %6640 = vmatprep.subr.bf16.mxu1 %v7127_v9  ;;  %6662 = vmatprep.subr.bf16.mxu0 %v7128_v14 }
 0x38b   : > { %6641 = vmatpush3.bf16.msra.mxu1 %v7129_v60  ;;  %6663 = vmatpush3.bf16.msra.mxu0 %v7130_v54 }
 0x38c   : > { %6642 = vmatprep.subr.bf16.mxu1 %v7131_v62  ;;  %6664 = vmatprep.subr.bf16.mxu0 %v7132_v43 }
 0x38f   : > { %6643 = vmatpush3.bf16.msra.mxu1 %v7133_v5  ;;  %6665 = vmatpush3.bf16.msra.mxu0 %v7134_v1 }
 0x390   : > { %6644 = vmatprep.subr.bf16.mxu1 %v7135_v52  ;;  %6666 = vmatprep.subr.bf16.mxu0 %v7136_v48 }
 0x393   : > { %6645 = vmatpush3.bf16.msra.mxu1 %v7137_v12  ;;  %6667 = vmatpush3.bf16.msra.mxu0 %v7138_v11 }
 0x394   : > { %6646 = vmatprep.subr.bf16.mxu1 %v7139_v3  ;;  %6668 = vmatprep.subr.bf16.mxu0 %v7140_v59 }
 0x397   : > { %6647 = vmatpush3.bf16.msra.mxu1 %v7141_v33  ;;  %6669 = vmatpush3.bf16.msra.mxu0 %v7142_v34 }
 0x398   : > { %6648 = vmatprep.subr.bf16.mxu1 %v7143_v44  ;;  %6670 = vmatprep.subr.bf16.mxu0 %v7144_v13 }
 0x39b   : > { %6649 = vmatpush3.bf16.msra.mxu1 %v7145_v53  ;;  %6671 = vmatpush3.bf16.msra.mxu0 %v7146_v46 }
 0x39c   : > { %6650 = vmatprep.subr.bf16.mxu1 %v7147_v2  ;;  %6672 = vmatprep.subr.bf16.mxu0 %v7148_v6 }
 0x39f   : > { %6651 = vmatpush3.bf16.msra.mxu1 %v7149_v30  ;;  %6673 = vmatpush3.bf16.msra.mxu0 %v7150_v50 }
 0x455   : > { %v5349_v16 = vpop.f32.mrb[168].mxu1  ;;  %v5390_v40 = vpop.f32.mrb[168].mxu0 }
 0x456   : > { %v5350_v21 = vadd.f32 %v5349_v16, %v5198_v57  ;;  %v5391_v38 = vadd.f32 %v5390_v40, %v5206_v35  ;;  %v5351_v42 = vpop.f32.mrb[169].mxu1  ;;  %v5392_v55 = vpop.f32.mrb[169].mxu0 }
 0x457   : > { %v5352_v28 = vadd.f32 %v5351_v42, %v5202_v47  ;;  %v5393_v61 = vadd.f32 %v5392_v55, %v5210_v39  ;;  %v5353_v36 = vpop.f32.mrb[170].mxu1  ;;  %v5394_v49 = vpop.f32.mrb[170].mxu0 }
 0x458   : > { %v5397_v56 = vmax.f32 %v5350_v21, 0.0  ;;  %v5399_v24 = vmax.f32 %v5391_v38, 0.0  ;;  %v5354_v20 = vpop.f32.mrb[171].mxu1  ;;  %v5395_v45 = vpop.f32.mrb[171].mxu0 }
 0x459   : > { %v5398_v4 = vmax.f32 %v5352_v28, 0.0  ;;  %v5400_v10 = vmax.f32 %v5393_v61, 0.0 }
 0x45a   : > { %v5401_v8 = vpack.c.bf16 %v5397_v56, %v5397_v56  ;;  %v5403_v22 = vpack.c.bf16 %v5399_v24, %v5399_v24 }
 0x45b   : > { %v5402_v17 = vpack.c.bf16 %v5398_v4, %v5398_v4  ;;  %v5404_v41 = vpack.c.bf16 %v5400_v10, %v5400_v10 }
 0x45d   : > { %5700 = vmatprep.mubr.bf16.mxu1 %v5402_v17  ;;  %5740 = vmatprep.mubr.bf16.mxu0 %v5404_v41 }
 0x45e   : > { %5701 = vmatmul.mubr.bf16.vlgmr.msra.gmra.mrb[172].mxu1 %v5401_v8  ;;  %5741 = vmatmul.mubr.bf16.vlgmr.msra.gmra.mrb[172].mxu0 %v5403_v22 }
 0x531   : > { %v6652_v19 = vpop.f32.mrb[172].mxu1  ;;  %v6674_v27 = vpop.f32.mrb[172].mxu0 }
 0x532   : > { %v6653_v58 = vpop.f32.mrb[173].mxu1  ;;  %v6675_v0 = vpop.f32.mrb[173].mxu0 }
 0x533   : > { %v6654_v29 = vadd.f32 %v6653_v58, %v6652_v19  ;;  %v6676_v51 = vadd.f32 %v6675_v0, %v6674_v27  ;;  %v6655_v26 = vpop.f32.mrb[174].mxu1  ;;  %v6677_v63 = vpop.f32.mrb[174].mxu0 }
 0x534   : > { %v6656_v25 = vpop.f32.mrb[175].mxu1  ;;  %v6678_v37 = vpop.f32.mrb[175].mxu0 }
 0x535   : > { %v5703_v9 = vadd.f32 %v6654_v29, %v6178_v15 }
 0x537   : > { %v5743_v14 = vadd.f32 %v6676_v51, %v5703_v9 }
 0x539   : > { %5748 = vst [vmem:[%s299_s20] sm:$0xff] %v5743_v14 }
 0x53a   : > { %7170 = shalt.err (!%p7167_p3)
}
 0x53b   : > { %s7171_s12 = scalar_lea.hbm %s9624_s24, 128  ;;  %s7175_s19 = scalar_lea.hbm %s9674_s8, 256 }
 0x53c   : > { %p7172_p4 = scmp.ne.s32.totalorder %s9624_s24, %s7171_s12  ;;  %p7176_p9 = scmp.lt.u32.totalorder %s9624_s24, %s9674_s8 }
 0x53d   : > { %p7177_p10 = scmp.lt.u32.totalorder %s7175_s19, %s7171_s12  ;;  %p7179_p12 = scmp.lt.u32.totalorder %s7171_s12, %s9624_s24 }
 0x53e   : > { %p7173_p7 = pnand %p7172_p4, %p7315_p5 }
 0x53f   : > { %p7178_p11 = por %p7177_p10, %p7176_p9 }
 0x540   : > { %p7174_p8 = pneg %p7173_p7 }
 0x541   : > { %p7180_p13 = por %p7179_p12, %p7178_p11 }
 0x543   : > { %p7181_p0 = pnand %p7180_p13, %p7174_p8 }
 0x545   : > { %7184 = shalt.err (!%p7181_p0)
}
 0x546   : > { %6723 = dma.vmem_to_hbm [thread:$0]  (%p7315_p5), %s9626_s21, 128, %s9624_s24, %s5750_s25  }
 0x547 PF: > { %p6729_p1 = scmp.ge.s32.totalorder %s7219_s30, 2  ;;  %s5775_s23 = sand.u32 1, %s7207_s27  }
 0x548   : > { %s5776_s26 = scalar_lea.sflag [#allocation4], %s5775_s23 }
 0x549   : > { %p6726_p2 = pnand %p6729_p1, %p7319_p6 }
 0x54b   : > { %7202 = dma.done.wait (!%p6726_p2), %s5776_s26, 128  }
 0x54c   : > { %7204 = vsyncadd (!%p6726_p2), %s5776_s26, 4294967168  ;;  %p18_p3 = scmp.ge.s32.totalorder %s7302_s11, 4   ;;  %s9683_s27 = smov %s7211_s28 }
 0x54d   : > { %s9684_s28 = smov %s7215_s29  ;;  %s9685_s29 = smov %s7313_s14 }
 0x54e   : > { %s9686_s30 = smov %s7302_s11  ;;  %20 = sbr.rel (!%p18_p3) target bundleno = 3 (0x3), region = 87 }
 0x555   :  { %5781 = vsyncpa [#allocation4], 1 }
 0x556   :  { %5783 = vsyncpa [#allocation4 + $0x1], 1 }

</bundles_post_ra>
